<compile_context>
chip_gen: v6e
topology: v6e:2x2x1
jax: 0.10.0
libtpu: 0.0.40
codegen_flags: <defaults>
</compile_context>

<pallas_src>
import math

import jax
import jax.numpy as jnp
from jax.experimental import pallas as pl
from jax.experimental.pallas import tpu as pltpu

# ---------------- hyperparameters (small, consistent with PhysNet.__init__) --
N_ATOM_BASIS = 32          # n_atom_basis
N_RBF = 16                 # n_rbf
N_INTERACTIONS = 2         # residual blocks inside each interaction
N_OUTPUT_RESIDUAL = 1      # n_output_residual
N_ATOMIC_RESIDUAL = 1      # n_atomic_residual
N_MODULES = 2              # n_modules
MAX_Z = 200                # max_z
CUTOFF = 5.0
GAMMA = 10.0
LN2 = math.log(2.0)

F = N_ATOM_BASIS
R = N_RBF
NI = N_INTERACTIONS
NA = N_ATOMIC_RESIDUAL
NO = N_OUTPUT_RESIDUAL

# ----- packed weight slab layout (per module, row offsets, width = F) --------
OFF_FILT = 0                       # (R, F)
OFF_WI = OFF_FILT + R              # (F, F)
OFF_WJ = OFF_WI + F                # (F, F)
OFF_WR1 = OFF_WJ + F               # NI x (F, F)
OFF_WR2 = OFF_WR1 + NI * F         # NI x (F, F)
OFF_WOUT = OFF_WR2 + NI * F        # (F, F)
OFF_WA1 = OFF_WOUT + F             # NA x (F, F)
OFF_WA2 = OFF_WA1 + NA * F         # NA x (F, F)
OFF_WO1 = OFF_WA2 + NA * F         # NO x (F, F)
OFF_WO2 = OFF_WO1 + NO * F         # NO x (F, F)
KW_PER_MODULE = OFF_WO2 + NO * F   # = 368 rows (multiple of 8)

# ----- packed bias slab layout (per module, single rows, width = F) ----------
ROW_BI = 0
ROW_BJ = 1
ROW_BR1 = 2                        # NI rows
ROW_BR2 = ROW_BR1 + NI             # NI rows
ROW_BOUT = ROW_BR2 + NI
ROW_U = ROW_BOUT + 1
ROW_BA1 = ROW_U + 1                # NA rows
ROW_BA2 = ROW_BA1 + NA             # NA rows
ROW_BO1 = ROW_BA2 + NA             # NO rows
ROW_BO2 = ROW_BO1 + NO             # NO rows
KB_USED = ROW_BO2 + NO             # = 12
KB_PER_MODULE = ((KB_USED + 7) // 8) * 8   # = 16 (keep module bases 8-aligned)


def _ssp(x):
    """Shifted softplus activation (PhysNet's activation)."""
    return jnp.maximum(x, 0.0) + jnp.log(1.0 + jnp.exp(-jnp.abs(x))) - LN2


# ------------------------------ parameters ----------------------------------
def init_params(key):
    M = N_MODULES
    keys = iter(jax.random.split(key, 16))

    def dense(k, fan_in, shape):
        return (jax.random.normal(k, shape, jnp.float32) / jnp.sqrt(fan_in)).astype(jnp.float32)

    p = {}
    emb = 0.5 * jax.random.normal(next(keys), (MAX_Z, F), jnp.float32)
    p["emb"] = emb.at[0].set(0.0)                       # padding_idx=0
    p["w_filt"] = dense(next(keys), R, (M, R, F))       # RBF -> feature filter
    p["w_i"] = dense(next(keys), F, (M, F, F))
    p["b_i"] = jnp.zeros((M, 1, F), jnp.float32)
    p["w_j"] = dense(next(keys), F, (M, F, F))
    p["b_j"] = jnp.zeros((M, 1, F), jnp.float32)
    p["wr1"] = dense(next(keys), F, (M, NI, F, F))
    p["br1"] = jnp.zeros((M, NI, 1, F), jnp.float32)
    p["wr2"] = dense(next(keys), F, (M, NI, F, F))
    p["br2"] = jnp.zeros((M, NI, 1, F), jnp.float32)
    p["w_out"] = dense(next(keys), F, (M, F, F))
    p["b_out"] = jnp.zeros((M, 1, F), jnp.float32)
    p["u"] = jnp.ones((M, 1, F), jnp.float32)           # learnable gate
    p["wa1"] = dense(next(keys), F, (M, NA, F, F))
    p["ba1"] = jnp.zeros((M, NA, 1, F), jnp.float32)
    p["wa2"] = dense(next(keys), F, (M, NA, F, F))
    p["ba2"] = jnp.zeros((M, NA, 1, F), jnp.float32)
    p["wo1"] = dense(next(keys), F, (M, NO, F, F))
    p["bo1"] = jnp.zeros((M, NO, 1, F), jnp.float32)
    p["wo2"] = dense(next(keys), F, (M, NO, F, F))
    p["bo2"] = jnp.zeros((M, NO, 1, F), jnp.float32)
    p["mu"] = jnp.linspace(0.0, CUTOFF, R, dtype=jnp.float32).reshape(1, R)
    p["gamma"] = jnp.full((1, R), GAMMA, jnp.float32)
    return p


def _pack_params(params):
    """Concatenate all per-module weights/biases into two lane-dense slabs."""
    w_rows, b_rows = [], []
    for m in range(N_MODULES):
        w_rows.append(params["w_filt"][m])
        w_rows.append(params["w_i"][m])
        w_rows.append(params["w_j"][m])
        w_rows += [params["wr1"][m, k] for k in range(NI)]
        w_rows += [params["wr2"][m, k] for k in range(NI)]
        w_rows.append(params["w_out"][m])
        w_rows += [params["wa1"][m, k] for k in range(NA)]
        w_rows += [params["wa2"][m, k] for k in range(NA)]
        w_rows += [params["wo1"][m, k] for k in range(NO)]
        w_rows += [params["wo2"][m, k] for k in range(NO)]

        b = [params["b_i"][m], params["b_j"][m]]
        b += [params["br1"][m, k] for k in range(NI)]
        b += [params["br2"][m, k] for k in range(NI)]
        b += [params["b_out"][m], params["u"][m]]
        b += [params["ba1"][m, k] for k in range(NA)]
        b += [params["ba2"][m, k] for k in range(NA)]
        b += [params["bo1"][m, k] for k in range(NO)]
        b += [params["bo2"][m, k] for k in range(NO)]
        b.append(jnp.zeros((KB_PER_MODULE - KB_USED, F), jnp.float32))  # pad
        b_rows += b

    wslab = jnp.concatenate(w_rows, axis=0)          # (M*KW_PER_MODULE, F)
    bslab = jnp.concatenate(b_rows, axis=0)          # (M*KB_PER_MODULE, F)
    mg = jnp.concatenate([params["mu"], params["gamma"]], axis=0)  # (2, R)
    return wslab, bslab, mg


# ------------------------------ Pallas kernel --------------------------------
def physnet_kernel(r_ij_ref, idx_i_ref, idx_j_ref, mg_ref, x0_ref,
                   wslab_ref, bslab_ref, out_ref):
    N = x0_ref.shape[0]
    P = r_ij_ref.shape[0]

    # ---- pair features g_ij = RBF(d) * cosine_cutoff(d) ----
    r = r_ij_ref[...]                                            # (P, 3)
    d = jnp.sqrt(jnp.sum(r * r, axis=1, keepdims=True))          # (P, 1)
    mu = mg_ref[0:1, :]                                          # (1, R)
    gamma = mg_ref[1:2, :]                                       # (1, R)
    phi = jnp.exp(-gamma * (d - mu) ** 2)                        # (P, R)
    fc = jnp.where(d < CUTOFF, 0.5 * (jnp.cos(jnp.pi * d / CUTOFF) + 1.0), 0.0)
    g = phi * fc                                                 # (P, R)

    # ---- gather / scatter expressed as one-hot matmuls (run on MXU) ----
    # scatter matrix:  ohi[n, p] = 1  iff  idx_i[p] == n   (N, P)
    row_n = jax.lax.broadcasted_iota(jnp.int32, (N, P), 0)
    ohi = (row_n == idx_i_ref[...]).astype(jnp.float32)
    # gather matrix:   ohj[p, n] = 1  iff  idx_j[p] == n   (P, N)
    col_n = jax.lax.broadcasted_iota(jnp.int32, (P, N), 1)
    ohj = (col_n == idx_j_ref[...]).astype(jnp.float32)

    x = x0_ref[...]                                              # (N, F)

    def mm(a, b):
        return jnp.dot(a, b, preferred_element_type=jnp.float32)

    for m in range(N_MODULES):                       # straight-line, no grid
        wb = m * KW_PER_MODULE
        bb = m * KB_PER_MODULE

        def W(off, rows=F, _wb=wb):
            return wslab_ref[_wb + off: _wb + off + rows, :]

        def B(row, _bb=bb):
            return bslab_ref[_bb + row: _bb + row + 1, :]

        # ---- interaction block (RBF-gated message passing) ----
        xt = _ssp(x)
        gf = mm(g, W(OFF_FILT, R))                               # (P, F)
        xi = _ssp(mm(xt, W(OFF_WI)) + B(ROW_BI))                 # (N, F)
        xjh = _ssp(mm(xt, W(OFF_WJ)) + B(ROW_BJ))                # (N, F)
        xj = mm(ohj, xjh)                                        # gather  (P, F)
        agg = mm(ohi, gf * xj)                                   # scatter (N, F)
        mfeat = xi + agg
        for k in range(NI):
            h = _ssp(mfeat)
            h = _ssp(mm(h, W(OFF_WR1 + k * F)) + B(ROW_BR1 + k))
            h = mm(h, W(OFF_WR2 + k * F)) + B(ROW_BR2 + k)
            mfeat = mfeat + h
        mfeat = _ssp(mfeat)
        x = B(ROW_U) * x + mm(mfeat, W(OFF_WOUT)) + B(ROW_BOUT)

        # ---- atomic residual blocks ----
        for k in range(NA):
            h = _ssp(x)
            h = _ssp(mm(h, W(OFF_WA1 + k * F)) + B(ROW_BA1 + k))
            h = mm(h, W(OFF_WA2 + k * F)) + B(ROW_BA2 + k)
            x = x + h

        # ---- output residual blocks ----
        xo = x
        for k in range(NO):
            h = _ssp(xo)
            h = _ssp(mm(h, W(OFF_WO1 + k * F)) + B(ROW_BO1 + k))
            h = mm(h, W(OFF_WO2 + k * F)) + B(ROW_BO2 + k)
            xo = xo + h

        out_ref[m] = _ssp(xo)                                    # stack(summation)[m]


# ------------------------------ wrapper --------------------------------------
def physnet_pallas(params, atomic_numbers, r_ij, idx_i, idx_j):
    N = atomic_numbers.shape[0]
    P = r_ij.shape[0]
    M = N_MODULES

    # glue: embedding lookup (nn.Embedding with padding_idx=0)
    x0 = params["emb"][atomic_numbers]                           # (N, F)
    idx_i_row = idx_i.astype(jnp.int32).reshape(1, P)            # lane-dense
    idx_j_col = idx_j.astype(jnp.int32).reshape(P, 1)            # column for (P,N) one-hot
    wslab, bslab, mg = _pack_params(params)

    def full(shape):
        return pl.BlockSpec(shape, lambda i, _n=len(shape): (0,) * _n)

    in_specs = [
        full((P, 3)),                        # r_ij
        full((1, P)),                        # idx_i
        full((P, 1)),                        # idx_j
        full((2, R)),                        # rbf centers / widths
        full((N, F)),                        # x0 (embedded atoms)
        full((M * KW_PER_MODULE, F)),        # packed weight slab
        full((M * KB_PER_MODULE, F)),        # packed bias slab
    ]

    out = pl.pallas_call(
        physnet_kernel,
        out_shape=jax.ShapeDtypeStruct((M, N, F), jnp.float32),
        grid=(1,),
        in_specs=in_specs,
        out_specs=pl.BlockSpec((M, N, F), lambda i: (0, 0, 0)),
        compiler_params=pltpu.CompilerParams(dimension_semantics=("arbitrary",)),
    )(r_ij, idx_i_row, idx_j_col, mg, x0, wslab, bslab)
    return {"scalar_representation": out}


# ------------------------------ pure-JAX reference ---------------------------
def physnet_reference(params, atomic_numbers, r_ij, idx_i, idx_j):
    N = atomic_numbers.shape[0]
    d = jnp.sqrt(jnp.sum(r_ij * r_ij, axis=1, keepdims=True))
    phi = jnp.exp(-params["gamma"] * (d - params["mu"]) ** 2)
    fc = jnp.where(d < CUTOFF, 0.5 * (jnp.cos(jnp.pi * d / CUTOFF) + 1.0), 0.0)
    g = phi * fc
    x = params["emb"][atomic_numbers]
    outs = []
    for mi in range(N_MODULES):
        xt = _ssp(x)
        gf = g @ params["w_filt"][mi]
        xi = _ssp(xt @ params["w_i"][mi] + params["b_i"][mi])
        xjh = _ssp(xt @ params["w_j"][mi] + params["b_j"][mi])
        msg = gf * xjh[idx_j]
        agg = jnp.zeros((N, F), jnp.float32).at[idx_i].add(msg)
        mfeat = xi + agg
        for k in range(NI):
            h = _ssp(mfeat)
            h = _ssp(h @ params["wr1"][mi, k] + params["br1"][mi, k])
            h = h @ params["wr2"][mi, k] + params["br2"][mi, k]
            mfeat = mfeat + h
        mfeat = _ssp(mfeat)
        x = params["u"][mi] * x + mfeat @ params["w_out"][mi] + params["b_out"][mi]
        for k in range(NA):
            h = _ssp(x)
            h = _ssp(h @ params["wa1"][mi, k] + params["ba1"][mi, k])
            h = h @ params["wa2"][mi, k] + params["ba2"][mi, k]
            x = x + h
        xo = x
        for k in range(NO):
            h = _ssp(xo)
            h = _ssp(h @ params["wo1"][mi, k] + params["bo1"][mi, k])
            h = h @ params["wo2"][mi, k] + params["bo2"][mi, k]
            xo = xo + h
        outs.append(_ssp(xo))
    return jnp.stack(outs)


# ------------------------------ main ------------------------------------------
if __name__ == "__main__":
    key = jax.random.PRNGKey(0)
    kp, kz, kr = jax.random.split(key, 3)
    params = init_params(kp)

    n_atoms = 8
    atomic_numbers = jax.random.randint(kz, (n_atoms,), 1, 10)
    positions = 1.5 * jax.random.normal(kr, (n_atoms, 3), jnp.float32)

    ii, jj = jnp.meshgrid(jnp.arange(n_atoms), jnp.arange(n_atoms), indexing="ij")
    mask = ii.ravel() != jj.ravel()
    idx_i = ii.ravel()[mask]                       # (56,)
    idx_j = jj.ravel()[mask]                       # (56,)
    r_ij = positions[idx_j] - positions[idx_i]     # (56, 3)

    out = physnet_pallas(params, atomic_numbers, r_ij, idx_i, idx_j)["scalar_representation"]
    out = jax.block_until_ready(out)

    ref = physnet_reference(params, atomic_numbers, r_ij, idx_i, idx_j)
    assert out.shape == (N_MODULES, n_atoms, N_ATOM_BASIS), out.shape
    max_err = float(jnp.max(jnp.abs(out - ref)))
    assert jnp.allclose(out, ref, atol=1e-4, rtol=1e-4), max_err

    print("KERNEL_OK")
</pallas_src>

<mosaic_0001>
module attributes {stable_mosaic.version = 11 : i64} {
  func.func @physnet_kernel(%arg0: i32, %arg1: memref<56x3xf32, #tpu.memory_space<vmem>>, %arg2: memref<1x56xi32, #tpu.memory_space<vmem>>, %arg3: memref<56x1xi32, #tpu.memory_space<vmem>>, %arg4: memref<2x16xf32, #tpu.memory_space<vmem>>, %arg5: memref<8x32xf32, #tpu.memory_space<vmem>>, %arg6: memref<736x32xf32, #tpu.memory_space<vmem>>, %arg7: memref<32x32xf32, #tpu.memory_space<vmem>>, %arg8: memref<2x8x32xf32, #tpu.memory_space<vmem>>) attributes {dimension_semantics = [#tpu.dimension_semantics<arbitrary>], iteration_bounds = array<i64: 1>, scalar_prefetch = 0 : i64, scratch_operands = 0 : i64, tpu.core_type = #tpu.core_type<tc>, window_params = [{pipeline_mode = #tpu.pipeline_mode<synchronous>, transform_indices = @transform_0, window_bounds = array<i64: 56, 3>}, {pipeline_mode = #tpu.pipeline_mode<synchronous>, transform_indices = @transform_1, window_bounds = array<i64: 1, 56>}, {pipeline_mode = #tpu.pipeline_mode<synchronous>, transform_indices = @transform_2, window_bounds = array<i64: 56, 1>}, {pipeline_mode = #tpu.pipeline_mode<synchronous>, transform_indices = @transform_3, window_bounds = array<i64: 2, 16>}, {pipeline_mode = #tpu.pipeline_mode<synchronous>, transform_indices = @transform_4, window_bounds = array<i64: 8, 32>}, {pipeline_mode = #tpu.pipeline_mode<synchronous>, transform_indices = @transform_5, window_bounds = array<i64: 736, 32>}, {pipeline_mode = #tpu.pipeline_mode<synchronous>, transform_indices = @transform_6, window_bounds = array<i64: 32, 32>}, {pipeline_mode = #tpu.pipeline_mode<synchronous>, transform_indices = @transform_7, window_bounds = array<i64: 2, 8, 32>}]} {
    %c0 = arith.constant 0 : index
    %c0_0 = arith.constant 0 : index
    %0 = vector.load %arg1[%c0, %c0_0] : memref<56x3xf32, #tpu.memory_space<vmem>>, vector<56x3xf32>
    %1 = arith.mulf %0, %0 : vector<56x3xf32>
    %cst = arith.constant dense<0.000000e+00> : vector<56xf32>
    %2 = vector.multi_reduction <add>, %1, %cst [1] : vector<56x3xf32> to vector<56xf32>
    %3 = vector.shape_cast %2 : vector<56xf32> to vector<56x1xf32>
    %4 = math.sqrt %3 : vector<56x1xf32>
    %c0_1 = arith.constant 0 : index
    %c0_2 = arith.constant 0 : index
    %5 = vector.load %arg4[%c0_1, %c0_2] : memref<2x16xf32, #tpu.memory_space<vmem>>, vector<1x16xf32>
    %c1 = arith.constant 1 : index
    %c0_3 = arith.constant 0 : index
    %6 = vector.load %arg4[%c1, %c0_3] : memref<2x16xf32, #tpu.memory_space<vmem>>, vector<1x16xf32>
    %cst_4 = arith.constant 0.000000e+00 : f32
    %7 = vector.broadcast %cst_4 : f32 to vector<1x16xf32>
    %8 = arith.subf %7, %6 : vector<1x16xf32>
    %9 = vector.broadcast %4 : vector<56x1xf32> to vector<56x16xf32>
    %10 = vector.broadcast %5 : vector<1x16xf32> to vector<56x16xf32>
    %11 = arith.subf %9, %10 : vector<56x16xf32>
    %12 = arith.mulf %11, %11 : vector<56x16xf32>
    %13 = vector.broadcast %8 : vector<1x16xf32> to vector<56x16xf32>
    %14 = arith.mulf %13, %12 : vector<56x16xf32>
    %15 = math.exp %14 : vector<56x16xf32>
    %cst_5 = arith.constant 5.000000e+00 : f32
    %16 = vector.broadcast %cst_5 : f32 to vector<56x1xf32>
    %17 = arith.cmpf olt, %4, %16 : vector<56x1xf32>
    %cst_6 = arith.constant 3.14159274 : f32
    %18 = vector.broadcast %cst_6 : f32 to vector<56x1xf32>
    %19 = arith.mulf %18, %4 : vector<56x1xf32>
    %cst_7 = arith.constant 5.000000e+00 : f32
    %20 = vector.broadcast %cst_7 : f32 to vector<56x1xf32>
    %21 = arith.divf %19, %20 : vector<56x1xf32>
    %22 = math.cos %21 : vector<56x1xf32>
    %cst_8 = arith.constant 1.000000e+00 : f32
    %23 = vector.broadcast %cst_8 : f32 to vector<56x1xf32>
    %24 = arith.addf %22, %23 : vector<56x1xf32>
    %cst_9 = arith.constant 5.000000e-01 : f32
    %25 = vector.broadcast %cst_9 : f32 to vector<56x1xf32>
    %26 = arith.mulf %25, %24 : vector<56x1xf32>
    %cst_10 = arith.constant 0.000000e+00 : f32
    %27 = vector.broadcast %cst_10 : f32 to vector<56x1xf32>
    %28 = arith.select %17, %26, %27 : vector<56x1xi1>, vector<56x1xf32>
    %29 = vector.broadcast %28 : vector<56x1xf32> to vector<56x16xf32>
    %30 = arith.mulf %15, %29 : vector<56x16xf32>
    %31 = tpu.iota {dimensions = array<i32: 0>} : vector<8x56xi32>
    %c0_11 = arith.constant 0 : index
    %c0_12 = arith.constant 0 : index
    %32 = vector.load %arg2[%c0_11, %c0_12] : memref<1x56xi32, #tpu.memory_space<vmem>>, vector<1x56xi32>
    %33 = vector.broadcast %32 : vector<1x56xi32> to vector<8x56xi32>
    %34 = arith.cmpi eq, %31, %33 : vector<8x56xi32>
    %35 = arith.extui %34 : vector<8x56xi1> to vector<8x56xi32>
    %36 = arith.sitofp %35 : vector<8x56xi32> to vector<8x56xf32>
    %37 = tpu.iota {dimensions = array<i32: 1>} : vector<56x8xi32>
    %c0_13 = arith.constant 0 : index
    %c0_14 = arith.constant 0 : index
    %38 = vector.load %arg3[%c0_13, %c0_14] : memref<56x1xi32, #tpu.memory_space<vmem>>, vector<56x1xi32>
    %39 = vector.broadcast %38 : vector<56x1xi32> to vector<56x8xi32>
    %40 = arith.cmpi eq, %37, %39 : vector<56x8xi32>
    %41 = arith.extui %40 : vector<56x8xi1> to vector<56x8xi32>
    %42 = arith.sitofp %41 : vector<56x8xi32> to vector<56x8xf32>
    %c0_15 = arith.constant 0 : index
    %c0_16 = arith.constant 0 : index
    %43 = vector.load %arg5[%c0_15, %c0_16] : memref<8x32xf32, #tpu.memory_space<vmem>>, vector<8x32xf32>
    %cst_17 = arith.constant 0.000000e+00 : f32
    %44 = vector.broadcast %cst_17 : f32 to vector<8x32xf32>
    %45 = arith.maximumf %43, %44 : vector<8x32xf32>
    %46 = math.absf %43 : vector<8x32xf32>
    %cst_18 = arith.constant 0.000000e+00 : f32
    %47 = vector.broadcast %cst_18 : f32 to vector<8x32xf32>
    %48 = arith.subf %47, %46 : vector<8x32xf32>
    %49 = math.exp %48 : vector<8x32xf32>
    %cst_19 = arith.constant 1.000000e+00 : f32
    %50 = vector.broadcast %cst_19 : f32 to vector<8x32xf32>
    %51 = arith.addf %50, %49 : vector<8x32xf32>
    %52 = math.log %51 : vector<8x32xf32>
    %53 = arith.addf %45, %52 : vector<8x32xf32>
    %cst_20 = arith.constant 0.693147182 : f32
    %54 = vector.broadcast %cst_20 : f32 to vector<8x32xf32>
    %55 = arith.subf %53, %54 : vector<8x32xf32>
    %c0_21 = arith.constant 0 : index
    %c0_22 = arith.constant 0 : index
    %56 = vector.load %arg6[%c0_21, %c0_22] : memref<736x32xf32, #tpu.memory_space<vmem>>, vector<16x32xf32>
    %cst_23 = arith.constant dense<0.000000e+00> : vector<56x32xf32>
    %57 = tpu.matmul %30, %56, %cst_23 {dimension_numbers = #tpu.dot_dimension_numbers<[1], [0], [0], [1], [0, 0, 1, 1], [], []>} : vector<56x16xf32>, vector<16x32xf32>, vector<56x32xf32> -> vector<56x32xf32>
    %c16 = arith.constant 16 : index
    %c0_24 = arith.constant 0 : index
    %58 = vector.load %arg6[%c16, %c0_24] : memref<736x32xf32, #tpu.memory_space<vmem>>, vector<32x32xf32>
    %cst_25 = arith.constant dense<0.000000e+00> : vector<8x32xf32>
    %59 = tpu.matmul %55, %58, %cst_25 {dimension_numbers = #tpu.dot_dimension_numbers<[1], [0], [0], [1], [0, 0, 1, 1], [], []>} : vector<8x32xf32>, vector<32x32xf32>, vector<8x32xf32> -> vector<8x32xf32>
    %c0_26 = arith.constant 0 : index
    %c0_27 = arith.constant 0 : index
    %60 = vector.load %arg7[%c0_26, %c0_27] : memref<32x32xf32, #tpu.memory_space<vmem>>, vector<1x32xf32>
    %61 = vector.broadcast %60 : vector<1x32xf32> to vector<8x32xf32>
    %62 = arith.addf %59, %61 : vector<8x32xf32>
    %cst_28 = arith.constant 0.000000e+00 : f32
    %63 = vector.broadcast %cst_28 : f32 to vector<8x32xf32>
    %64 = arith.maximumf %62, %63 : vector<8x32xf32>
    %65 = math.absf %62 : vector<8x32xf32>
    %cst_29 = arith.constant 0.000000e+00 : f32
    %66 = vector.broadcast %cst_29 : f32 to vector<8x32xf32>
    %67 = arith.subf %66, %65 : vector<8x32xf32>
    %68 = math.exp %67 : vector<8x32xf32>
    %cst_30 = arith.constant 1.000000e+00 : f32
    %69 = vector.broadcast %cst_30 : f32 to vector<8x32xf32>
    %70 = arith.addf %69, %68 : vector<8x32xf32>
    %71 = math.log %70 : vector<8x32xf32>
    %72 = arith.addf %64, %71 : vector<8x32xf32>
    %cst_31 = arith.constant 0.693147182 : f32
    %73 = vector.broadcast %cst_31 : f32 to vector<8x32xf32>
    %74 = arith.subf %72, %73 : vector<8x32xf32>
    %c48 = arith.constant 48 : index
    %c0_32 = arith.constant 0 : index
    %75 = vector.load %arg6[%c48, %c0_32] : memref<736x32xf32, #tpu.memory_space<vmem>>, vector<32x32xf32>
    %cst_33 = arith.constant dense<0.000000e+00> : vector<8x32xf32>
    %76 = tpu.matmul %55, %75, %cst_33 {dimension_numbers = #tpu.dot_dimension_numbers<[1], [0], [0], [1], [0, 0, 1, 1], [], []>} : vector<8x32xf32>, vector<32x32xf32>, vector<8x32xf32> -> vector<8x32xf32>
    %c1_34 = arith.constant 1 : index
    %c0_35 = arith.constant 0 : index
    %77 = vector.load %arg7[%c1_34, %c0_35] : memref<32x32xf32, #tpu.memory_space<vmem>>, vector<1x32xf32>
    %78 = vector.broadcast %77 : vector<1x32xf32> to vector<8x32xf32>
    %79 = arith.addf %76, %78 : vector<8x32xf32>
    %cst_36 = arith.constant 0.000000e+00 : f32
    %80 = vector.broadcast %cst_36 : f32 to vector<8x32xf32>
    %81 = arith.maximumf %79, %80 : vector<8x32xf32>
    %82 = math.absf %79 : vector<8x32xf32>
    %cst_37 = arith.constant 0.000000e+00 : f32
    %83 = vector.broadcast %cst_37 : f32 to vector<8x32xf32>
    %84 = arith.subf %83, %82 : vector<8x32xf32>
    %85 = math.exp %84 : vector<8x32xf32>
    %cst_38 = arith.constant 1.000000e+00 : f32
    %86 = vector.broadcast %cst_38 : f32 to vector<8x32xf32>
    %87 = arith.addf %86, %85 : vector<8x32xf32>
    %88 = math.log %87 : vector<8x32xf32>
    %89 = arith.addf %81, %88 : vector<8x32xf32>
    %cst_39 = arith.constant 0.693147182 : f32
    %90 = vector.broadcast %cst_39 : f32 to vector<8x32xf32>
    %91 = arith.subf %89, %90 : vector<8x32xf32>
    %cst_40 = arith.constant dense<0.000000e+00> : vector<56x32xf32>
    %92 = tpu.matmul %42, %91, %cst_40 {dimension_numbers = #tpu.dot_dimension_numbers<[1], [0], [0], [1], [0, 0, 1, 1], [], []>} : vector<56x8xf32>, vector<8x32xf32>, vector<56x32xf32> -> vector<56x32xf32>
    %93 = arith.mulf %57, %92 : vector<56x32xf32>
    %cst_41 = arith.constant dense<0.000000e+00> : vector<8x32xf32>
    %94 = tpu.matmul %36, %93, %cst_41 {dimension_numbers = #tpu.dot_dimension_numbers<[1], [0], [0], [1], [0, 0, 1, 1], [], []>} : vector<8x56xf32>, vector<56x32xf32>, vector<8x32xf32> -> vector<8x32xf32>
    %95 = arith.addf %74, %94 : vector<8x32xf32>
    %cst_42 = arith.constant 0.000000e+00 : f32
    %96 = vector.broadcast %cst_42 : f32 to vector<8x32xf32>
    %97 = arith.maximumf %95, %96 : vector<8x32xf32>
    %98 = math.absf %95 : vector<8x32xf32>
    %cst_43 = arith.constant 0.000000e+00 : f32
    %99 = vector.broadcast %cst_43 : f32 to vector<8x32xf32>
    %100 = arith.subf %99, %98 : vector<8x32xf32>
    %101 = math.exp %100 : vector<8x32xf32>
    %cst_44 = arith.constant 1.000000e+00 : f32
    %102 = vector.broadcast %cst_44 : f32 to vector<8x32xf32>
    %103 = arith.addf %102, %101 : vector<8x32xf32>
    %104 = math.log %103 : vector<8x32xf32>
    %105 = arith.addf %97, %104 : vector<8x32xf32>
    %cst_45 = arith.constant 0.693147182 : f32
    %106 = vector.broadcast %cst_45 : f32 to vector<8x32xf32>
    %107 = arith.subf %105, %106 : vector<8x32xf32>
    %c80 = arith.constant 80 : index
    %c0_46 = arith.constant 0 : index
    %108 = vector.load %arg6[%c80, %c0_46] : memref<736x32xf32, #tpu.memory_space<vmem>>, vector<32x32xf32>
    %cst_47 = arith.constant dense<0.000000e+00> : vector<8x32xf32>
    %109 = tpu.matmul %107, %108, %cst_47 {dimension_numbers = #tpu.dot_dimension_numbers<[1], [0], [0], [1], [0, 0, 1, 1], [], []>} : vector<8x32xf32>, vector<32x32xf32>, vector<8x32xf32> -> vector<8x32xf32>
    %c2 = arith.constant 2 : index
    %c0_48 = arith.constant 0 : index
    %110 = vector.load %arg7[%c2, %c0_48] : memref<32x32xf32, #tpu.memory_space<vmem>>, vector<1x32xf32>
    %111 = vector.broadcast %110 : vector<1x32xf32> to vector<8x32xf32>
    %112 = arith.addf %109, %111 : vector<8x32xf32>
    %cst_49 = arith.constant 0.000000e+00 : f32
    %113 = vector.broadcast %cst_49 : f32 to vector<8x32xf32>
    %114 = arith.maximumf %112, %113 : vector<8x32xf32>
    %115 = math.absf %112 : vector<8x32xf32>
    %cst_50 = arith.constant 0.000000e+00 : f32
    %116 = vector.broadcast %cst_50 : f32 to vector<8x32xf32>
    %117 = arith.subf %116, %115 : vector<8x32xf32>
    %118 = math.exp %117 : vector<8x32xf32>
    %cst_51 = arith.constant 1.000000e+00 : f32
    %119 = vector.broadcast %cst_51 : f32 to vector<8x32xf32>
    %120 = arith.addf %119, %118 : vector<8x32xf32>
    %121 = math.log %120 : vector<8x32xf32>
    %122 = arith.addf %114, %121 : vector<8x32xf32>
    %cst_52 = arith.constant 0.693147182 : f32
    %123 = vector.broadcast %cst_52 : f32 to vector<8x32xf32>
    %124 = arith.subf %122, %123 : vector<8x32xf32>
    %c144 = arith.constant 144 : index
    %c0_53 = arith.constant 0 : index
    %125 = vector.load %arg6[%c144, %c0_53] : memref<736x32xf32, #tpu.memory_space<vmem>>, vector<32x32xf32>
    %cst_54 = arith.constant dense<0.000000e+00> : vector<8x32xf32>
    %126 = tpu.matmul %124, %125, %cst_54 {dimension_numbers = #tpu.dot_dimension_numbers<[1], [0], [0], [1], [0, 0, 1, 1], [], []>} : vector<8x32xf32>, vector<32x32xf32>, vector<8x32xf32> -> vector<8x32xf32>
    %c4 = arith.constant 4 : index
    %c0_55 = arith.constant 0 : index
    %127 = vector.load %arg7[%c4, %c0_55] : memref<32x32xf32, #tpu.memory_space<vmem>>, vector<1x32xf32>
    %128 = vector.broadcast %127 : vector<1x32xf32> to vector<8x32xf32>
    %129 = arith.addf %126, %128 : vector<8x32xf32>
    %130 = arith.addf %95, %129 : vector<8x32xf32>
    %cst_56 = arith.constant 0.000000e+00 : f32
    %131 = vector.broadcast %cst_56 : f32 to vector<8x32xf32>
    %132 = arith.maximumf %130, %131 : vector<8x32xf32>
    %133 = math.absf %130 : vector<8x32xf32>
    %cst_57 = arith.constant 0.000000e+00 : f32
    %134 = vector.broadcast %cst_57 : f32 to vector<8x32xf32>
    %135 = arith.subf %134, %133 : vector<8x32xf32>
    %136 = math.exp %135 : vector<8x32xf32>
    %cst_58 = arith.constant 1.000000e+00 : f32
    %137 = vector.broadcast %cst_58 : f32 to vector<8x32xf32>
    %138 = arith.addf %137, %136 : vector<8x32xf32>
    %139 = math.log %138 : vector<8x32xf32>
    %140 = arith.addf %132, %139 : vector<8x32xf32>
    %cst_59 = arith.constant 0.693147182 : f32
    %141 = vector.broadcast %cst_59 : f32 to vector<8x32xf32>
    %142 = arith.subf %140, %141 : vector<8x32xf32>
    %c112 = arith.constant 112 : index
    %c0_60 = arith.constant 0 : index
    %143 = vector.load %arg6[%c112, %c0_60] : memref<736x32xf32, #tpu.memory_space<vmem>>, vector<32x32xf32>
    %cst_61 = arith.constant dense<0.000000e+00> : vector<8x32xf32>
    %144 = tpu.matmul %142, %143, %cst_61 {dimension_numbers = #tpu.dot_dimension_numbers<[1], [0], [0], [1], [0, 0, 1, 1], [], []>} : vector<8x32xf32>, vector<32x32xf32>, vector<8x32xf32> -> vector<8x32xf32>
    %c3 = arith.constant 3 : index
    %c0_62 = arith.constant 0 : index
    %145 = vector.load %arg7[%c3, %c0_62] : memref<32x32xf32, #tpu.memory_space<vmem>>, vector<1x32xf32>
    %146 = vector.broadcast %145 : vector<1x32xf32> to vector<8x32xf32>
    %147 = arith.addf %144, %146 : vector<8x32xf32>
    %cst_63 = arith.constant 0.000000e+00 : f32
    %148 = vector.broadcast %cst_63 : f32 to vector<8x32xf32>
    %149 = arith.maximumf %147, %148 : vector<8x32xf32>
    %150 = math.absf %147 : vector<8x32xf32>
    %cst_64 = arith.constant 0.000000e+00 : f32
    %151 = vector.broadcast %cst_64 : f32 to vector<8x32xf32>
    %152 = arith.subf %151, %150 : vector<8x32xf32>
    %153 = math.exp %152 : vector<8x32xf32>
    %cst_65 = arith.constant 1.000000e+00 : f32
    %154 = vector.broadcast %cst_65 : f32 to vector<8x32xf32>
    %155 = arith.addf %154, %153 : vector<8x32xf32>
    %156 = math.log %155 : vector<8x32xf32>
    %157 = arith.addf %149, %156 : vector<8x32xf32>
    %cst_66 = arith.constant 0.693147182 : f32
    %158 = vector.broadcast %cst_66 : f32 to vector<8x32xf32>
    %159 = arith.subf %157, %158 : vector<8x32xf32>
    %c176 = arith.constant 176 : index
    %c0_67 = arith.constant 0 : index
    %160 = vector.load %arg6[%c176, %c0_67] : memref<736x32xf32, #tpu.memory_space<vmem>>, vector<32x32xf32>
    %cst_68 = arith.constant dense<0.000000e+00> : vector<8x32xf32>
    %161 = tpu.matmul %159, %160, %cst_68 {dimension_numbers = #tpu.dot_dimension_numbers<[1], [0], [0], [1], [0, 0, 1, 1], [], []>} : vector<8x32xf32>, vector<32x32xf32>, vector<8x32xf32> -> vector<8x32xf32>
    %c5 = arith.constant 5 : index
    %c0_69 = arith.constant 0 : index
    %162 = vector.load %arg7[%c5, %c0_69] : memref<32x32xf32, #tpu.memory_space<vmem>>, vector<1x32xf32>
    %163 = vector.broadcast %162 : vector<1x32xf32> to vector<8x32xf32>
    %164 = arith.addf %161, %163 : vector<8x32xf32>
    %165 = arith.addf %130, %164 : vector<8x32xf32>
    %cst_70 = arith.constant 0.000000e+00 : f32
    %166 = vector.broadcast %cst_70 : f32 to vector<8x32xf32>
    %167 = arith.maximumf %165, %166 : vector<8x32xf32>
    %168 = math.absf %165 : vector<8x32xf32>
    %cst_71 = arith.constant 0.000000e+00 : f32
    %169 = vector.broadcast %cst_71 : f32 to vector<8x32xf32>
    %170 = arith.subf %169, %168 : vector<8x32xf32>
    %171 = math.exp %170 : vector<8x32xf32>
    %cst_72 = arith.constant 1.000000e+00 : f32
    %172 = vector.broadcast %cst_72 : f32 to vector<8x32xf32>
    %173 = arith.addf %172, %171 : vector<8x32xf32>
    %174 = math.log %173 : vector<8x32xf32>
    %175 = arith.addf %167, %174 : vector<8x32xf32>
    %cst_73 = arith.constant 0.693147182 : f32
    %176 = vector.broadcast %cst_73 : f32 to vector<8x32xf32>
    %177 = arith.subf %175, %176 : vector<8x32xf32>
    %c7 = arith.constant 7 : index
    %c0_74 = arith.constant 0 : index
    %178 = vector.load %arg7[%c7, %c0_74] : memref<32x32xf32, #tpu.memory_space<vmem>>, vector<1x32xf32>
    %179 = vector.broadcast %178 : vector<1x32xf32> to vector<8x32xf32>
    %180 = arith.mulf %179, %43 : vector<8x32xf32>
    %c208 = arith.constant 208 : index
    %c0_75 = arith.constant 0 : index
    %181 = vector.load %arg6[%c208, %c0_75] : memref<736x32xf32, #tpu.memory_space<vmem>>, vector<32x32xf32>
    %cst_76 = arith.constant dense<0.000000e+00> : vector<8x32xf32>
    %182 = tpu.matmul %177, %181, %cst_76 {dimension_numbers = #tpu.dot_dimension_numbers<[1], [0], [0], [1], [0, 0, 1, 1], [], []>} : vector<8x32xf32>, vector<32x32xf32>, vector<8x32xf32> -> vector<8x32xf32>
    %183 = arith.addf %180, %182 : vector<8x32xf32>
    %c6 = arith.constant 6 : index
    %c0_77 = arith.constant 0 : index
    %184 = vector.load %arg7[%c6, %c0_77] : memref<32x32xf32, #tpu.memory_space<vmem>>, vector<1x32xf32>
    %185 = vector.broadcast %184 : vector<1x32xf32> to vector<8x32xf32>
    %186 = arith.addf %183, %185 : vector<8x32xf32>
    %cst_78 = arith.constant 0.000000e+00 : f32
    %187 = vector.broadcast %cst_78 : f32 to vector<8x32xf32>
    %188 = arith.maximumf %186, %187 : vector<8x32xf32>
    %189 = math.absf %186 : vector<8x32xf32>
    %cst_79 = arith.constant 0.000000e+00 : f32
    %190 = vector.broadcast %cst_79 : f32 to vector<8x32xf32>
    %191 = arith.subf %190, %189 : vector<8x32xf32>
    %192 = math.exp %191 : vector<8x32xf32>
    %cst_80 = arith.constant 1.000000e+00 : f32
    %193 = vector.broadcast %cst_80 : f32 to vector<8x32xf32>
    %194 = arith.addf %193, %192 : vector<8x32xf32>
    %195 = math.log %194 : vector<8x32xf32>
    %196 = arith.addf %188, %195 : vector<8x32xf32>
    %cst_81 = arith.constant 0.693147182 : f32
    %197 = vector.broadcast %cst_81 : f32 to vector<8x32xf32>
    %198 = arith.subf %196, %197 : vector<8x32xf32>
    %c240 = arith.constant 240 : index
    %c0_82 = arith.constant 0 : index
    %199 = vector.load %arg6[%c240, %c0_82] : memref<736x32xf32, #tpu.memory_space<vmem>>, vector<32x32xf32>
    %cst_83 = arith.constant dense<0.000000e+00> : vector<8x32xf32>
    %200 = tpu.matmul %198, %199, %cst_83 {dimension_numbers = #tpu.dot_dimension_numbers<[1], [0], [0], [1], [0, 0, 1, 1], [], []>} : vector<8x32xf32>, vector<32x32xf32>, vector<8x32xf32> -> vector<8x32xf32>
    %c8 = arith.constant 8 : index
    %c0_84 = arith.constant 0 : index
    %201 = vector.load %arg7[%c8, %c0_84] : memref<32x32xf32, #tpu.memory_space<vmem>>, vector<1x32xf32>
    %202 = vector.broadcast %201 : vector<1x32xf32> to vector<8x32xf32>
    %203 = arith.addf %200, %202 : vector<8x32xf32>
    %cst_85 = arith.constant 0.000000e+00 : f32
    %204 = vector.broadcast %cst_85 : f32 to vector<8x32xf32>
    %205 = arith.maximumf %203, %204 : vector<8x32xf32>
    %206 = math.absf %203 : vector<8x32xf32>
    %cst_86 = arith.constant 0.000000e+00 : f32
    %207 = vector.broadcast %cst_86 : f32 to vector<8x32xf32>
    %208 = arith.subf %207, %206 : vector<8x32xf32>
    %209 = math.exp %208 : vector<8x32xf32>
    %cst_87 = arith.constant 1.000000e+00 : f32
    %210 = vector.broadcast %cst_87 : f32 to vector<8x32xf32>
    %211 = arith.addf %210, %209 : vector<8x32xf32>
    %212 = math.log %211 : vector<8x32xf32>
    %213 = arith.addf %205, %212 : vector<8x32xf32>
    %cst_88 = arith.constant 0.693147182 : f32
    %214 = vector.broadcast %cst_88 : f32 to vector<8x32xf32>
    %215 = arith.subf %213, %214 : vector<8x32xf32>
    %c272 = arith.constant 272 : index
    %c0_89 = arith.constant 0 : index
    %216 = vector.load %arg6[%c272, %c0_89] : memref<736x32xf32, #tpu.memory_space<vmem>>, vector<32x32xf32>
    %cst_90 = arith.constant dense<0.000000e+00> : vector<8x32xf32>
    %217 = tpu.matmul %215, %216, %cst_90 {dimension_numbers = #tpu.dot_dimension_numbers<[1], [0], [0], [1], [0, 0, 1, 1], [], []>} : vector<8x32xf32>, vector<32x32xf32>, vector<8x32xf32> -> vector<8x32xf32>
    %c9 = arith.constant 9 : index
    %c0_91 = arith.constant 0 : index
    %218 = vector.load %arg7[%c9, %c0_91] : memref<32x32xf32, #tpu.memory_space<vmem>>, vector<1x32xf32>
    %219 = vector.broadcast %218 : vector<1x32xf32> to vector<8x32xf32>
    %220 = arith.addf %217, %219 : vector<8x32xf32>
    %221 = arith.addf %186, %220 : vector<8x32xf32>
    %cst_92 = arith.constant 0.000000e+00 : f32
    %222 = vector.broadcast %cst_92 : f32 to vector<8x32xf32>
    %223 = arith.maximumf %221, %222 : vector<8x32xf32>
    %224 = math.absf %221 : vector<8x32xf32>
    %cst_93 = arith.constant 0.000000e+00 : f32
    %225 = vector.broadcast %cst_93 : f32 to vector<8x32xf32>
    %226 = arith.subf %225, %224 : vector<8x32xf32>
    %227 = math.exp %226 : vector<8x32xf32>
    %cst_94 = arith.constant 1.000000e+00 : f32
    %228 = vector.broadcast %cst_94 : f32 to vector<8x32xf32>
    %229 = arith.addf %228, %227 : vector<8x32xf32>
    %230 = math.log %229 : vector<8x32xf32>
    %231 = arith.addf %223, %230 : vector<8x32xf32>
    %cst_95 = arith.constant 0.693147182 : f32
    %232 = vector.broadcast %cst_95 : f32 to vector<8x32xf32>
    %233 = arith.subf %231, %232 : vector<8x32xf32>
    %c304 = arith.constant 304 : index
    %c0_96 = arith.constant 0 : index
    %234 = vector.load %arg6[%c304, %c0_96] : memref<736x32xf32, #tpu.memory_space<vmem>>, vector<32x32xf32>
    %cst_97 = arith.constant dense<0.000000e+00> : vector<8x32xf32>
    %235 = tpu.matmul %233, %234, %cst_97 {dimension_numbers = #tpu.dot_dimension_numbers<[1], [0], [0], [1], [0, 0, 1, 1], [], []>} : vector<8x32xf32>, vector<32x32xf32>, vector<8x32xf32> -> vector<8x32xf32>
    %c10 = arith.constant 10 : index
    %c0_98 = arith.constant 0 : index
    %236 = vector.load %arg7[%c10, %c0_98] : memref<32x32xf32, #tpu.memory_space<vmem>>, vector<1x32xf32>
    %237 = vector.broadcast %236 : vector<1x32xf32> to vector<8x32xf32>
    %238 = arith.addf %235, %237 : vector<8x32xf32>
    %cst_99 = arith.constant 0.000000e+00 : f32
    %239 = vector.broadcast %cst_99 : f32 to vector<8x32xf32>
    %240 = arith.maximumf %238, %239 : vector<8x32xf32>
    %241 = math.absf %238 : vector<8x32xf32>
    %cst_100 = arith.constant 0.000000e+00 : f32
    %242 = vector.broadcast %cst_100 : f32 to vector<8x32xf32>
    %243 = arith.subf %242, %241 : vector<8x32xf32>
    %244 = math.exp %243 : vector<8x32xf32>
    %cst_101 = arith.constant 1.000000e+00 : f32
    %245 = vector.broadcast %cst_101 : f32 to vector<8x32xf32>
    %246 = arith.addf %245, %244 : vector<8x32xf32>
    %247 = math.log %246 : vector<8x32xf32>
    %248 = arith.addf %240, %247 : vector<8x32xf32>
    %cst_102 = arith.constant 0.693147182 : f32
    %249 = vector.broadcast %cst_102 : f32 to vector<8x32xf32>
    %250 = arith.subf %248, %249 : vector<8x32xf32>
    %c336 = arith.constant 336 : index
    %c0_103 = arith.constant 0 : index
    %251 = vector.load %arg6[%c336, %c0_103] : memref<736x32xf32, #tpu.memory_space<vmem>>, vector<32x32xf32>
    %cst_104 = arith.constant dense<0.000000e+00> : vector<8x32xf32>
    %252 = tpu.matmul %250, %251, %cst_104 {dimension_numbers = #tpu.dot_dimension_numbers<[1], [0], [0], [1], [0, 0, 1, 1], [], []>} : vector<8x32xf32>, vector<32x32xf32>, vector<8x32xf32> -> vector<8x32xf32>
    %c11 = arith.constant 11 : index
    %c0_105 = arith.constant 0 : index
    %253 = vector.load %arg7[%c11, %c0_105] : memref<32x32xf32, #tpu.memory_space<vmem>>, vector<1x32xf32>
    %254 = vector.broadcast %253 : vector<1x32xf32> to vector<8x32xf32>
    %255 = arith.addf %252, %254 : vector<8x32xf32>
    %256 = arith.addf %221, %255 : vector<8x32xf32>
    %cst_106 = arith.constant 0.000000e+00 : f32
    %257 = vector.broadcast %cst_106 : f32 to vector<8x32xf32>
    %258 = arith.maximumf %256, %257 : vector<8x32xf32>
    %259 = math.absf %256 : vector<8x32xf32>
    %cst_107 = arith.constant 0.000000e+00 : f32
    %260 = vector.broadcast %cst_107 : f32 to vector<8x32xf32>
    %261 = arith.subf %260, %259 : vector<8x32xf32>
    %262 = math.exp %261 : vector<8x32xf32>
    %cst_108 = arith.constant 1.000000e+00 : f32
    %263 = vector.broadcast %cst_108 : f32 to vector<8x32xf32>
    %264 = arith.addf %263, %262 : vector<8x32xf32>
    %265 = math.log %264 : vector<8x32xf32>
    %266 = arith.addf %258, %265 : vector<8x32xf32>
    %cst_109 = arith.constant 0.693147182 : f32
    %267 = vector.broadcast %cst_109 : f32 to vector<8x32xf32>
    %268 = arith.subf %266, %267 : vector<8x32xf32>
    %c0_110 = arith.constant 0 : index
    %c0_111 = arith.constant 0 : index
    %c0_112 = arith.constant 0 : index
    %269 = vector.load %arg8[%c0_110, %c0_111, %c0_112] : memref<2x8x32xf32, #tpu.memory_space<vmem>>, vector<1x8x32xf32>
    %270 = vector.shape_cast %269 : vector<1x8x32xf32> to vector<8x32xf32>
    %271 = vector.shape_cast %268 : vector<8x32xf32> to vector<1x8x32xf32>
    tpu.vector_store %arg8[%c0_110, %c0_111, %c0_112], %271 {strides = array<i32>} : memref<2x8x32xf32, #tpu.memory_space<vmem>>, vector<1x8x32xf32>,
    %cst_113 = arith.constant 0.000000e+00 : f32
    %272 = vector.broadcast %cst_113 : f32 to vector<8x32xf32>
    %273 = arith.maximumf %221, %272 : vector<8x32xf32>
    %274 = math.absf %221 : vector<8x32xf32>
    %cst_114 = arith.constant 0.000000e+00 : f32
    %275 = vector.broadcast %cst_114 : f32 to vector<8x32xf32>
    %276 = arith.subf %275, %274 : vector<8x32xf32>
    %277 = math.exp %276 : vector<8x32xf32>
    %cst_115 = arith.constant 1.000000e+00 : f32
    %278 = vector.broadcast %cst_115 : f32 to vector<8x32xf32>
    %279 = arith.addf %278, %277 : vector<8x32xf32>
    %280 = math.log %279 : vector<8x32xf32>
    %281 = arith.addf %273, %280 : vector<8x32xf32>
    %cst_116 = arith.constant 0.693147182 : f32
    %282 = vector.broadcast %cst_116 : f32 to vector<8x32xf32>
    %283 = arith.subf %281, %282 : vector<8x32xf32>
    %c368 = arith.constant 368 : index
    %c0_117 = arith.constant 0 : index
    %284 = vector.load %arg6[%c368, %c0_117] : memref<736x32xf32, #tpu.memory_space<vmem>>, vector<16x32xf32>
    %cst_118 = arith.constant dense<0.000000e+00> : vector<56x32xf32>
    %285 = tpu.matmul %30, %284, %cst_118 {dimension_numbers = #tpu.dot_dimension_numbers<[1], [0], [0], [1], [0, 0, 1, 1], [], []>} : vector<56x16xf32>, vector<16x32xf32>, vector<56x32xf32> -> vector<56x32xf32>
    %c384 = arith.constant 384 : index
    %c0_119 = arith.constant 0 : index
    %286 = vector.load %arg6[%c384, %c0_119] : memref<736x32xf32, #tpu.memory_space<vmem>>, vector<32x32xf32>
    %cst_120 = arith.constant dense<0.000000e+00> : vector<8x32xf32>
    %287 = tpu.matmul %283, %286, %cst_120 {dimension_numbers = #tpu.dot_dimension_numbers<[1], [0], [0], [1], [0, 0, 1, 1], [], []>} : vector<8x32xf32>, vector<32x32xf32>, vector<8x32xf32> -> vector<8x32xf32>
    %c16_121 = arith.constant 16 : index
    %c0_122 = arith.constant 0 : index
    %288 = vector.load %arg7[%c16_121, %c0_122] : memref<32x32xf32, #tpu.memory_space<vmem>>, vector<1x32xf32>
    %289 = vector.broadcast %288 : vector<1x32xf32> to vector<8x32xf32>
    %290 = arith.addf %287, %289 : vector<8x32xf32>
    %cst_123 = arith.constant 0.000000e+00 : f32
    %291 = vector.broadcast %cst_123 : f32 to vector<8x32xf32>
    %292 = arith.maximumf %290, %291 : vector<8x32xf32>
    %293 = math.absf %290 : vector<8x32xf32>
    %cst_124 = arith.constant 0.000000e+00 : f32
    %294 = vector.broadcast %cst_124 : f32 to vector<8x32xf32>
    %295 = arith.subf %294, %293 : vector<8x32xf32>
    %296 = math.exp %295 : vector<8x32xf32>
    %cst_125 = arith.constant 1.000000e+00 : f32
    %297 = vector.broadcast %cst_125 : f32 to vector<8x32xf32>
    %298 = arith.addf %297, %296 : vector<8x32xf32>
    %299 = math.log %298 : vector<8x32xf32>
    %300 = arith.addf %292, %299 : vector<8x32xf32>
    %cst_126 = arith.constant 0.693147182 : f32
    %301 = vector.broadcast %cst_126 : f32 to vector<8x32xf32>
    %302 = arith.subf %300, %301 : vector<8x32xf32>
    %c416 = arith.constant 416 : index
    %c0_127 = arith.constant 0 : index
    %303 = vector.load %arg6[%c416, %c0_127] : memref<736x32xf32, #tpu.memory_space<vmem>>, vector<32x32xf32>
    %cst_128 = arith.constant dense<0.000000e+00> : vector<8x32xf32>
    %304 = tpu.matmul %283, %303, %cst_128 {dimension_numbers = #tpu.dot_dimension_numbers<[1], [0], [0], [1], [0, 0, 1, 1], [], []>} : vector<8x32xf32>, vector<32x32xf32>, vector<8x32xf32> -> vector<8x32xf32>
    %c17 = arith.constant 17 : index
    %c0_129 = arith.constant 0 : index
    %305 = vector.load %arg7[%c17, %c0_129] : memref<32x32xf32, #tpu.memory_space<vmem>>, vector<1x32xf32>
    %306 = vector.broadcast %305 : vector<1x32xf32> to vector<8x32xf32>
    %307 = arith.addf %304, %306 : vector<8x32xf32>
    %cst_130 = arith.constant 0.000000e+00 : f32
    %308 = vector.broadcast %cst_130 : f32 to vector<8x32xf32>
    %309 = arith.maximumf %307, %308 : vector<8x32xf32>
    %310 = math.absf %307 : vector<8x32xf32>
    %cst_131 = arith.constant 0.000000e+00 : f32
    %311 = vector.broadcast %cst_131 : f32 to vector<8x32xf32>
    %312 = arith.subf %311, %310 : vector<8x32xf32>
    %313 = math.exp %312 : vector<8x32xf32>
    %cst_132 = arith.constant 1.000000e+00 : f32
    %314 = vector.broadcast %cst_132 : f32 to vector<8x32xf32>
    %315 = arith.addf %314, %313 : vector<8x32xf32>
    %316 = math.log %315 : vector<8x32xf32>
    %317 = arith.addf %309, %316 : vector<8x32xf32>
    %cst_133 = arith.constant 0.693147182 : f32
    %318 = vector.broadcast %cst_133 : f32 to vector<8x32xf32>
    %319 = arith.subf %317, %318 : vector<8x32xf32>
    %cst_134 = arith.constant dense<0.000000e+00> : vector<56x32xf32>
    %320 = tpu.matmul %42, %319, %cst_134 {dimension_numbers = #tpu.dot_dimension_numbers<[1], [0], [0], [1], [0, 0, 1, 1], [], []>} : vector<56x8xf32>, vector<8x32xf32>, vector<56x32xf32> -> vector<56x32xf32>
    %321 = arith.mulf %285, %320 : vector<56x32xf32>
    %cst_135 = arith.constant dense<0.000000e+00> : vector<8x32xf32>
    %322 = tpu.matmul %36, %321, %cst_135 {dimension_numbers = #tpu.dot_dimension_numbers<[1], [0], [0], [1], [0, 0, 1, 1], [], []>} : vector<8x56xf32>, vector<56x32xf32>, vector<8x32xf32> -> vector<8x32xf32>
    %323 = arith.addf %302, %322 : vector<8x32xf32>
    %cst_136 = arith.constant 0.000000e+00 : f32
    %324 = vector.broadcast %cst_136 : f32 to vector<8x32xf32>
    %325 = arith.maximumf %323, %324 : vector<8x32xf32>
    %326 = math.absf %323 : vector<8x32xf32>
    %cst_137 = arith.constant 0.000000e+00 : f32
    %327 = vector.broadcast %cst_137 : f32 to vector<8x32xf32>
    %328 = arith.subf %327, %326 : vector<8x32xf32>
    %329 = math.exp %328 : vector<8x32xf32>
    %cst_138 = arith.constant 1.000000e+00 : f32
    %330 = vector.broadcast %cst_138 : f32 to vector<8x32xf32>
    %331 = arith.addf %330, %329 : vector<8x32xf32>
    %332 = math.log %331 : vector<8x32xf32>
    %333 = arith.addf %325, %332 : vector<8x32xf32>
    %cst_139 = arith.constant 0.693147182 : f32
    %334 = vector.broadcast %cst_139 : f32 to vector<8x32xf32>
    %335 = arith.subf %333, %334 : vector<8x32xf32>
    %c448 = arith.constant 448 : index
    %c0_140 = arith.constant 0 : index
    %336 = vector.load %arg6[%c448, %c0_140] : memref<736x32xf32, #tpu.memory_space<vmem>>, vector<32x32xf32>
    %cst_141 = arith.constant dense<0.000000e+00> : vector<8x32xf32>
    %337 = tpu.matmul %335, %336, %cst_141 {dimension_numbers = #tpu.dot_dimension_numbers<[1], [0], [0], [1], [0, 0, 1, 1], [], []>} : vector<8x32xf32>, vector<32x32xf32>, vector<8x32xf32> -> vector<8x32xf32>
    %c18 = arith.constant 18 : index
    %c0_142 = arith.constant 0 : index
    %338 = vector.load %arg7[%c18, %c0_142] : memref<32x32xf32, #tpu.memory_space<vmem>>, vector<1x32xf32>
    %339 = vector.broadcast %338 : vector<1x32xf32> to vector<8x32xf32>
    %340 = arith.addf %337, %339 : vector<8x32xf32>
    %cst_143 = arith.constant 0.000000e+00 : f32
    %341 = vector.broadcast %cst_143 : f32 to vector<8x32xf32>
    %342 = arith.maximumf %340, %341 : vector<8x32xf32>
    %343 = math.absf %340 : vector<8x32xf32>
    %cst_144 = arith.constant 0.000000e+00 : f32
    %344 = vector.broadcast %cst_144 : f32 to vector<8x32xf32>
    %345 = arith.subf %344, %343 : vector<8x32xf32>
    %346 = math.exp %345 : vector<8x32xf32>
    %cst_145 = arith.constant 1.000000e+00 : f32
    %347 = vector.broadcast %cst_145 : f32 to vector<8x32xf32>
    %348 = arith.addf %347, %346 : vector<8x32xf32>
    %349 = math.log %348 : vector<8x32xf32>
    %350 = arith.addf %342, %349 : vector<8x32xf32>
    %cst_146 = arith.constant 0.693147182 : f32
    %351 = vector.broadcast %cst_146 : f32 to vector<8x32xf32>
    %352 = arith.subf %350, %351 : vector<8x32xf32>
    %c512 = arith.constant 512 : index
    %c0_147 = arith.constant 0 : index
    %353 = vector.load %arg6[%c512, %c0_147] : memref<736x32xf32, #tpu.memory_space<vmem>>, vector<32x32xf32>
    %cst_148 = arith.constant dense<0.000000e+00> : vector<8x32xf32>
    %354 = tpu.matmul %352, %353, %cst_148 {dimension_numbers = #tpu.dot_dimension_numbers<[1], [0], [0], [1], [0, 0, 1, 1], [], []>} : vector<8x32xf32>, vector<32x32xf32>, vector<8x32xf32> -> vector<8x32xf32>
    %c20 = arith.constant 20 : index
    %c0_149 = arith.constant 0 : index
    %355 = vector.load %arg7[%c20, %c0_149] : memref<32x32xf32, #tpu.memory_space<vmem>>, vector<1x32xf32>
    %356 = vector.broadcast %355 : vector<1x32xf32> to vector<8x32xf32>
    %357 = arith.addf %354, %356 : vector<8x32xf32>
    %358 = arith.addf %323, %357 : vector<8x32xf32>
    %cst_150 = arith.constant 0.000000e+00 : f32
    %359 = vector.broadcast %cst_150 : f32 to vector<8x32xf32>
    %360 = arith.maximumf %358, %359 : vector<8x32xf32>
    %361 = math.absf %358 : vector<8x32xf32>
    %cst_151 = arith.constant 0.000000e+00 : f32
    %362 = vector.broadcast %cst_151 : f32 to vector<8x32xf32>
    %363 = arith.subf %362, %361 : vector<8x32xf32>
    %364 = math.exp %363 : vector<8x32xf32>
    %cst_152 = arith.constant 1.000000e+00 : f32
    %365 = vector.broadcast %cst_152 : f32 to vector<8x32xf32>
    %366 = arith.addf %365, %364 : vector<8x32xf32>
    %367 = math.log %366 : vector<8x32xf32>
    %368 = arith.addf %360, %367 : vector<8x32xf32>
    %cst_153 = arith.constant 0.693147182 : f32
    %369 = vector.broadcast %cst_153 : f32 to vector<8x32xf32>
    %370 = arith.subf %368, %369 : vector<8x32xf32>
    %c480 = arith.constant 480 : index
    %c0_154 = arith.constant 0 : index
    %371 = vector.load %arg6[%c480, %c0_154] : memref<736x32xf32, #tpu.memory_space<vmem>>, vector<32x32xf32>
    %cst_155 = arith.constant dense<0.000000e+00> : vector<8x32xf32>
    %372 = tpu.matmul %370, %371, %cst_155 {dimension_numbers = #tpu.dot_dimension_numbers<[1], [0], [0], [1], [0, 0, 1, 1], [], []>} : vector<8x32xf32>, vector<32x32xf32>, vector<8x32xf32> -> vector<8x32xf32>
    %c19 = arith.constant 19 : index
    %c0_156 = arith.constant 0 : index
    %373 = vector.load %arg7[%c19, %c0_156] : memref<32x32xf32, #tpu.memory_space<vmem>>, vector<1x32xf32>
    %374 = vector.broadcast %373 : vector<1x32xf32> to vector<8x32xf32>
    %375 = arith.addf %372, %374 : vector<8x32xf32>
    %cst_157 = arith.constant 0.000000e+00 : f32
    %376 = vector.broadcast %cst_157 : f32 to vector<8x32xf32>
    %377 = arith.maximumf %375, %376 : vector<8x32xf32>
    %378 = math.absf %375 : vector<8x32xf32>
    %cst_158 = arith.constant 0.000000e+00 : f32
    %379 = vector.broadcast %cst_158 : f32 to vector<8x32xf32>
    %380 = arith.subf %379, %378 : vector<8x32xf32>
    %381 = math.exp %380 : vector<8x32xf32>
    %cst_159 = arith.constant 1.000000e+00 : f32
    %382 = vector.broadcast %cst_159 : f32 to vector<8x32xf32>
    %383 = arith.addf %382, %381 : vector<8x32xf32>
    %384 = math.log %383 : vector<8x32xf32>
    %385 = arith.addf %377, %384 : vector<8x32xf32>
    %cst_160 = arith.constant 0.693147182 : f32
    %386 = vector.broadcast %cst_160 : f32 to vector<8x32xf32>
    %387 = arith.subf %385, %386 : vector<8x32xf32>
    %c544 = arith.constant 544 : index
    %c0_161 = arith.constant 0 : index
    %388 = vector.load %arg6[%c544, %c0_161] : memref<736x32xf32, #tpu.memory_space<vmem>>, vector<32x32xf32>
    %cst_162 = arith.constant dense<0.000000e+00> : vector<8x32xf32>
    %389 = tpu.matmul %387, %388, %cst_162 {dimension_numbers = #tpu.dot_dimension_numbers<[1], [0], [0], [1], [0, 0, 1, 1], [], []>} : vector<8x32xf32>, vector<32x32xf32>, vector<8x32xf32> -> vector<8x32xf32>
    %c21 = arith.constant 21 : index
    %c0_163 = arith.constant 0 : index
    %390 = vector.load %arg7[%c21, %c0_163] : memref<32x32xf32, #tpu.memory_space<vmem>>, vector<1x32xf32>
    %391 = vector.broadcast %390 : vector<1x32xf32> to vector<8x32xf32>
    %392 = arith.addf %389, %391 : vector<8x32xf32>
    %393 = arith.addf %358, %392 : vector<8x32xf32>
    %cst_164 = arith.constant 0.000000e+00 : f32
    %394 = vector.broadcast %cst_164 : f32 to vector<8x32xf32>
    %395 = arith.maximumf %393, %394 : vector<8x32xf32>
    %396 = math.absf %393 : vector<8x32xf32>
    %cst_165 = arith.constant 0.000000e+00 : f32
    %397 = vector.broadcast %cst_165 : f32 to vector<8x32xf32>
    %398 = arith.subf %397, %396 : vector<8x32xf32>
    %399 = math.exp %398 : vector<8x32xf32>
    %cst_166 = arith.constant 1.000000e+00 : f32
    %400 = vector.broadcast %cst_166 : f32 to vector<8x32xf32>
    %401 = arith.addf %400, %399 : vector<8x32xf32>
    %402 = math.log %401 : vector<8x32xf32>
    %403 = arith.addf %395, %402 : vector<8x32xf32>
    %cst_167 = arith.constant 0.693147182 : f32
    %404 = vector.broadcast %cst_167 : f32 to vector<8x32xf32>
    %405 = arith.subf %403, %404 : vector<8x32xf32>
    %c23 = arith.constant 23 : index
    %c0_168 = arith.constant 0 : index
    %406 = vector.load %arg7[%c23, %c0_168] : memref<32x32xf32, #tpu.memory_space<vmem>>, vector<1x32xf32>
    %407 = vector.broadcast %406 : vector<1x32xf32> to vector<8x32xf32>
    %408 = arith.mulf %407, %221 : vector<8x32xf32>
    %c576 = arith.constant 576 : index
    %c0_169 = arith.constant 0 : index
    %409 = vector.load %arg6[%c576, %c0_169] : memref<736x32xf32, #tpu.memory_space<vmem>>, vector<32x32xf32>
    %cst_170 = arith.constant dense<0.000000e+00> : vector<8x32xf32>
    %410 = tpu.matmul %405, %409, %cst_170 {dimension_numbers = #tpu.dot_dimension_numbers<[1], [0], [0], [1], [0, 0, 1, 1], [], []>} : vector<8x32xf32>, vector<32x32xf32>, vector<8x32xf32> -> vector<8x32xf32>
    %411 = arith.addf %408, %410 : vector<8x32xf32>
    %c22 = arith.constant 22 : index
    %c0_171 = arith.constant 0 : index
    %412 = vector.load %arg7[%c22, %c0_171] : memref<32x32xf32, #tpu.memory_space<vmem>>, vector<1x32xf32>
    %413 = vector.broadcast %412 : vector<1x32xf32> to vector<8x32xf32>
    %414 = arith.addf %411, %413 : vector<8x32xf32>
    %cst_172 = arith.constant 0.000000e+00 : f32
    %415 = vector.broadcast %cst_172 : f32 to vector<8x32xf32>
    %416 = arith.maximumf %414, %415 : vector<8x32xf32>
    %417 = math.absf %414 : vector<8x32xf32>
    %cst_173 = arith.constant 0.000000e+00 : f32
    %418 = vector.broadcast %cst_173 : f32 to vector<8x32xf32>
    %419 = arith.subf %418, %417 : vector<8x32xf32>
    %420 = math.exp %419 : vector<8x32xf32>
    %cst_174 = arith.constant 1.000000e+00 : f32
    %421 = vector.broadcast %cst_174 : f32 to vector<8x32xf32>
    %422 = arith.addf %421, %420 : vector<8x32xf32>
    %423 = math.log %422 : vector<8x32xf32>
    %424 = arith.addf %416, %423 : vector<8x32xf32>
    %cst_175 = arith.constant 0.693147182 : f32
    %425 = vector.broadcast %cst_175 : f32 to vector<8x32xf32>
    %426 = arith.subf %424, %425 : vector<8x32xf32>
    %c608 = arith.constant 608 : index
    %c0_176 = arith.constant 0 : index
    %427 = vector.load %arg6[%c608, %c0_176] : memref<736x32xf32, #tpu.memory_space<vmem>>, vector<32x32xf32>
    %cst_177 = arith.constant dense<0.000000e+00> : vector<8x32xf32>
    %428 = tpu.matmul %426, %427, %cst_177 {dimension_numbers = #tpu.dot_dimension_numbers<[1], [0], [0], [1], [0, 0, 1, 1], [], []>} : vector<8x32xf32>, vector<32x32xf32>, vector<8x32xf32> -> vector<8x32xf32>
    %c24 = arith.constant 24 : index
    %c0_178 = arith.constant 0 : index
    %429 = vector.load %arg7[%c24, %c0_178] : memref<32x32xf32, #tpu.memory_space<vmem>>, vector<1x32xf32>
    %430 = vector.broadcast %429 : vector<1x32xf32> to vector<8x32xf32>
    %431 = arith.addf %428, %430 : vector<8x32xf32>
    %cst_179 = arith.constant 0.000000e+00 : f32
    %432 = vector.broadcast %cst_179 : f32 to vector<8x32xf32>
    %433 = arith.maximumf %431, %432 : vector<8x32xf32>
    %434 = math.absf %431 : vector<8x32xf32>
    %cst_180 = arith.constant 0.000000e+00 : f32
    %435 = vector.broadcast %cst_180 : f32 to vector<8x32xf32>
    %436 = arith.subf %435, %434 : vector<8x32xf32>
    %437 = math.exp %436 : vector<8x32xf32>
    %cst_181 = arith.constant 1.000000e+00 : f32
    %438 = vector.broadcast %cst_181 : f32 to vector<8x32xf32>
    %439 = arith.addf %438, %437 : vector<8x32xf32>
    %440 = math.log %439 : vector<8x32xf32>
    %441 = arith.addf %433, %440 : vector<8x32xf32>
    %cst_182 = arith.constant 0.693147182 : f32
    %442 = vector.broadcast %cst_182 : f32 to vector<8x32xf32>
    %443 = arith.subf %441, %442 : vector<8x32xf32>
    %c640 = arith.constant 640 : index
    %c0_183 = arith.constant 0 : index
    %444 = vector.load %arg6[%c640, %c0_183] : memref<736x32xf32, #tpu.memory_space<vmem>>, vector<32x32xf32>
    %cst_184 = arith.constant dense<0.000000e+00> : vector<8x32xf32>
    %445 = tpu.matmul %443, %444, %cst_184 {dimension_numbers = #tpu.dot_dimension_numbers<[1], [0], [0], [1], [0, 0, 1, 1], [], []>} : vector<8x32xf32>, vector<32x32xf32>, vector<8x32xf32> -> vector<8x32xf32>
    %c25 = arith.constant 25 : index
    %c0_185 = arith.constant 0 : index
    %446 = vector.load %arg7[%c25, %c0_185] : memref<32x32xf32, #tpu.memory_space<vmem>>, vector<1x32xf32>
    %447 = vector.broadcast %446 : vector<1x32xf32> to vector<8x32xf32>
    %448 = arith.addf %445, %447 : vector<8x32xf32>
    %449 = arith.addf %414, %448 : vector<8x32xf32>
    %cst_186 = arith.constant 0.000000e+00 : f32
    %450 = vector.broadcast %cst_186 : f32 to vector<8x32xf32>
    %451 = arith.maximumf %449, %450 : vector<8x32xf32>
    %452 = math.absf %449 : vector<8x32xf32>
    %cst_187 = arith.constant 0.000000e+00 : f32
    %453 = vector.broadcast %cst_187 : f32 to vector<8x32xf32>
    %454 = arith.subf %453, %452 : vector<8x32xf32>
    %455 = math.exp %454 : vector<8x32xf32>
    %cst_188 = arith.constant 1.000000e+00 : f32
    %456 = vector.broadcast %cst_188 : f32 to vector<8x32xf32>
    %457 = arith.addf %456, %455 : vector<8x32xf32>
    %458 = math.log %457 : vector<8x32xf32>
    %459 = arith.addf %451, %458 : vector<8x32xf32>
    %cst_189 = arith.constant 0.693147182 : f32
    %460 = vector.broadcast %cst_189 : f32 to vector<8x32xf32>
    %461 = arith.subf %459, %460 : vector<8x32xf32>
    %c672 = arith.constant 672 : index
    %c0_190 = arith.constant 0 : index
    %462 = vector.load %arg6[%c672, %c0_190] : memref<736x32xf32, #tpu.memory_space<vmem>>, vector<32x32xf32>
    %cst_191 = arith.constant dense<0.000000e+00> : vector<8x32xf32>
    %463 = tpu.matmul %461, %462, %cst_191 {dimension_numbers = #tpu.dot_dimension_numbers<[1], [0], [0], [1], [0, 0, 1, 1], [], []>} : vector<8x32xf32>, vector<32x32xf32>, vector<8x32xf32> -> vector<8x32xf32>
    %c26 = arith.constant 26 : index
    %c0_192 = arith.constant 0 : index
    %464 = vector.load %arg7[%c26, %c0_192] : memref<32x32xf32, #tpu.memory_space<vmem>>, vector<1x32xf32>
    %465 = vector.broadcast %464 : vector<1x32xf32> to vector<8x32xf32>
    %466 = arith.addf %463, %465 : vector<8x32xf32>
    %cst_193 = arith.constant 0.000000e+00 : f32
    %467 = vector.broadcast %cst_193 : f32 to vector<8x32xf32>
    %468 = arith.maximumf %466, %467 : vector<8x32xf32>
    %469 = math.absf %466 : vector<8x32xf32>
    %cst_194 = arith.constant 0.000000e+00 : f32
    %470 = vector.broadcast %cst_194 : f32 to vector<8x32xf32>
    %471 = arith.subf %470, %469 : vector<8x32xf32>
    %472 = math.exp %471 : vector<8x32xf32>
    %cst_195 = arith.constant 1.000000e+00 : f32
    %473 = vector.broadcast %cst_195 : f32 to vector<8x32xf32>
    %474 = arith.addf %473, %472 : vector<8x32xf32>
    %475 = math.log %474 : vector<8x32xf32>
    %476 = arith.addf %468, %475 : vector<8x32xf32>
    %cst_196 = arith.constant 0.693147182 : f32
    %477 = vector.broadcast %cst_196 : f32 to vector<8x32xf32>
    %478 = arith.subf %476, %477 : vector<8x32xf32>
    %c704 = arith.constant 704 : index
    %c0_197 = arith.constant 0 : index
    %479 = vector.load %arg6[%c704, %c0_197] : memref<736x32xf32, #tpu.memory_space<vmem>>, vector<32x32xf32>
    %cst_198 = arith.constant dense<0.000000e+00> : vector<8x32xf32>
    %480 = tpu.matmul %478, %479, %cst_198 {dimension_numbers = #tpu.dot_dimension_numbers<[1], [0], [0], [1], [0, 0, 1, 1], [], []>} : vector<8x32xf32>, vector<32x32xf32>, vector<8x32xf32> -> vector<8x32xf32>
    %c27 = arith.constant 27 : index
    %c0_199 = arith.constant 0 : index
    %481 = vector.load %arg7[%c27, %c0_199] : memref<32x32xf32, #tpu.memory_space<vmem>>, vector<1x32xf32>
    %482 = vector.broadcast %481 : vector<1x32xf32> to vector<8x32xf32>
    %483 = arith.addf %480, %482 : vector<8x32xf32>
    %484 = arith.addf %449, %483 : vector<8x32xf32>
    %cst_200 = arith.constant 0.000000e+00 : f32
    %485 = vector.broadcast %cst_200 : f32 to vector<8x32xf32>
    %486 = arith.maximumf %484, %485 : vector<8x32xf32>
    %487 = math.absf %484 : vector<8x32xf32>
    %cst_201 = arith.constant 0.000000e+00 : f32
    %488 = vector.broadcast %cst_201 : f32 to vector<8x32xf32>
    %489 = arith.subf %488, %487 : vector<8x32xf32>
    %490 = math.exp %489 : vector<8x32xf32>
    %cst_202 = arith.constant 1.000000e+00 : f32
    %491 = vector.broadcast %cst_202 : f32 to vector<8x32xf32>
    %492 = arith.addf %491, %490 : vector<8x32xf32>
    %493 = math.log %492 : vector<8x32xf32>
    %494 = arith.addf %486, %493 : vector<8x32xf32>
    %cst_203 = arith.constant 0.693147182 : f32
    %495 = vector.broadcast %cst_203 : f32 to vector<8x32xf32>
    %496 = arith.subf %494, %495 : vector<8x32xf32>
    %c1_204 = arith.constant 1 : index
    %c0_205 = arith.constant 0 : index
    %c0_206 = arith.constant 0 : index
    %497 = vector.load %arg8[%c1_204, %c0_205, %c0_206] : memref<2x8x32xf32, #tpu.memory_space<vmem>>, vector<1x8x32xf32>
    %498 = vector.shape_cast %497 : vector<1x8x32xf32> to vector<8x32xf32>
    %499 = vector.shape_cast %496 : vector<8x32xf32> to vector<1x8x32xf32>
    tpu.vector_store %arg8[%c1_204, %c0_205, %c0_206], %499 {strides = array<i32>} : memref<2x8x32xf32, #tpu.memory_space<vmem>>, vector<1x8x32xf32>,
    return
  }
  func.func @transform_0(%arg0: i32) -> (i32, i32) {
    %c0_i32 = arith.constant 0 : i32
    %c0_i32_0 = arith.constant 0 : i32
    %c0_i32_1 = arith.constant 0 : i32
    return %c0_i32, %c0_i32_0 : i32, i32
  }
  func.func @transform_1(%arg0: i32) -> (i32, i32) {
    %c0_i32 = arith.constant 0 : i32
    %c0_i32_0 = arith.constant 0 : i32
    %c0_i32_1 = arith.constant 0 : i32
    return %c0_i32, %c0_i32_0 : i32, i32
  }
  func.func @transform_2(%arg0: i32) -> (i32, i32) {
    %c0_i32 = arith.constant 0 : i32
    %c0_i32_0 = arith.constant 0 : i32
    %c0_i32_1 = arith.constant 0 : i32
    return %c0_i32, %c0_i32_0 : i32, i32
  }
  func.func @transform_3(%arg0: i32) -> (i32, i32) {
    %c0_i32 = arith.constant 0 : i32
    %c0_i32_0 = arith.constant 0 : i32
    %c0_i32_1 = arith.constant 0 : i32
    return %c0_i32, %c0_i32_0 : i32, i32
  }
  func.func @transform_4(%arg0: i32) -> (i32, i32) {
    %c0_i32 = arith.constant 0 : i32
    %c0_i32_0 = arith.constant 0 : i32
    %c0_i32_1 = arith.constant 0 : i32
    return %c0_i32, %c0_i32_0 : i32, i32
  }
  func.func @transform_5(%arg0: i32) -> (i32, i32) {
    %c0_i32 = arith.constant 0 : i32
    %c0_i32_0 = arith.constant 0 : i32
    %c0_i32_1 = arith.constant 0 : i32
    return %c0_i32, %c0_i32_0 : i32, i32
  }
  func.func @transform_6(%arg0: i32) -> (i32, i32) {
    %c0_i32 = arith.constant 0 : i32
    %c0_i32_0 = arith.constant 0 : i32
    %c0_i32_1 = arith.constant 0 : i32
    return %c0_i32, %c0_i32_0 : i32, i32
  }
  func.func @transform_7(%arg0: i32) -> (i32, i32, i32) {
    %c0_i32 = arith.constant 0 : i32
    %c0_i32_0 = arith.constant 0 : i32
    %c0_i32_1 = arith.constant 0 : i32
    %c0_i32_2 = arith.constant 0 : i32
    return %c0_i32, %c0_i32_0, %c0_i32_1 : i32, i32, i32
  }
}

</mosaic_0001>

<bundles_post_ra>
// kernel: tpu_custom_call.1
= control target key start
LH: loop header
LB: loop body
LE: loop exit
PB: predicated region body
PF: predicated region fallthrough
CT: control target
= control target key end

     0   :  { %vm41_vm0 = vcmask 23552   ;;  %v4581_v8 = vmov 0.0   ;;  %vm4582_vm1 = vmmov 0   ;;  %v4583_v16 = vmov 0   ;;  %s6141_s0 = inlined_call_operand.vmem [shape: f32[56,3], index: 0, kind: input, shape index: {}]   ;;  %s6142_s1 = inlined_call_operand.vmem [shape: s32[1,56], index: 1, kind: input, shape index: {}]   ;;  %s6143_s2 = inlined_call_operand.vmem [shape: s32[56,1], index: 2, kind: input, shape index: {}]   ;;  %s6144_s3 = inlined_call_operand.vmem [shape: f32[2,16], index: 3, kind: input, shape index: {}]   ;;  %s6145_s4 = inlined_call_operand.vmem [shape: f32[8,32], index: 4, kind: input, shape index: {}]   ;;  %s6146_s5 = inlined_call_operand.vmem [shape: f32[736,32], index: 5, kind: input, shape index: {}]   ;;  %s6147_s6 = inlined_call_operand.vmem [shape: f32[32,32], index: 6, kind: input, shape index: {}]   ;;  %s6148_s7 = inlined_call_operand.hbm [shape: f32[2,8,32], index: 7, kind: output, shape index: {}]  }
   0x1   :  { %v29_v0 = vld [vmem:[%s6141_s0 + $0x10] sm:$0xff]  ;;  %v27_v1 = vld [vmem:[%s6141_s0] sm:$0xff]  ;;  %v30_v2 = vld [vmem:[%s6141_s0 + $0x18] sm:$0xff]  ;;  %4012 = vmatprep.subr.mxu1 %v4581_v8  ;;  %4020 = vmatprep.mubr.msk.f32.mxu1 %vm4582_vm1, %v4581_v8 }
   0x2   :  { %v36_v3 = vmul.f32 %v29_v0, %v29_v0  ;;  %v34_v4 = vmul.f32 %v27_v1, %v27_v1  ;;  %v37_v5 = vmul.f32 %v30_v2, %v30_v2  ;;  %v28_v6 = vld [vmem:[%s6141_s0 + $0x8] sm:$0xff]  ;;  %v31_v10 = vld [vmem:[%s6141_s0 + $0x20] sm:$0xff]  ;;  %3987 = vmatprep.subr.mxu0 %v4581_v8  ;;  %3991 = vmatprep.mubr.msk.f32.mxu0 %vm4582_vm1, %v4581_v8  ;;  %v33_v22 = vld [vmem:[%s6141_s0 + $0x30] sm:$0xff] }
   0x3   :  { %v32_v7 = vld [vmem:[%s6141_s0 + $0x28] sm:$0xff]  ;;  %v35_v9 = vmul.f32 %v28_v6, %v28_v6  ;;  %v1127_v14 = vld [vmem:[%s6146_s5 + $0x20] sm:$0xff]  ;;  %4399 = vset.pattern.permute.xlu1 %v4583_v16  ;;  %v38_v20 = vmul.f32 %v31_v10, %v31_v10  ;;  %4400 = vset.pattern.permute.xlu0 %v4583_v16  ;;  %v1126_v23 = vld [vmem:[%s6146_s5 + $0x18] sm:$0xff] }
   0x4   :  { %v1128_v11 = vld [vmem:[%s6146_s5 + $0x28] sm:$0xff]  ;;  %v48_v12 = vsel %vm41_vm0, %v36_v3, 0.0  ;;  %v42_v13 = vsel %vm41_vm0, %v34_v4, 0.0  ;;  %v990_v15 = vld [vmem:[%s6145_s4] sm:$0xff]  ;;  %v39_v17 = vmul.f32 %v32_v7, %v32_v7  ;;  %v51_v18 = vsel %vm41_vm0, %v37_v5, 0.0 }
   0x5   :  { %4013 = vmatpush3.msra.mxu1 %v1128_v11  ;;  %49 = vadd.xlane.f32.xlu1 %v48_v12  ;;  %v45_v19 = vsel %vm41_vm0, %v35_v9, 0.0  ;;  %v992_v21 = vand.u32 2147483647, %v990_v15 }
   0x6   :  { %43 = vadd.xlane.f32.xlu0 %v42_v13  ;;  %4014 = vmatprep.subr.mxu1 %v4581_v8 }
   0x7   :  { %4015 = vmatpush3.msra.mxu1 %v1127_v14 }
   0x8   :  { %12 = vsyncpa [#allocation3], 0  ;;  %4016 = vmatprep.subr.mxu1 %v4581_v8  ;;  %v993_v24 = vsub.f32 0.0, %v992_v21  ;;  %v1125_v25 = vld [vmem:[%s6146_s5 + $0x10] sm:$0xff]  ;;  %v57_v26 = vsel %vm41_vm0, %v39_v17, 0.0  ;;  %v54_v27 = vsel %vm41_vm0, %v38_v20, 0.0  ;;  %v40_v28 = vmul.f32 %v33_v22, %v33_v22 }
   0x9   :  { %52 = vadd.xlane.f32.xlu1 %v51_v18  ;;  %4017 = vmatpush3.msra.mxu1 %v1126_v23  ;;  %v941_v33 = vld [vmem:[%s6143_s2] sm:$0xff]  ;;  %v943_v34 = vld [vmem:[%s6143_s2 + $0x10] sm:$0xff]  ;;  %v944_v35 = vld [vmem:[%s6143_s2 + $0x18] sm:$0xff]  ;;  %v991_v37 = vmax.f32 %v990_v15, 0.0  ;;  %vm1134_vm2 = vcmask 261120   ;;  %s4590_s0 = smov [#allocation2]  }
   0xa   :  { %46 = vadd.xlane.f32.xlu0 %v45_v19  ;;  %v994_v29 = vmul.f32 1.442695, %v993_v24  ;;  %4018 = vmatprep.subr.mxu1 %v4581_v8  ;;  %v60_v30 = vsel %vm41_vm0, %v40_v28, 0.0  ;;  %v945_v36 = vld [vmem:[%s6143_s2 + $0x20] sm:$0xff]  ;;  %v946_v40 = vld [vmem:[%s6143_s2 + $0x28] sm:$0xff]  ;;  %v947_v45 = vld [vmem:[%s6143_s2 + $0x30] sm:$0xff] }
   0xb   :  { %4019 = vmatpush3.msra.mxu1 %v1125_v25  ;;  %v942_v41 = vld [vmem:[%s6143_s2 + $0x8] sm:$0xff]  ;;  %v1220_v46 = vld [vmem:[%s6146_s5 + $0x40] sm:$0xff]  ;;  %v1219_v47 = vld [vmem:[%s6146_s5 + $0x38] sm:$0xff]  ;;  %s3677_s25 = sshll.u32 %s4590_s0, 4  ;;  %s3678_s25 = int_to_ptr.vmem [resolvable:$true] %s3677_s25 }
   0xc   :  { %4401 = vpow2.f32 %v994_v29  ;;  %4023 = vmatprep.subr.mxu1 %v4581_v8  ;;  %v1221_v44 = vld [vmem:[%s6146_s5 + $0x48] sm:$0xff]  ;;  %v1218_v48 = vld [vmem:[%s6146_s5 + $0x30] sm:$0xff]  ;;  %v1001_v50 = vld [vmem:[%s6146_s5] sm:$0xff]  ;;  %p4564_p1 = scmp.lt.s32.totalorder %s3678_s25, %s3678_s25 }
   0xd   :  { %58 = vadd.xlane.f32.xlu1 %v57_v26  ;;  %v1002_v49 = vld [vmem:[%s6146_s5 + $0x8] sm:$0xff] }
   0xe   :  { %55 = vadd.xlane.f32.xlu0 %v54_v27  ;;  %3988 = vmatpush3.msra.mxu0 %v1002_v49  ;;  %v4589_v49 = vmov 1326507024  }
   0xf   :  { %3989 = vmatprep.subr.mxu0 %v4581_v8 }
  0x10   :  { %3990 = vmatpush3.msra.mxu0 %v1001_v50 }
  0x11   :  { %4057 = vmatprep.subr.mxu0 %v4581_v8 }
  0x12   :  { %61 = vadd.xlane.f32.xlu0 %v60_v30 }
  0x19   :  { %v4402_v31 = vpop.eup %4401 }
  0x1a   :  { %v996_v32 = vadd.f32 1.0, %v4402_v31 }
  0x1c   :  { %4403 = vlog2.f32 %v996_v32  ;;  %v4584_v32 = vmov 683565275  }
  0x1e   :  { %949 = vperm.xlu1 %4399, %v941_v33  }
  0x22   :  { %955 = vperm.xlu1 %4399, %v943_v34   ;;  %v4585_v34 = vmov 2475754826  }
  0x26   :  { %958 = vperm.xlu1 %4399, %v944_v35  }
  0x28   :  { %952 = vperm.xlu0 %4400, %v942_v41  }
  0x29   :  { %v4404_v38 = vpop.eup %4403 }
  0x2a   :  { %v998_v39 = vmul.f32 0.6931472, %v4404_v38  ;;  %961 = vperm.xlu1 %4399, %v945_v36   ;;  %v4586_v36 = vmov 2131351028   ;;  %v4587_v38 = vmov 2102212464  }
  0x2c   :  { %v999_v42 = vadd.f32 %v998_v39, %v991_v37 }
  0x2e   :  { %v3726_v43 = vadd.f32 -0.6931472, %v999_v42  ;;  %964 = vperm.xlu1 %4399, %v946_v40   ;;  %v4588_v40 = vmov 920167782  }
  0x30   :  { %4021 = vmatmul.mubr.msk.f32.vlgmr.msra.gmra.mxu1 %vm1134_vm2, %v3726_v43 }
  0x31   :  { %4024 = vmatpush3.msra.mxu1 %v1221_v44  ;;  %4031 = vmatprep.mubr.msk.f32.mxu1 %vm4582_vm1, %v4581_v8 }
  0x32   :  { %4025 = vmatprep.subr.mxu1 %v4581_v8  ;;  %967 = vperm.xlu1 %4399, %v947_v45  }
  0x33   :  { %4026 = vmatpush3.msra.mxu1 %v1220_v46 }
  0x34   :  { %4027 = vmatprep.subr.mxu1 %v4581_v8 }
  0x35   :  { %4028 = vmatpush3.msra.mxu1 %v1219_v47 }
  0x36   :  { %4029 = vmatprep.subr.mxu1 %v4581_v8 }
  0x37   :  { %4030 = vmatpush3.msra.mxu1 %v1218_v48 }
  0x38   :  { %4032 = vmatmul.mubr.msk.f32.vlgmr.msra.gmra.mxu1 %vm1134_vm2, %v3726_v43  ;;  %4034 = vmatprep.subr.mxu1 %v4581_v8 }
  0x39   :  { %4036 = vmatprep.mubr.msk.f32.mxu1 %vm4582_vm1, %v4581_v8 }
  0x8e   :  { %v50_v51 = vpop.xlane.xlu1 %49 }
  0x8f   :  { %v44_v52 = vpop.xlane.xlu0 %43  ;;  %4405 = vrsqrt.f32 %v50_v51  ;;  %vm79_vm3 = vcmp.eq.f32.partialorder %v50_v51, inf  ;;  %v82_v58 = vand.u32 2147483648, %v50_v51  ;;  %vm81_vm6 = vcmp.eq.f32.partialorder %v50_v51, 0.0 }
  0x90   :  { %4407 = vrsqrt.f32 %v44_v52  ;;  %vm65_vm4 = vcmp.eq.f32.partialorder %v44_v52, inf  ;;  %v68_v57 = vand.u32 2147483648, %v44_v52  ;;  %vm67_vm5 = vcmp.eq.f32.partialorder %v44_v52, 0.0 }
  0x93   :  { %v47_v53 = vpop.xlane.xlu0 %46 }
  0x94   :  { %4409 = vrsqrt.f32 %v47_v53  ;;  %vm72_vm7 = vcmp.eq.f32.partialorder %v47_v53, inf  ;;  %v75_v3 = vand.u32 2147483648, %v47_v53  ;;  %vm74_vm8 = vcmp.eq.f32.partialorder %v47_v53, 0.0 }
  0x9c   :  { %v4406_v54 = vpop.eup %4405 }
  0x9d   :  { %v4408_v55 = vpop.eup %4407  ;;  %v78_v56 = vmul.f32 %v4406_v54, %v50_v51 }
  0x9e   :  { %v64_v59 = vmul.f32 %v4408_v55, %v44_v52 }
  0x9f   :  { %v80_v60 = vsel %vm79_vm3, %v50_v51, %v78_v56 }
  0xa0   :  { %v66_v61 = vsel %vm65_vm4, %v44_v52, %v64_v59  ;;  %v4740_v2 = vsel %vm81_vm6, %v82_v58, %v80_v60 }
  0xa1   :  { %v4410_v62 = vpop.eup %4409  ;;  %v4737_v63 = vsel %vm67_vm5, %v68_v57, %v66_v61  ;;  %v167_v6 = vmul.f32 3.1415927, %v4740_v2 }
  0xa2   :  { %v71_v0 = vmul.f32 %v4410_v62, %v47_v53  ;;  %v165_v1 = vmul.f32 3.1415927, %v4737_v63 }
  0xa3   :  { %v4749_v12 = vmul.f32 0.2, %v167_v6 }
  0xa4   :  { %v73_v4 = vsel %vm72_vm7, %v47_v53, %v71_v0  ;;  %v4742_v5 = vmul.f32 0.2, %v165_v1  ;;  %v4778_v1 = vpop.xlane.xlu1 %52 }
  0xa5   :  { %v4747_v10 = vsel %vm74_vm8, %v75_v3, %v73_v4  ;;  %v389_v18 = vand.u32 2139095040, %v4749_v12  ;;  %v386_v30 = vand.u32 2147483647, %v4749_v12  ;;  %4411 = vrsqrt.f32 %v4778_v1 }
  0xa6   :  { %v180_v7 = vand.u32 2147483647, %v4742_v5  ;;  %v183_v9 = vand.u32 2139095040, %v4742_v5  ;;  %v166_v14 = vmul.f32 3.1415927, %v4747_v10  ;;  %vm86_vm8 = vcmp.eq.f32.partialorder %v4778_v1, inf }
  0xa7   :  { %v390_v25 = vshrl.u32 %v389_v18, 23 }
  0xa8   :  { %v184_v11 = vshrl.u32 %v183_v9, 23  ;;  %v187_v13 = vand.u32 8388607, %v180_v7  ;;  %v4754_v16 = vmul.f32 0.2, %v166_v14 }
  0xa9   :  { %v3697_v43 = vadd.s32 4294967169, %v390_v25 }
  0xaa   :  { %v3689_v15 = vadd.s32 4294967169, %v184_v11  ;;  %v188_v19 = vor.u32 8388608, %v187_v13  ;;  %v283_v20 = vand.u32 2147483647, %v4754_v16  ;;  %v286_v21 = vand.u32 2139095040, %v4754_v16 }
  0xab   :  { %v396_v9 = vadd.s32 1, %v3697_v43 }
  0xac   :  { %v190_v17 = vadd.s32 1, %v3689_v15  ;;  %v287_v23 = vshrl.u32 %v286_v21, 23  ;;  %v4761_v24 = vand.u32 8388607, %v283_v20  ;;  %v4763_v28 = vshll.u32 %v188_v19, 8 }
  0xad   :  { %vm397_vm4 = vcmp.gt.s32.totalorder %v396_v9, 0 }
  0xae   :  { %vm191_vm9 = vcmp.gt.s32.totalorder %v190_v17, 0  ;;  %v3693_v29 = vadd.s32 4294967169, %v287_v23  ;;  %v291_v42 = vor.u32 8388608, %v4761_v24  ;;  %v4795_v24 = vand.u32 8388607, %v386_v30 }
  0xaf   :  { %v192_v22 = vsel %vm191_vm9, %v190_v17, 0 }
  0xb0   :  { %v194_v26 = vand.u32 31, %v192_v22  ;;  %v193_v27 = vshrl.u32 %v192_v22, 5  ;;  %v293_v54 = vadd.s32 1, %v3693_v29  ;;  %v133_v22 = vlaneseq }
  0xb2   :  { %v195_v31 = vsub.s32 32, %v194_v26  ;;  %v197_v33 = vshll.u32 %v4584_v32, %v194_v26  ;;  %v200_v35 = vshll.u32 %v4585_v34, %v194_v26  ;;  %v203_v37 = vshll.u32 %v4586_v36, %v194_v26 }
  0xb3   :  { %v206_v39 = vshll.u32 %v4587_v38, %v194_v26  ;;  %v209_v41 = vshll.u32 %v4588_v40, %v194_v26  ;;  %vm212_vm10 = vcmp.lt.s32.totalorder %v193_v27, 1  ;;  %vm215_vm11 = vcmp.lt.s32.totalorder %v193_v27, 4 }
  0xb4   :  { %v196_v44 = vshrl.u32 %v4584_v32, %v195_v31  ;;  %v198_v45 = vshrl.u32 %v4585_v34, %v195_v31  ;;  %v201_v46 = vshrl.u32 %v4586_v36, %v195_v31  ;;  %v204_v47 = vshrl.u32 %v4587_v38, %v195_v31 }
  0xb5   :  { %v207_v48 = vshrl.u32 %v4588_v40, %v195_v31  ;;  %v210_v50 = vshrl.u32 %v4589_v49, %v195_v31  ;;  %vm213_vm12 = vcmp.lt.s32.totalorder %v193_v27, 2  ;;  %vm214_vm13 = vcmp.lt.s32.totalorder %v193_v27, 3 }
  0xb6   :  { %v199_v51 = vor.u32 %v198_v45, %v197_v33  ;;  %v202_v52 = vor.u32 %v201_v46, %v200_v35  ;;  %v205_v53 = vor.u32 %v204_v47, %v203_v37  ;;  %vm294_vm14 = vcmp.gt.s32.totalorder %v293_v54, 0 }
  0xb7   :  { %v208_v55 = vor.u32 %v207_v48, %v206_v39  ;;  %v211_v56 = vor.u32 %v210_v50, %v209_v41  ;;  %v295_v6 = vsel %vm294_vm14, %v293_v54, 0  ;;  %v4798_v26 = vshll.u32 %v291_v42, 8 }
  0xb8   :  { %v216_v57 = vsel %vm212_vm10, %v196_v44, %v199_v51  ;;  %v217_v58 = vsel %vm215_vm11, %v205_v53, 2102212464  ;;  %v220_v59 = vsel %vm212_vm10, %v199_v51, %v202_v52  ;;  %v224_v60 = vsel %vm212_vm10, %v202_v52, %v205_v53 }
  0xb9   :  { %v218_v61 = vsel %vm214_vm13, %v202_v52, %v217_v58  ;;  %v221_v62 = vsel %vm215_vm11, %v208_v55, 920167782  ;;  %v225_v0 = vsel %vm215_vm11, %v211_v56, 1326507024  ;;  %v296_v15 = vshrl.u32 %v295_v6, 5 }
  0xba   :  { %v222_v3 = vsel %vm214_vm13, %v205_v53, %v221_v62  ;;  %v226_v4 = vsel %vm214_vm13, %v208_v55, %v225_v0  ;;  %v219_v11 = vsel %vm213_vm12, %v216_v57, %v218_v61  ;;  %v297_v23 = vand.u32 31, %v295_v6 }
  0xbb   :  { %v223_v13 = vsel %vm213_vm12, %v220_v59, %v222_v3  ;;  %v227_v14 = vsel %vm213_vm12, %v224_v60, %v226_v4  ;;  %v235_v25 = vmul.u32 %v4763_v28, %v219_v11  ;;  %vm315_vm15 = vcmp.lt.s32.totalorder %v296_v15, 1 }
  0xbc   :  { %v4784_v17 = vmul.u32.u64.low %v4763_v28, %v227_v14  ;;  %v4785_v18 = vmul.u32.u64.high %v4763_v28, %v227_v14, %v4784_v17  ;;  %v4788_v19 = vmul.u32.u64.low %v4763_v28, %v223_v13  ;;  %v4789_v21 = vmul.u32.u64.high %v4763_v28, %v223_v13, %v4788_v19  ;;  %v4826_v13 = vpop.xlane.xlu0 %55 }
  0xbd   :  { %vm318_vm0 = vcmp.lt.s32.totalorder %v296_v15, 4  ;;  %v298_v27 = vsub.s32 32, %v297_v23  ;;  %v300_v29 = vshll.u32 %v4584_v32, %v297_v23  ;;  %v303_v31 = vshll.u32 %v4585_v34, %v297_v23 }
  0xbe   :  { %v306_v33 = vshll.u32 %v4586_v36, %v297_v23  ;;  %vm237_vm3 = vc.u32 %v4785_v18, %v4788_v19  ;;  %v238_v35 = vadd.s32 1, %v4789_v21  ;;  %v309_v37 = vshll.u32 %v4587_v38, %v297_v23 }
  0xbf   :  { %v299_v28 = vshrl.u32 %v4584_v32, %v298_v27  ;;  %v301_v39 = vshrl.u32 %v4585_v34, %v298_v27  ;;  %v304_v41 = vshrl.u32 %v4586_v36, %v298_v27  ;;  %v307_v42 = vshrl.u32 %v4587_v38, %v298_v27 }
  0xc0   :  { %v239_v43 = vsel %vm237_vm3, %v238_v35, %v4789_v21  ;;  %v310_v44 = vshrl.u32 %v4588_v40, %v298_v27  ;;  %v312_v45 = vshll.u32 %v4588_v40, %v297_v23  ;;  %v313_v46 = vshrl.u32 %v4589_v49, %v298_v27  ;;  %v4412_v21 = vpop.eup %4411 }
  0xc1   :  { %v240_v47 = vadd.s32 %v239_v43, %v235_v25  ;;  %v302_v48 = vor.u32 %v301_v39, %v300_v29  ;;  %v305_v50 = vor.u32 %v304_v41, %v303_v31  ;;  %v308_v51 = vor.u32 %v307_v42, %v306_v33 }
  0xc2   :  { %v311_v52 = vor.u32 %v310_v44, %v309_v37  ;;  %v314_v53 = vor.u32 %v313_v46, %v312_v45  ;;  %vm316_vm5 = vcmp.lt.s32.totalorder %v296_v15, 2  ;;  %vm317_vm6 = vcmp.lt.s32.totalorder %v296_v15, 3 }
  0xc3   :  { %v241_v54 = vadd.s32 536870912, %v240_v47  ;;  %v320_v55 = vsel %vm318_vm0, %v308_v51, 2102212464  ;;  %v323_v56 = vsel %vm315_vm15, %v302_v48, %v305_v50  ;;  %v398_v57 = vsel %vm397_vm4, %v396_v9, 0 }
  0xc4   :  { %v319_v58 = vsel %vm315_vm15, %v299_v28, %v302_v48  ;;  %v324_v59 = vsel %vm318_vm0, %v311_v52, 920167782  ;;  %v327_v60 = vsel %vm315_vm15, %v305_v50, %v308_v51  ;;  %v328_v61 = vsel %vm318_vm0, %v314_v53, 1326507024 }
  0xc5   :  { %v4822_v62 = vshrl.u32 %v241_v54, 30  ;;  %v321_v0 = vsel %vm317_vm6, %v305_v50, %v320_v55  ;;  %v325_v3 = vsel %vm317_vm6, %v308_v51, %v324_v59  ;;  %v329_v4 = vsel %vm317_vm6, %v311_v52, %v328_v61 }
  0xc6   :  { %v326_v6 = vsel %vm316_vm5, %v323_v56, %v325_v3  ;;  %v330_v11 = vsel %vm316_vm5, %v327_v60, %v329_v4  ;;  %v322_v23 = vsel %vm316_vm5, %v319_v58, %v321_v0  ;;  %v400_v29 = vand.u32 31, %v398_v57 }
  0xc7   :  { %v243_v9 = vshll.u32 %v4822_v62, 30  ;;  %v4830_v14 = vmul.u32.u64.low %v4798_v26, %v330_v11  ;;  %v4831_v17 = vmul.u32.u64.high %v4798_v26, %v330_v11, %v4830_v14  ;;  %v4840_v31 = vshrl.u32 %v133_v22, 7 }
  0xc8   :  { %v4835_v25 = vmul.u32.u64.low %v4798_v26, %v326_v6  ;;  %v4836_v27 = vmul.u32.u64.high %v4798_v26, %v326_v6, %v4835_v25  ;;  %v394_v35 = vor.u32 8388608, %v4795_v24  ;;  %v4845_v37 = vshrl.u32 %v398_v57, 5 }
  0xc9   :  { %v4842_v33 = vsub.s32 %v240_v47, %v243_v9  ;;  %v89_v28 = vand.u32 2147483648, %v4778_v1  ;;  %4413 = vrsqrt.f32 %v4826_v13  ;;  %v401_v15 = vsub.s32 32, %v400_v29 }
  0xca   :  { %v403_v39 = vshll.u32 %v4584_v32, %v400_v29  ;;  %v85_v41 = vmul.f32 %v4412_v21, %v4778_v1  ;;  %v338_v43 = vmul.u32 %v4798_v26, %v322_v23  ;;  %vm340_vm7 = vc.u32 %v4831_v17, %v4835_v25 }
  0xcb   :  { %v246_v42 = vsub.s32 0, %v4842_v33  ;;  %v341_v24 = vadd.s32 1, %v4836_v27  ;;  %v404_v44 = vshrl.u32 %v4585_v34, %v401_v15  ;;  %v406_v45 = vshll.u32 %v4585_v34, %v400_v29 }
  0xcc   :  { %v407_v46 = vshrl.u32 %v4586_v36, %v401_v15  ;;  %v236_v47 = vadd.s32 %v4788_v19, %v4785_v18  ;;  %vm418_vm9 = vcmp.lt.s32.totalorder %v4845_v37, 1  ;;  %v4864_v26 = vshll.u32 %v394_v35, 8 }
  0xcd   :  { %v3690_v48 = vmin.u32 %v246_v42, %v4842_v33  ;;  %v342_v50 = vsel %vm340_vm7, %v341_v24, %v4836_v27  ;;  %v402_v51 = vshrl.u32 %v4584_v32, %v401_v15  ;;  %v405_v52 = vor.u32 %v404_v44, %v403_v39 }
  0xce   :  { %v409_v53 = vshll.u32 %v4586_v36, %v400_v29  ;;  %v343_v55 = vadd.s32 %v342_v50, %v338_v43  ;;  %v410_v56 = vshrl.u32 %v4587_v38, %v401_v15  ;;  %v412_v57 = vshll.u32 %v4587_v38, %v400_v29 }
  0xcf   :  { %v248_v54 = vclz %v3690_v48  ;;  %vm88_vm10 = vcmp.eq.f32.partialorder %v4778_v1, 0.0  ;;  %v408_v18 = vor.u32 %v407_v46, %v406_v45  ;;  %v413_v19 = vshrl.u32 %v4588_v40, %v401_v15  ;;  %v113_v46 = vld [vmem:[%s6144_s3 + $0x1] sm:$0x1] }
  0xd0   :  { %v415_v58 = vshll.u32 %v4588_v40, %v400_v29  ;;  %v416_v59 = vshrl.u32 %v4589_v49, %v401_v15  ;;  %v344_v61 = vadd.s32 536870912, %v343_v55  ;;  %v411_v0 = vor.u32 %v410_v56, %v409_v53 }
  0xd1   :  { %v3691_v60 = vadd.s32 4294967294, %v248_v54  ;;  %vm421_vm11 = vcmp.lt.s32.totalorder %v4845_v37, 4  ;;  %v414_v3 = vor.u32 %v413_v19, %v412_v57  ;;  %vm419_vm12 = vcmp.lt.s32.totalorder %v4845_v37, 2  ;;  %v4913_v57 = vpop.xlane.xlu1 %58 }
  0xd2   :  { %v417_v4 = vor.u32 %v416_v59, %v415_v58  ;;  %vm420_vm13 = vcmp.lt.s32.totalorder %v4845_v37, 3  ;;  %v4878_v6 = vshrl.u32 %v344_v61, 30  ;;  %v422_v11 = vsel %vm418_vm9, %v402_v51, %v405_v52 }
  0xd3   :  { %vm3692_vm14 = vcmp.lt.s32.totalorder %v3691_v60, 0  ;;  %v423_v9 = vsel %vm421_vm11, %v411_v0, 2102212464  ;;  %v426_v21 = vsel %vm418_vm9, %v405_v52, %v408_v18  ;;  %v427_v23 = vsel %vm421_vm11, %v414_v3, 920167782 }
  0xd4   :  { %v251_v14 = vsel %vm3692_vm14, 0, %v3691_v60  ;;  %v431_v27 = vsel %vm421_vm11, %v417_v4, 1326507024  ;;  %v346_v15 = vshll.u32 %v4878_v6, 30  ;;  %v430_v39 = vsel %vm418_vm9, %v408_v18, %v411_v0 }
  0xd5   :  { %v252_v29 = vsub.s32 32, %v251_v14  ;;  %v256_v35 = vsub.s32 4294967266, %v251_v14  ;;  %v253_v42 = vshll.u32 %v4842_v33, %v251_v14  ;;  %v424_v43 = vsel %vm420_vm13, %v408_v18, %v423_v9 }
  0xd6   :  { %v428_v24 = vsel %vm420_vm13, %v411_v0, %v427_v23  ;;  %v432_v44 = vsel %vm420_vm13, %v414_v3, %v431_v27  ;;  %v4894_v45 = vpop.eup %4413  ;;  %v4899_v51 = vsub.s32 %v343_v55, %v346_v15  ;;  %v87_v52 = vsel %vm86_vm8, %v4778_v1, %v85_v41 }
  0xd7   :  { %v254_v48 = vshrl.u32 %v236_v47, %v252_v29  ;;  %v257_v50 = vadd.s32 127, %v256_v35  ;;  %v429_v33 = vsel %vm419_vm12, %v426_v21, %v428_v24  ;;  %v433_v53 = vsel %vm419_vm12, %v430_v39, %v432_v44  ;;  %v4918_v47 = vld [vmem:[%s6144_s3] ss:$0 sm:$0xff] }
  0xd8   :  { %v4909_v54 = vmul.u32.u64.low %v4864_v26, %v429_v33  ;;  %v4910_v56 = vmul.u32.u64.high %v4864_v26, %v429_v33, %v4909_v54  ;;  %v349_v19 = vsub.s32 0, %v4899_v51  ;;  %v425_v41 = vsel %vm419_vm12, %v422_v11, %v424_v43 }
  0xd9   :  { %v255_v55 = vor.u32 %v254_v48, %v253_v42  ;;  %v258_v18 = vshll.u32 %v257_v50, 23  ;;  %v114_v58 = vsub.f32 0.0, %v113_v46  ;;  %v135_v59 = vsub.s32 0, %v4840_v31 }
  0xda   :  { %v4925_v60 = vmul.u32.u64.low %v4864_v26, %v433_v53  ;;  %v4926_v61 = vmul.u32.u64.high %v4864_v26, %v433_v53, %v4925_v60  ;;  %v3694_v3 = vmin.u32 %v349_v19, %v4899_v51  ;;  %v4933_v4 = vsel %vm88_vm10, %v89_v28, %v87_v52 }
  0xdb   :  { %v259_v0 = vor.u32 4788187, %v258_v18  ;;  %4415 = vrsqrt.f32 %v4913_v57  ;;  %v119_v37 = vsub.f32 %v4737_v63, %v4918_v47  ;;  %v441_v11 = vmul.u32 %v4864_v26, %v425_v41 }
  0xdc   :  { %v444_v9 = vadd.s32 1, %v4910_v56  ;;  %v262_v21 = vcvt.s32.f32 %v255_v55  ;;  %v351_v23 = vclz %v3694_v3  ;;  %v4940_v27 = vrot.slane %v114_v58, %v135_v59  ;;  %v4974_v59 = vpop.xlane.xlu0 %61 }
  0xdd   :  { %v260_v14 = vand.u32 2147483647, %v259_v0  ;;  %v120_v29 = vsub.f32 %v4747_v10, %v4918_v47  ;;  %vm443_vm15 = vc.u32 %v4926_v61, %v4909_v54  ;;  %v168_v1 = vmul.f32 3.1415927, %v4933_v4 }
  0xde   :  { %v96_v28 = vand.u32 2147483648, %v4826_v13  ;;  %v3695_v15 = vadd.s32 4294967294, %v351_v23  ;;  %v445_v26 = vsel %vm443_vm15, %v444_v9, %v4910_v56  ;;  %v126_v39 = vmul.f32 %v119_v37, %v119_v37 }
  0xdf   :  { %v263_v35 = vmul.f32 %v262_v21, %v260_v14  ;;  %v121_v42 = vsub.f32 %v4740_v2, %v4918_v47  ;;  %v446_v43 = vadd.s32 %v445_v26, %v441_v11  ;;  %v4951_v24 = vmul.f32 0.2, %v168_v1 }
  0xe0   :  { %vm93_vm0 = vcmp.eq.f32.partialorder %v4826_v13, inf  ;;  %vm4956_vm3 = vcmp.le.f32.partialorder %v180_v7, 0.7853982  ;;  %vm182_vm4 = vcmp.lt.s32.totalorder %v4742_v5, 0  ;;  %vm3696_vm5 = vcmp.lt.s32.totalorder %v3695_v15, 0 }
  0xe1   :  { %v264_v46 = vxor.u32 2147483648, %v263_v35  ;;  %v266_v48 = vsub.s32 4, %v4822_v62  ;;  %v127_v50 = vmul.f32 %v120_v29, %v120_v29  ;;  %v354_v33 = vsel %vm3696_vm5, 0, %v3695_v15 }
  0xe2   :  { %v447_v52 = vadd.s32 536870912, %v446_v43  ;;  %v339_v56 = vadd.s32 %v4835_v25, %v4831_v17  ;;  %v355_v55 = vsub.s32 32, %v354_v33  ;;  %v359_v7 = vsub.s32 4294967266, %v354_v33 }
  0xe3   :  { %v265_v53 = vsel %vm182_vm4, %v264_v46, %v263_v35  ;;  %vm95_vm6 = vcmp.eq.f32.partialorder %v4826_v13, 0.0  ;;  %v137_v18 = vmul.f32 %v4940_v27, %v126_v39  ;;  %v492_v58 = vand.u32 2139095040, %v4951_v24 }
  0xe4   :  { %v268_v19 = vsel %vm4956_vm3, %v4742_v5, %v265_v53  ;;  %v4971_v41 = vshrl.u32 %v447_v52, 30  ;;  %v356_v60 = vshll.u32 %v4899_v51, %v354_v33  ;;  %v357_v17 = vshrl.u32 %v339_v56, %v355_v55 }
  0xe5   :  { %4417 = vcosq.f32 %v268_v19  ;;  %v360_v25 = vadd.s32 127, %v359_v7  ;;  %v267_v0 = vsel %vm182_vm4, %v266_v48, %v4822_v62  ;;  %v493_v37 = vshrl.u32 %v492_v58, 23 }
  0xe6   :  { %4419 = vsinq.f32 %v268_v19  ;;  %v449_v3 = vshll.u32 %v4971_v41, 30  ;;  %v138_v11 = vmul.f32 %v4940_v27, %v127_v50  ;;  %v358_v9 = vor.u32 %v357_v17, %v356_v60 }
  0xe7   :  { %v361_v14 = vshll.u32 %v360_v25, 23  ;;  %v369_v21 = vsub.s32 4, %v4878_v6  ;;  %v92_v23 = vmul.f32 %v4894_v45, %v4826_v13  ;;  %4421 = vrsqrt.f32 %v4974_v59 }
  0xe8   :  { %v4986_v51 = vsub.s32 %v446_v43, %v449_v3  ;;  %v3701_v29 = vadd.s32 4294967169, %v493_v37  ;;  %v4416_v1 = vpop.eup %4415  ;;  %v144_v62 = vmul.f32 1.442695, %v137_v18  ;;  %v269_v35 = vsel %vm4956_vm3, 0, %v267_v0 }
  0xe9   :  { %v362_v15 = vor.u32 4788187, %v361_v14  ;;  %v4990_v26 = vmul.f32 %v121_v42, %v121_v42  ;;  %vm285_vm7 = vcmp.lt.s32.totalorder %v4754_v16, 0  ;;  %v489_v46 = vand.u32 2147483647, %v4951_v24 }
  0xea   :  { %v452_v39 = vsub.s32 0, %v4986_v51  ;;  %v499_v45 = vadd.s32 1, %v3701_v29  ;;  %v146_v48 = vmul.f32 1.442695, %v138_v11  ;;  %v365_v43 = vcvt.s32.f32 %v358_v9  ;;  %v3737_v29 = vld [vmem:[%s6147_s6 + $0x1] ss:$0 sm:$0xff] }
  0xeb   :  { %v363_v50 = vand.u32 2147483647, %v362_v15  ;;  %v370_v33 = vsel %vm285_vm7, %v369_v21, %v4878_v6  ;;  %v4999_v44 = vmul.f32 %v4416_v1, %v4913_v57  ;;  %v94_v42 = vsel %vm93_vm0, %v4826_v13, %v92_v23 }
  0xec   :  { %v273_v52 = vand.u32 3, %v269_v35  ;;  %v3698_v53 = vmin.u32 %v452_v39, %v4986_v51  ;;  %4423 = vpow2.f32 %v144_v62  ;;  %vm5009_vm8 = vcmp.le.f32.partialorder %v283_v20, 0.7853982 }
  0xed   :  { %v366_v6 = vmul.f32 %v365_v43, %v363_v50  ;;  %vm500_vm9 = vcmp.gt.s32.totalorder %v499_v45, 0  ;;  %v372_v7 = vsel %vm5009_vm8, 0, %v370_v33  ;;  %v5017_v19 = vand.u32 8388607, %v489_v46 }
  0xee   :  { %v454_v18 = vclz %v3698_v53  ;;  %v501_v58 = vsel %vm500_vm9, %v499_v45, 0  ;;  %vm272_vm10 = vweird.f32 %v4742_v5  ;;  %4425 = vpow2.f32 %v146_v48 }
  0xef   :  { %v367_v17 = vxor.u32 2147483648, %v366_v6  ;;  %v503_v20 = vand.u32 31, %v501_v58  ;;  %v5024_v25 = vsel %vm95_vm6, %v96_v28, %v94_v42  ;;  %vm274_vm11 = vcmp.lt.s32.totalorder %v273_v52, 2 }
  0xf0   :  { %v5005_v56 = vpop.f32.mrf.mxu1  ;;  %vm275_vm12 = vcmp.eq.s32.totalorder %v273_v52, 0  ;;  %vm278_vm13 = vcmp.eq.s32.totalorder %v273_v52, 2  ;;  %v3699_v0 = vadd.s32 4294967294, %v454_v18  ;;  %v5028_v37 = vand.u32 3, %v372_v7 }
  0xf1   :  { %v368_v3 = vsel %vm285_vm7, %v367_v17, %v366_v6  ;;  %v442_v11 = vadd.s32 %v4909_v54, %v4926_v61  ;;  %v504_v9 = vsub.s32 32, %v503_v20  ;;  %v497_v28 = vor.u32 8388608, %v5017_v19 }
  0xf2   :  { %v4022_v60 = vpop.f32.mrf.mxu1  ;;  %v4418_v14 = vpop.eup %4417  ;;  %v371_v13 = vsel %vm5009_vm8, %v4754_v16, %v368_v3  ;;  %vm3700_vm14 = vcmp.lt.s32.totalorder %v3699_v0, 0  ;;  %v5037_v21 = vmul.f32 3.1415927, %v5024_v25  ;;  %v5042_v61 = vshrl.u32 %v501_v58, 5 }
  0xf3   :  { %v4420_v23 = vpop.eup %4419  ;;  %v279_v1 = vxor.u32 2147483648, %v4418_v14  ;;  %4427 = vcosq.f32 %v371_v13  ;;  %v457_v54 = vsel %vm3700_vm14, 0, %v3699_v0  ;;  %vm158_vm15 = vcmp.lt.f32.partialorder %v4737_v63, 5.0 }
  0xf4   :  { %v276_v62 = vxor.u32 2147483648, %v4420_v23  ;;  %4429 = vsinq.f32 %v371_v13  ;;  %v458_v35 = vsub.s32 32, %v457_v54  ;;  %v506_v15 = vshll.u32 %v4584_v32, %v503_v20  ;;  %v5046_v39 = vpop.eup %4421 }
  0xf5   :  { %v280_v48 = vsel %vm278_vm13, %v279_v1, %v4420_v23  ;;  %vm1003_vm0 = vcmask 130048   ;;  %v462_v50 = vsub.s32 4294967266, %v457_v54  ;;  %v507_v43 = vshrl.u32 %v4585_v34, %v504_v9 }
  0xf6   :  { %v509_v33 = vshll.u32 %v4585_v34, %v503_v20  ;;  %v277_v53 = vsel %vm275_vm12, %v4418_v14, %v276_v62  ;;  %v459_v55 = vshll.u32 %v4986_v51, %v457_v54  ;;  %v460_v6 = vshrl.u32 %v442_v11, %v458_v35 }
  0xf7   :  { %v281_v18 = vsel %vm274_vm11, %v277_v53, %v280_v48  ;;  %v463_v58 = vadd.s32 127, %v462_v50  ;;  %v510_v60 = vshrl.u32 %v4586_v36, %v504_v9  ;;  %v512_v17 = vshll.u32 %v4586_v36, %v503_v20 }
  0xf8   :  { %v1293_v45 = vpop.f32.mrf.mxu1  ;;  %v282_v3 = vsel %vm272_vm10, nan, %v281_v18  ;;  %v461_v13 = vor.u32 %v460_v6, %v459_v55  ;;  %v505_v23 = vshrl.u32 %v4584_v32, %v504_v9  ;;  %v508_v51 = vor.u32 %v507_v43, %v506_v15 }
  0xf9   :  { %v5051_v42 = vadd.f32 %v3737_v29, %v1293_v45  ;;  %v901_v14 = vadd.f32 1.0, %v282_v3  ;;  %v464_v29 = vshll.u32 %v463_v58, 23  ;;  %v513_v11 = vshrl.u32 %v4587_v38, %v504_v9  ;;  %v4424_v52 = vpop.eup %4423 }
  0xfa   :  { %v4033_v7 = vpop.f32.mrf.mxu1  ;;  %vm381_vm3 = vcmp.eq.s32.totalorder %v5028_v37, 2  ;;  %vm388_vm4 = vcmp.lt.s32.totalorder %v4749_v12, 0  ;;  %v511_v54 = vor.u32 %v510_v60, %v509_v33  ;;  %v515_v62 = vshll.u32 %v4587_v38, %v503_v20 }
  0xfb   :  { %v1298_v0 = vand.u32 2147483647, %v5051_v42  ;;  %v516_v5 = vshrl.u32 %v4588_v40, %v504_v9  ;;  %v908_v35 = vmul.f32 0.5, %v901_v14  ;;  %vm378_vm5 = vcmp.eq.s32.totalorder %v5028_v37, 0  ;;  %v5075_v43 = vpop.eup %4425 }
  0xfc   :  { %vm5070_vm6 = vcmp.le.f32.partialorder %v386_v30, 0.7853982  ;;  %v465_v45 = vor.u32 4788187, %v464_v29  ;;  %v468_v48 = vcvt.s32.f32 %v461_v13  ;;  %v518_v50 = vshll.u32 %v4588_v40, %v503_v20 }
  0xfd   :  { %v1299_v1 = vsub.f32 0.0, %v1298_v0  ;;  %v514_v53 = vor.u32 %v513_v11, %v512_v17  ;;  %v517_v55 = vor.u32 %v516_v5, %v515_v62  ;;  %v519_v6 = vshrl.u32 %v4589_v49, %v504_v9 }
  0xfe   :  { %vm100_vm7 = vcmp.eq.f32.partialorder %v4913_v57, inf  ;;  %v915_v7 = vsel %vm158_vm15, %v908_v35, 0.0  ;;  %vm375_vm8 = vweird.f32 %v4754_v16  ;;  %v466_v30 = vand.u32 2147483647, %v465_v45 }
  0xff   :  { %v1300_v33 = vmul.f32 1.442695, %v1299_v1  ;;  %vm521_vm9 = vcmp.lt.s32.totalorder %v5042_v61, 1  ;;  %vm523_vm10 = vcmp.lt.s32.totalorder %v5042_v61, 3  ;;  %v5084_v20 = vmul.f32 %v4424_v52, %v915_v7 }
 0x100   :  { %v520_v18 = vor.u32 %v519_v6, %v518_v50  ;;  %vm524_vm11 = vcmp.lt.s32.totalorder %v5042_v61, 4  ;;  %v469_v58 = vmul.f32 %v468_v48, %v466_v30  ;;  %vm522_vm12 = vcmp.lt.s32.totalorder %v5042_v61, 2  ;;  %v4428_v60 = vpop.eup %4427 }
 0x101   :  { %4431 = vpow2.f32 %v1300_v33  ;;  %v526_v9 = vsel %vm524_vm11, %v514_v53, 2102212464  ;;  %v537_v63 = vshll.u32 %v497_v28, 8  ;;  %3992 = vmatmul.mubr.msk.f32.vlgmr.msra.gmra.mxu0 %vm1003_vm0, %v5084_v20  ;;  %v529_v17 = vsel %vm521_vm9, %v508_v51, %v511_v54  ;;  %v4430_v14 = vpop.eup %4429 }
 0x102   :  { %v530_v0 = vsel %vm524_vm11, %v517_v55, 920167782  ;;  %v533_v3 = vsel %vm521_vm9, %v511_v54, %v514_v53  ;;  %v534_v13 = vsel %vm524_vm11, %v520_v18, 1326507024  ;;  %3994 = vmatprep.mubr.msk.f32.mxu0 %vm4582_vm1, %v4581_v8  ;;  %v382_v29 = vxor.u32 2147483648, %v4428_v60 }
 0x103   :  { %v470_v11 = vxor.u32 2147483648, %v469_v58  ;;  %v531_v19 = vsel %vm523_vm10, %v514_v53, %v530_v0  ;;  %v5101_v28 = vmul.f32 0.2, %v5037_v21  ;;  %vm102_vm13 = vcmp.eq.f32.partialorder %v4913_v57, 0.0 }
 0x104   :  { %v379_v52 = vxor.u32 2147483648, %v4430_v14  ;;  %v525_v1 = vsel %vm521_vm9, %v505_v23, %v508_v51  ;;  %v527_v62 = vsel %vm523_vm10, %v511_v54, %v526_v9  ;;  %v535_v5 = vsel %vm523_vm10, %v517_v55, %v534_v13 }
 0x105   :  { %v383_v35 = vsel %vm381_vm3, %v382_v29, %v4430_v14  ;;  %v471_v45 = vsel %vm388_vm4, %v470_v11, %v469_v58  ;;  %v532_v21 = vsel %vm522_vm12, %v529_v17, %v531_v19  ;;  %v536_v48 = vsel %vm522_vm12, %v533_v3, %v535_v5 }
 0x106   :  { %vm377_vm14 = vcmp.lt.s32.totalorder %v5028_v37, 2  ;;  %v380_v23 = vsel %vm378_vm5, %v4428_v60, %v379_v52  ;;  %v472_v51 = vsub.s32 4, %v4971_v41  ;;  %v474_v54 = vsel %vm5070_vm6, %v4749_v12, %v471_v45  ;;  %v950_v52 = vpop.permute.xlu1 %949 }
 0x107   :  { %v384_v50 = vsel %vm377_vm14, %v380_v23, %v383_v35  ;;  %4433 = vcosq.f32 %v474_v54  ;;  %v5125_v33 = vmul.u32.u64.low %v537_v63, %v536_v48  ;;  %v5126_v53 = vmul.u32.u64.high %v537_v63, %v536_v48, %v5125_v33 }
 0x108   :  { %v385_v55 = vsel %vm375_vm8, nan, %v384_v50  ;;  %v528_v6 = vsel %vm522_vm12, %v525_v1, %v527_v62  ;;  %v5132_v7 = vmul.u32.u64.low %v537_v63, %v532_v21  ;;  %v5133_v37 = vmul.u32.u64.high %v537_v63, %v532_v21, %v5132_v7 }
 0x109   :  { %v103_v30 = vand.u32 2147483648, %v4913_v57  ;;  %v902_v18 = vadd.f32 1.0, %v385_v55  ;;  %4435 = vsinq.f32 %v474_v54  ;;  %v595_v58 = vand.u32 2139095040, %v5101_v28 }
 0x10a   :  { %v101_v9 = vsel %vm100_vm7, %v4913_v57, %v4999_v44  ;;  %v139_v16 = vmul.f32 %v4940_v27, %v4990_v26  ;;  %v473_v61 = vsel %vm388_vm4, %v472_v51, %v4971_v41  ;;  %v5148_v60 = vand.u32 127, %v133_v22 }
 0x10b   :  { %v909_v17 = vmul.f32 0.5, %v902_v18  ;;  %v544_v0 = vmul.u32 %v537_v63, %v528_v6  ;;  %vm546_vm15 = vc.u32 %v5126_v53, %v5132_v7  ;;  %v596_v3 = vshrl.u32 %v595_v58, 23 }
 0x10c   :  { %v106_v13 = vmul.f32 %v5046_v39, %v4974_v59  ;;  %vm159_vm3 = vcmp.lt.f32.partialorder %v4747_v10, 5.0  ;;  %v122_v26 = vsub.f32 %v4933_v4, %v4918_v47  ;;  %v547_v44 = vadd.s32 1, %v5133_v37 }
 0x10d   :  { %v916_v14 = vsel %vm159_vm3, %v909_v17, 0.0  ;;  %v475_v22 = vsel %vm5070_vm6, 0, %v473_v61  ;;  %v592_v63 = vand.u32 2147483647, %v5101_v28  ;;  %v3705_v29 = vadd.s32 4294967169, %v596_v3 }
 0x10e   :  { %v4432_v41 = vpop.eup %4431  ;;  %v5162_v19 = vmul.f32 %v5075_v43, %v916_v14  ;;  %v148_v39 = vmul.f32 1.442695, %v139_v16  ;;  %v548_v10 = vsel %vm546_vm15, %v547_v44, %v5133_v37  ;;  %vm107_vm4 = vcmp.eq.f32.partialorder %v4974_v59, inf }
 0x10f   :  { %v1302_v11 = vadd.f32 1.0, %v4432_v41  ;;  %v549_v1 = vadd.s32 %v548_v10, %v544_v0  ;;  %v602_v62 = vadd.s32 1, %v3705_v29  ;;  %v5168_v5 = vsel %vm102_vm13, %v103_v30, %v101_v9 }
 0x110   :  { %3995 = vmatmul.mubr.msk.f32.gmra.mxu0 %vm1003_vm0, %v5162_v19  ;;  %v479_v15 = vand.u32 3, %v475_v22  ;;  %vm969_vm5 = vcmp.eq.s32.totalorder %v5148_v60, %v950_v52  ;;  %v129_v43 = vmul.f32 %v122_v26, %v122_v26  ;;  %v110_v35 = vand.u32 2147483648, %v4974_v59 }
 0x111   :  { %4437 = vlog2.f32 %v1302_v11  ;;  %3997 = vmatprep.mubr.msk.f32.mxu0 %vm4582_vm1, %v4581_v8  ;;  %v550_v45 = vadd.s32 536870912, %v549_v1  ;;  %v599_v21 = vand.u32 8388607, %v592_v63  ;;  %vm603_vm6 = vcmp.gt.s32.totalorder %v602_v62, 0 }
 0x112   :  { %v5179_v57 = vsel %vm107_vm4, %v4974_v59, %v106_v13  ;;  %4439 = vpow2.f32 %v148_v39  ;;  %v604_v48 = vsel %vm603_vm6, %v602_v62, 0  ;;  %v170_v23 = vmul.f32 3.1415927, %v5168_v5 }
 0x113   :  { %vm478_vm7 = vweird.f32 %v4749_v12  ;;  %v5184_v51 = vsel %vm969_vm5, 1.0, %v4581_v8  ;;  %v5186_v54 = vshrl.u32 %v550_v45, 30  ;;  %v606_v50 = vand.u32 31, %v604_v48 }
 0x114   :  { %v4434_v33 = vpop.eup %4433  ;;  %vm480_vm8 = vcmp.lt.s32.totalorder %v479_v15, 2  ;;  %vm481_vm9 = vcmp.eq.s32.totalorder %v479_v15, 0  ;;  %v5189_v55 = vmul.f32 %v4940_v27, %v129_v43  ;;  %v5193_v6 = vsub.f32 %v5024_v25, %v4918_v47 }
 0x115   :  { %v485_v37 = vxor.u32 2147483648, %v4434_v33  ;;  %v552_v30 = vshll.u32 %v5186_v54, 30  ;;  %v600_v18 = vor.u32 8388608, %v599_v21  ;;  %v607_v58 = vsub.s32 32, %v606_v50  ;;  %v956_v21 = vpop.permute.xlu1 %955 }
 0x116   :  { %v4436_v9 = vpop.eup %4435  ;;  %v1297_v16 = vmax.f32 %v5051_v42, 0.0  ;;  %vm484_vm10 = vcmp.eq.s32.totalorder %v479_v15, 2  ;;  %v5199_v61 = vadd.s32 %v5132_v7, %v5126_v53  ;;  %v5201_v17 = vmul.f32 0.2, %v170_v23 }
 0x117   :  { %vm160_vm11 = vcmp.lt.f32.partialorder %v4740_v2, 5.0  ;;  %v482_v0 = vxor.u32 2147483648, %v4436_v9  ;;  %v486_v47 = vsel %vm484_vm10, %v485_v37, %v4436_v9  ;;  %v5204_v3 = vsub.s32 %v549_v1, %v552_v30 }
 0x118   :  { %v609_v13 = vshll.u32 %v4584_v32, %v606_v50  ;;  %v610_v26 = vshrl.u32 %v4585_v34, %v607_v58  ;;  %v612_v44 = vshll.u32 %v4585_v34, %v606_v50  ;;  %v613_v42 = vshrl.u32 %v4586_v36, %v607_v58 }
 0x119   :  { %v618_v41 = vshll.u32 %v4587_v38, %v606_v50  ;;  %v483_v53 = vsel %vm481_vm9, %v4434_v33, %v482_v0  ;;  %v555_v7 = vsub.s32 0, %v5204_v3  ;;  %v605_v14 = vshrl.u32 %v604_v48, 5 }
 0x11a   :  { %v5213_v22 = vshll.u32 %v600_v18, 8  ;;  %v487_v29 = vsel %vm480_vm8, %v483_v53, %v486_v47  ;;  %v615_v11 = vshll.u32 %v4586_v36, %v606_v50  ;;  %v616_v39 = vshrl.u32 %v4587_v38, %v607_v58 }
 0x11b   :  { %v619_v10 = vshrl.u32 %v4588_v40, %v607_v58  ;;  %v488_v52 = vsel %vm478_vm7, nan, %v487_v29  ;;  %v3702_v1 = vmin.u32 %v555_v7, %v5204_v3  ;;  %v608_v62 = vshrl.u32 %v4584_v32, %v607_v58 }
 0x11c   :  { %v698_v43 = vand.u32 2139095040, %v5201_v17  ;;  %v903_v45 = vadd.f32 1.0, %v488_v52  ;;  %v611_v48 = vor.u32 %v610_v26, %v609_v13  ;;  %v614_v15 = vor.u32 %v613_v42, %v612_v44 }
 0x11d   :  { %v620_v23 = vor.u32 %v619_v10, %v618_v41  ;;  %v557_v37 = vclz %v3702_v1  ;;  %vm971_vm12 = vcmp.eq.s32.totalorder %v5148_v60, %v956_v21  ;;  %v621_v30 = vshll.u32 %v4588_v40, %v606_v50 }
 0x11e   :  { %v4438_v33 = vpop.eup %4437  ;;  %v622_v12 = vshrl.u32 %v4589_v49, %v607_v58  ;;  %vm624_vm13 = vcmp.lt.s32.totalorder %v605_v14, 1  ;;  %vm109_vm14 = vcmp.eq.f32.partialorder %v4974_v59, 0.0  ;;  %v910_v9 = vmul.f32 0.5, %v903_v45 }
 0x11f   :  { %v1304_v18 = vmul.f32 0.6931472, %v4438_v33  ;;  %v617_v0 = vor.u32 %v616_v39, %v615_v11  ;;  %vm625_vm15 = vcmp.lt.s32.totalorder %v605_v14, 2  ;;  %v4440_v47 = vpop.eup %4439  ;;  %v3703_v53 = vadd.s32 4294967294, %v557_v37 }
 0x120   :  { %v623_v13 = vor.u32 %v622_v12, %v621_v30  ;;  %vm626_vm3 = vcmp.lt.s32.totalorder %v605_v14, 3  ;;  %vm627_vm4 = vcmp.lt.s32.totalorder %v605_v14, 4  ;;  %v917_v44 = vsel %vm160_vm11, %v910_v9, 0.0 }
 0x121   :  { %v1305_v26 = vadd.f32 %v1304_v18, %v1297_v16  ;;  %v629_v50 = vsel %vm627_vm4, %v617_v0, 2102212464  ;;  %v632_v58 = vsel %vm624_vm13, %v611_v48, %v614_v15  ;;  %v5232_v42 = vmul.f32 %v4440_v47, %v917_v44 }
 0x122   :  { %vm3704_vm5 = vcmp.lt.s32.totalorder %v3703_v53, 0  ;;  %v633_v41 = vsel %vm627_vm4, %v620_v23, 920167782  ;;  %v699_v7 = vshrl.u32 %v698_v43, 23  ;;  %v628_v39 = vsel %vm624_vm13, %v608_v62, %v611_v48 }
 0x123   :  { %v3739_v29 = vadd.f32 -0.6931472, %v1305_v26  ;;  %v560_v11 = vsel %vm3704_vm5, 0, %v3703_v53  ;;  %v634_v10 = vsel %vm626_vm3, %v617_v0, %v633_v41  ;;  %3998 = vmatmul.mubr.msk.f32.gmra.mxu0 %vm1003_vm0, %v5232_v42  ;;  %v630_v52 = vsel %vm626_vm3, %v614_v15, %v629_v50 }
 0x124   :  { %v561_v2 = vsub.s32 32, %v560_v11  ;;  %v565_v16 = vsub.s32 4294967266, %v560_v11  ;;  %v635_v1 = vsel %vm625_vm15, %v632_v58, %v634_v10  ;;  %4000 = vmatprep.mubr.msk.f32.mxu0 %vm4582_vm1, %v4581_v8  ;;  %v636_v43 = vsel %vm624_vm13, %v614_v15, %v617_v0 }
 0x125   :  { %v637_v45 = vsel %vm627_vm4, %v623_v13, 1326507024  ;;  %v5246_v62 = vmul.u32.u64.low %v5213_v22, %v635_v1  ;;  %v5247_v48 = vmul.u32.u64.high %v5213_v22, %v635_v1, %v5246_v62  ;;  %4035 = vmatpush3.msra.mxu1 %v3739_v29  ;;  %v562_v33 = vshll.u32 %v5204_v3, %v560_v11 }
 0x126   :  { %v563_v37 = vshrl.u32 %v5199_v61, %v561_v2  ;;  %v566_v30 = vadd.s32 127, %v565_v16  ;;  %v638_v12 = vsel %vm626_vm3, %v620_v23, %v637_v45  ;;  %4096 = vmatprep.subr.mxu1 %v4581_v8  ;;  %v150_v18 = vmul.f32 1.442695, %v5189_v55 }
 0x127   :  { %v631_v15 = vsel %vm625_vm15, %v628_v39, %v630_v52  ;;  %v639_v9 = vsel %vm625_vm15, %v636_v43, %v638_v12  ;;  %v3709_v0 = vadd.s32 4294967169, %v699_v7  ;;  %v5264_v61 = vsel %vm971_vm12, 1.0, %v4581_v8 }
 0x128   :  { %v564_v47 = vor.u32 %v563_v37, %v562_v33  ;;  %v567_v53 = vshll.u32 %v566_v30, 23  ;;  %v5258_v13 = vmul.u32.u64.low %v5213_v22, %v639_v9  ;;  %v5259_v26 = vmul.u32.u64.high %v5213_v22, %v639_v9, %v5258_v13 }
 0x129   :  { %v130_v3 = vmul.f32 %v5193_v6, %v5193_v6  ;;  %v650_v55 = vadd.s32 1, %v5247_v48  ;;  %v705_v23 = vadd.s32 1, %v3709_v0  ;;  %v647_v44 = vmul.u32 %v5213_v22, %v631_v15 }
 0x12a   :  { %v568_v14 = vor.u32 4788187, %v567_v53  ;;  %v695_v50 = vand.u32 2147483647, %v5201_v17  ;;  %v5276_v58 = vsel %vm109_vm14, %v110_v35, %v5179_v57  ;;  %4441 = vpow2.f32 %v150_v18 }
 0x12b   :  { %vm5280_vm6 = vcmp.le.f32.partialorder %v489_v46, 0.7853982  ;;  %vm491_vm7 = vcmp.lt.s32.totalorder %v4951_v24, 0  ;;  %vm706_vm8 = vcmp.gt.s32.totalorder %v705_v23, 0  ;;  %v571_v21 = vcvt.s32.f32 %v564_v47 }
 0x12c   :  { %v569_v22 = vand.u32 2147483647, %v568_v14  ;;  %vm649_vm9 = vc.u32 %v5259_v26, %v5246_v62  ;;  %v707_v41 = vsel %vm706_vm8, %v705_v23, 0  ;;  %v141_v59 = vmul.f32 %v4940_v27, %v130_v3 }
 0x12d   :  { %v651_v35 = vsel %vm649_vm9, %v650_v55, %v5247_v48  ;;  %v709_v57 = vand.u32 31, %v707_v41  ;;  %v171_v7 = vmul.f32 3.1415927, %v5276_v58  ;;  %v575_v29 = vsub.s32 4, %v5186_v54 }
 0x12e   :  { %v572_v46 = vmul.f32 %v571_v21, %v569_v22  ;;  %v652_v11 = vadd.s32 %v651_v35, %v647_v44  ;;  %v702_v39 = vand.u32 8388607, %v695_v50  ;;  %v708_v10 = vshrl.u32 %v707_v41, 5  ;;  %v959_v41 = vpop.permute.xlu1 %958 }
 0x12f   :  { %v710_v2 = vsub.s32 32, %v709_v57  ;;  %v712_v16 = vshll.u32 %v4584_v32, %v709_v57  ;;  %v715_v52 = vshll.u32 %v4585_v34, %v709_v57  ;;  %v718_v45 = vshll.u32 %v4586_v36, %v709_v57 }
 0x130   :  { %v573_v1 = vxor.u32 2147483648, %v572_v46  ;;  %v653_v43 = vadd.s32 536870912, %v652_v11  ;;  %v721_v48 = vshll.u32 %v4587_v38, %v709_v57  ;;  %v724_v12 = vshll.u32 %v4588_v40, %v709_v57 }
 0x131   :  { %v713_v33 = vshrl.u32 %v4585_v34, %v710_v2  ;;  %v716_v37 = vshrl.u32 %v4586_v36, %v710_v2  ;;  %v719_v30 = vshrl.u32 %v4587_v38, %v710_v2  ;;  %v722_v9 = vshrl.u32 %v4588_v40, %v710_v2 }
 0x132   :  { %v574_v18 = vsel %vm491_vm7, %v573_v1, %v572_v46  ;;  %v5303_v15 = vshrl.u32 %v653_v43, 30  ;;  %v725_v0 = vshrl.u32 %v4589_v49, %v710_v2  ;;  %v576_v47 = vsel %vm491_vm7, %v575_v29, %v5186_v54 }
 0x133   :  { %v577_v53 = vsel %vm5280_vm6, %v4951_v24, %v574_v18  ;;  %v703_v13 = vor.u32 8388608, %v702_v39  ;;  %v714_v3 = vor.u32 %v713_v33, %v712_v16  ;;  %v717_v23 = vor.u32 %v716_v37, %v715_v52 }
 0x134   :  { %4443 = vcosq.f32 %v577_v53  ;;  %v655_v55 = vshll.u32 %v5303_v15, 30  ;;  %v723_v14 = vor.u32 %v722_v9, %v721_v48  ;;  %v720_v44 = vor.u32 %v719_v30, %v718_v45 }
 0x135   :  { %4445 = vsinq.f32 %v577_v53  ;;  %v726_v22 = vor.u32 %v725_v0, %v724_v12  ;;  %vm727_vm10 = vcmp.lt.s32.totalorder %v708_v10, 1  ;;  %v711_v54 = vshrl.u32 %v4584_v32, %v710_v2  ;;  %v5348_v53 = vpop.permute.xlu1 %961 }
 0x136   :  { %v5314_v21 = vsub.s32 %v652_v11, %v655_v55  ;;  %vm729_vm11 = vcmp.lt.s32.totalorder %v708_v10, 3  ;;  %vm730_vm12 = vcmp.lt.s32.totalorder %v708_v10, 4  ;;  %v578_v35 = vsel %vm5280_vm6, 0, %v576_v47 }
 0x137   :  { %vm972_vm13 = vcmp.eq.s32.totalorder %v5148_v60, %v959_v41  ;;  %v732_v57 = vsel %vm730_vm12, %v720_v44, 2102212464  ;;  %v5320_v46 = vshll.u32 %v703_v13, 8  ;;  %v5322_v29 = vpop.eup %4441  ;;  %vm728_vm14 = vcmp.lt.s32.totalorder %v708_v10, 2 }
 0x138   :  { %v658_v39 = vsub.s32 0, %v5314_v21  ;;  %v735_v11 = vsel %vm727_vm10, %v714_v3, %v717_v23  ;;  %v736_v16 = vsel %vm730_vm12, %v723_v14, 920167782  ;;  %v739_v52 = vsel %vm727_vm10, %v717_v23, %v720_v44 }
 0x139   :  { %v737_v2 = vsel %vm729_vm11, %v720_v44, %v736_v16  ;;  %v740_v1 = vsel %vm730_vm12, %v726_v22, 1326507024  ;;  %v5328_v6 = vmul.f32 0.2, %v171_v7  ;;  %v582_v43 = vand.u32 3, %v578_v35 }
 0x13a   :  { %v3706_v45 = vmin.u32 %v658_v39, %v5314_v21  ;;  %v731_v48 = vsel %vm727_vm10, %v711_v54, %v714_v3  ;;  %v733_v33 = vsel %vm729_vm11, %v717_v23, %v732_v57  ;;  %v5333_v37 = vmul.f32 1.442695, %v141_v59  ;;  %v953_v59 = vpop.permute.xlu0 %952 }
 0x13b   :  { %v5338_v30 = vsel %vm972_vm13, 1.0, %v4581_v8  ;;  %v738_v12 = vsel %vm728_vm14, %v735_v11, %v737_v2  ;;  %v741_v18 = vsel %vm729_vm11, %v723_v14, %v740_v1  ;;  %v734_v13 = vsel %vm728_vm14, %v731_v48, %v733_v33 }
 0x13c   :  { %v660_v7 = vclz %v3706_v45  ;;  %v742_v9 = vsel %vm728_vm14, %v739_v52, %v741_v18  ;;  %v5344_v0 = vmul.u32.u64.low %v5320_v46, %v738_v12  ;;  %v5345_v47 = vmul.u32.u64.high %v5320_v46, %v738_v12, %v5344_v0  ;;  %v965_v52 = vpop.permute.xlu1 %964 }
 0x13d   :  { %v5352_v3 = vmul.u32.u64.low %v5320_v46, %v742_v9  ;;  %v5353_v55 = vmul.u32.u64.high %v5320_v46, %v742_v9, %v5352_v3  ;;  %v801_v23 = vand.u32 2139095040, %v5328_v6  ;;  %vm581_vm15 = vweird.f32 %v4951_v24 }
 0x13e   :  { %vm584_vm3 = vcmp.eq.s32.totalorder %v582_v43, 0  ;;  %v3707_v14 = vadd.s32 4294967294, %v660_v7  ;;  %vm973_vm4 = vcmp.eq.s32.totalorder %v5148_v60, %v5348_v53  ;;  %vm1307_vm5 = vcmask 64512  }
 0x13f   :  { %vm587_vm6 = vcmp.eq.s32.totalorder %v582_v43, 2  ;;  %v648_v44 = vadd.s32 %v5246_v62, %v5259_v26  ;;  %v802_v10 = vshrl.u32 %v801_v23, 23  ;;  %4037 = vmatmul.mubr.msk.f32.vlgmr.msra.gmra.mxu1 %vm1307_vm5, %v5184_v51  ;;  %vm970_vm7 = vcmp.eq.s32.totalorder %v5148_v60, %v953_v59 }
 0x140   :  { %vm3708_vm8 = vcmp.lt.s32.totalorder %v3707_v14, 0  ;;  %v750_v22 = vmul.u32 %v5320_v46, %v734_v13  ;;  %v753_v41 = vadd.s32 1, %v5345_v47  ;;  %v5367_v54 = vsel %vm970_vm7, 1.0, %v4581_v8  ;;  %4039 = vmatprep.mubr.msk.f32.mxu1 %vm4582_vm1, %v4581_v8  ;;  %v968_v24 = vpop.permute.xlu1 %967 }
 0x141   :  { %v4444_v35 = vpop.eup %4443  ;;  %v663_v57 = vsel %vm3708_vm8, 0, %v3707_v14  ;;  %vm752_vm9 = vc.u32 %v5353_v55, %v5344_v0  ;;  %v798_v62 = vand.u32 2147483647, %v5328_v6  ;;  %v3713_v26 = vadd.s32 4294967169, %v802_v10 }
 0x142   :  { %v4446_v39 = vpop.eup %4445  ;;  %v588_v11 = vxor.u32 2147483648, %v4444_v35  ;;  %v664_v16 = vsub.s32 32, %v663_v57  ;;  %v668_v46 = vsub.s32 4294967266, %v663_v57  ;;  %v678_v2 = vsub.s32 4, %v5303_v15 }
 0x143   :  { %vm161_vm10 = vcmp.lt.f32.partialorder %v4933_v4, 5.0  ;;  %v585_v1 = vxor.u32 2147483648, %v4446_v39  ;;  %v665_v45 = vshll.u32 %v5314_v21, %v663_v57  ;;  %v754_v48 = vsel %vm752_vm9, %v753_v41, %v5345_v47  ;;  %4040 = vmatmul.mubr.msk.f32.gmra.mxu1 %vm1307_vm5, %v5367_v54 }
 0x144   :  { %v808_v33 = vadd.s32 1, %v3713_v26  ;;  %v589_v12 = vsel %vm587_vm6, %v588_v11, %v4446_v39  ;;  %v666_v18 = vshrl.u32 %v648_v44, %v664_v16  ;;  %v669_v7 = vadd.s32 127, %v668_v46  ;;  %4042 = vmatprep.mubr.msk.f32.mxu1 %vm4582_vm1, %v4581_v8 }
 0x145   :  { %v755_v9 = vadd.s32 %v754_v48, %v750_v22  ;;  %vm583_vm11 = vcmp.lt.s32.totalorder %v582_v43, 2  ;;  %v586_v59 = vsel %vm584_vm3, %v4444_v35, %v585_v1  ;;  %vm974_vm13 = vcmp.eq.s32.totalorder %v5148_v60, %v965_v52 }
 0x146   :  { %vm809_vm12 = vcmp.gt.s32.totalorder %v808_v33, 0  ;;  %v590_v21 = vsel %vm583_vm11, %v586_v59, %v589_v12  ;;  %v667_v47 = vor.u32 %v666_v18, %v665_v45  ;;  %v670_v13 = vshll.u32 %v669_v7, 23 }
 0x147   :  { %v756_v3 = vadd.s32 536870912, %v755_v9  ;;  %v591_v23 = vsel %vm581_vm15, nan, %v590_v21  ;;  %vm594_vm14 = vcmp.lt.s32.totalorder %v5101_v28, 0  ;;  %v805_v14 = vand.u32 8388607, %v798_v62  ;;  %4043 = vmatmul.mubr.msk.f32.gmra.mxu1 %vm1307_vm5, %v5264_v61 }
 0x148   :  { %v810_v44 = vsel %vm809_vm12, %v808_v33, 0  ;;  %v904_v43 = vadd.f32 1.0, %v591_v23  ;;  %v671_v10 = vor.u32 4788187, %v670_v13  ;;  %v5395_v22 = vsel %vm594_vm14, %v678_v2, %v5303_v15  ;;  %4045 = vmatprep.mubr.msk.f32.mxu1 %vm4582_vm1, %v4581_v8 }
 0x149   :  { %v5397_v41 = vshrl.u32 %v756_v3, 30  ;;  %vm5403_vm15 = vcmp.le.f32.partialorder %v592_v63, 0.7853982  ;;  %v5411_v57 = vsel %vm973_vm4, 1.0, %v4581_v8  ;;  %v812_v15 = vand.u32 31, %v810_v44 }
 0x14a   :  { %v5416_v26 = vsel %vm974_vm13, 1.0, %v4581_v8  ;;  %v911_v39 = vmul.f32 0.5, %v904_v43  ;;  %v672_v11 = vand.u32 2147483647, %v671_v10  ;;  %v674_v16 = vcvt.s32.f32 %v667_v47 }
 0x14b   :  { %v758_v63 = vshll.u32 %v5397_v41, 30  ;;  %v681_v46 = vsel %vm5403_vm15, 0, %v5395_v22  ;;  %v806_v2 = vor.u32 8388608, %v805_v14  ;;  %v813_v1 = vsub.s32 32, %v812_v15  ;;  %4046 = vmatmul.mubr.msk.f32.gmra.mxu1 %vm1307_vm5, %v5338_v30 }
 0x14c   :  { %vm975_vm3 = vcmp.eq.s32.totalorder %v5148_v60, %v968_v24  ;;  %v918_v53 = vsel %vm161_vm10, %v911_v39, 0.0  ;;  %v675_v52 = vmul.f32 %v674_v16, %v672_v11  ;;  %v815_v48 = vshll.u32 %v4584_v32, %v812_v15  ;;  %4048 = vmatprep.mubr.msk.f32.mxu1 %vm4582_vm1, %v4581_v8 }
 0x14d   :  { %v5427_v45 = vsub.s32 %v755_v9, %v758_v63  ;;  %v5433_v33 = vmul.f32 %v5322_v29, %v918_v53  ;;  %v816_v12 = vshrl.u32 %v4585_v34, %v813_v1  ;;  %v818_v60 = vshll.u32 %v4585_v34, %v812_v15 }
 0x14e   :  { %v821_v18 = vshll.u32 %v4586_v36, %v812_v15  ;;  %v676_v7 = vxor.u32 2147483648, %v675_v52  ;;  %v819_v9 = vshrl.u32 %v4586_v36, %v813_v1  ;;  %v5441_v59 = vsel %vm975_vm3, 1.0, %v4581_v8 }
 0x14f   :  { %v761_v4 = vsub.s32 0, %v5427_v45  ;;  %4001 = vmatmul.mubr.msk.f32.gmra.mxu0 %vm1003_vm0, %v5433_v33  ;;  %v811_v21 = vshrl.u32 %v810_v44, 5  ;;  %v822_v29 = vshrl.u32 %v4587_v38, %v813_v1  ;;  %v824_v47 = vshll.u32 %v4587_v38, %v812_v15  ;;  %4049 = vmatmul.mubr.msk.f32.gmra.mxu1 %vm1307_vm5, %v5411_v57 }
 0x150   :  { %v825_v34 = vshrl.u32 %v4588_v40, %v813_v1  ;;  %4003 = vmatprep.mubr.msk.f32.mxu0 %vm4582_vm1, %v4581_v8  ;;  %v677_v13 = vsel %vm594_vm14, %v676_v7, %v675_v52  ;;  %v814_v3 = vshrl.u32 %v4584_v32, %v813_v1  ;;  %v846_v23 = vshll.u32 %v806_v2, 8  ;;  %4051 = vmatprep.mubr.msk.f32.mxu1 %vm4582_vm1, %v4581_v8 }
 0x151   :  { %v3710_v36 = vmin.u32 %v761_v4, %v5427_v45  ;;  %v680_v38 = vsel %vm5403_vm15, %v5101_v28, %v677_v13  ;;  %v817_v14 = vor.u32 %v816_v12, %v815_v48  ;;  %v820_v44 = vor.u32 %v819_v9, %v818_v60 }
 0x152   :  { %v823_v43 = vor.u32 %v822_v29, %v821_v18  ;;  %4447 = vcosq.f32 %v680_v38  ;;  %v826_v24 = vor.u32 %v825_v34, %v824_v47  ;;  %v827_v39 = vshll.u32 %v4588_v40, %v812_v15 }
 0x153   :  { %v763_v10 = vclz %v3710_v36  ;;  %4449 = vsinq.f32 %v680_v38  ;;  %v828_v32 = vshrl.u32 %v4589_v49, %v813_v1  ;;  %vm830_vm4 = vcmp.lt.s32.totalorder %v811_v21, 1  ;;  %4052 = vmatmul.mubr.msk.f32.gmra.mxu1 %vm1307_vm5, %v5416_v26 }
 0x154   :  { %vm831_vm6 = vcmp.lt.s32.totalorder %v811_v21, 2  ;;  %vm832_vm7 = vcmp.lt.s32.totalorder %v811_v21, 3  ;;  %vm833_vm8 = vcmp.lt.s32.totalorder %v811_v21, 4  ;;  %v834_v16 = vsel %vm830_vm4, %v814_v3, %v817_v14  ;;  %4054 = vmatprep.mubr.msk.f32.mxu1 %vm4582_vm1, %v4581_v8 }
 0x155   :  { %v3711_v11 = vadd.s32 4294967294, %v763_v10  ;;  %v829_v63 = vor.u32 %v828_v32, %v827_v39  ;;  %v835_v2 = vsel %vm833_vm8, %v823_v43, 2102212464  ;;  %v838_v53 = vsel %vm830_vm4, %v817_v14, %v820_v44 }
 0x156   :  { %v839_v52 = vsel %vm833_vm8, %v826_v24, 920167782  ;;  %v836_v40 = vsel %vm832_vm7, %v820_v44, %v835_v2  ;;  %v842_v15 = vsel %vm830_vm4, %v820_v44, %v823_v43  ;;  %v751_v1 = vadd.s32 %v5344_v0, %v5353_v55  ;;  %v5499_v2 = vld [vmem:[%s6144_s3] ss:$0 sm:$0xff] }
 0x157   :  { %vm3712_vm9 = vcmp.lt.s32.totalorder %v3711_v11, 0  ;;  %v840_v49 = vsel %vm832_vm7, %v823_v43, %v839_v52  ;;  %v843_v60 = vsel %vm833_vm8, %v829_v63, 1326507024  ;;  %v837_v4 = vsel %vm831_vm6, %v834_v16, %v836_v40  ;;  %4055 = vmatmul.mubr.msk.f32.gmra.mxu1 %vm1307_vm5, %v5441_v59 }
 0x158   :  { %v766_v48 = vsel %vm3712_vm9, 0, %v3711_v11  ;;  %v841_v12 = vsel %vm831_vm6, %v838_v53, %v840_v49  ;;  %v844_v9 = vsel %vm832_vm7, %v826_v24, %v843_v60  ;;  %4104 = vmatprep.mubr.msk.f32.mxu1 %vm4582_vm1, %v4581_v8  ;;  %v853_v44 = vmul.u32 %v846_v23, %v837_v4 }
 0x159   :  { %v767_v18 = vsub.s32 32, %v766_v48  ;;  %v771_v7 = vsub.s32 4294967266, %v766_v48  ;;  %v768_v29 = vshll.u32 %v5427_v45, %v766_v48  ;;  %v845_v47 = vsel %vm831_vm6, %v842_v15, %v844_v9 }
 0x15a   :  { %v5478_v34 = vmul.u32.u64.low %v846_v23, %v841_v12  ;;  %v5479_v13 = vmul.u32.u64.high %v846_v23, %v841_v12, %v5478_v34  ;;  %v5484_v36 = vmul.u32.u64.low %v846_v23, %v845_v47  ;;  %v5485_v3 = vmul.u32.u64.high %v846_v23, %v845_v47, %v5484_v36 }
 0x15b   :  { %v769_v0 = vshrl.u32 %v751_v1, %v767_v18  ;;  %v772_v55 = vadd.s32 127, %v771_v7  ;;  %4451 = vpow2.f32 %v5333_v37  ;;  %v685_v45 = vand.u32 3, %v681_v46 }
 0x15c   :  { %v856_v21 = vadd.s32 1, %v5479_v13  ;;  %vm855_vm10 = vc.u32 %v5485_v3, %v5478_v34  ;;  %v124_v53 = vsub.f32 %v5168_v5, %v5499_v2  ;;  %vm684_vm14 = vweird.f32 %v5101_v28 }
 0x15d   :  { %v770_v38 = vor.u32 %v769_v0, %v768_v29  ;;  %v773_v14 = vshll.u32 %v772_v55, 23  ;;  %vm690_vm11 = vcmp.eq.s32.totalorder %v685_v45, 2  ;;  %vm687_vm12 = vcmp.eq.s32.totalorder %v685_v45, 0 }
 0x15e   :  { %v857_v24 = vsel %vm855_vm10, %v856_v21, %v5479_v13  ;;  %vm686_vm13 = vcmp.lt.s32.totalorder %v685_v45, 2  ;;  %vm697_vm15 = vcmp.lt.s32.totalorder %v5201_v17, 0  ;;  %vm5509_vm3 = vcmp.le.f32.partialorder %v695_v50, 0.7853982 }
 0x15f   :  { %v774_v43 = vor.u32 4788187, %v773_v14  ;;  %v4448_v10 = vpop.eup %4447  ;;  %v777_v23 = vcvt.s32.f32 %v770_v38  ;;  %v858_v16 = vadd.s32 %v857_v24, %v853_v44  ;;  %v131_v28 = vmul.f32 %v124_v53, %v124_v53 }
 0x160   :  { %v4450_v39 = vpop.eup %4449  ;;  %v691_v32 = vxor.u32 2147483648, %v4448_v10  ;;  %vm162_vm4 = vcmp.lt.f32.partialorder %v5024_v25, 5.0  ;;  %v781_v50 = vsub.s32 4, %v5397_v41  ;;  %vm787_vm10 = vweird.f32 %v5201_v17 }
 0x161   :  { %v775_v11 = vand.u32 2147483647, %v774_v43  ;;  %v688_v37 = vxor.u32 2147483648, %v4450_v39  ;;  %v859_v46 = vadd.s32 536870912, %v858_v16  ;;  %v142_v0 = vmul.f32 %v4940_v27, %v131_v28 }
 0x162   :  { %v692_v35 = vsel %vm690_vm11, %v691_v32, %v4450_v39  ;;  %v782_v36 = vsel %vm697_vm15, %v781_v50, %v5397_v41  ;;  %v854_v43 = vadd.s32 %v5478_v34, %v5485_v3  ;;  %vm163_vm11 = vcmp.lt.f32.partialorder %v5168_v5, 5.0 }
 0x163   :  { %v778_v22 = vmul.f32 %v777_v23, %v775_v11  ;;  %v689_v63 = vsel %vm687_vm12, %v4448_v10, %v688_v37  ;;  %v5504_v49 = vshrl.u32 %v859_v46, 30  ;;  %v154_v38 = vmul.f32 1.442695, %v142_v0 }
 0x164   :  { %v693_v52 = vsel %vm686_vm13, %v689_v63, %v692_v35  ;;  %v784_v14 = vsel %vm5509_vm3, 0, %v782_v36  ;;  %vm800_vm12 = vcmp.lt.s32.totalorder %v5328_v6, 0  ;;  %vm799_vm13 = vcmp.le.f32.partialorder %v798_v62, 0.7853982 }
 0x165   :  { %v779_v40 = vxor.u32 2147483648, %v778_v22  ;;  %v694_v15 = vsel %vm684_vm14, nan, %v693_v52  ;;  %v861_v60 = vshll.u32 %v5504_v49, 30  ;;  %v788_v45 = vand.u32 3, %v784_v14 }
 0x166   :  { %v905_v1 = vadd.f32 1.0, %v694_v15 }
 0x167   :  { %v780_v12 = vsel %vm697_vm15, %v779_v40, %v778_v22  ;;  %v862_v4 = vsub.s32 %v858_v16, %v861_v60  ;;  %vm793_vm7 = vcmp.eq.s32.totalorder %v788_v45, 2  ;;  %vm790_vm8 = vcmp.eq.s32.totalorder %v788_v45, 0 }
 0x168   :  { %v783_v18 = vsel %vm5509_vm3, %v5201_v17, %v780_v12  ;;  %v912_v7 = vmul.f32 0.5, %v905_v1  ;;  %v4452_v9 = vpop.eup %4451  ;;  %vm789_vm9 = vcmp.lt.s32.totalorder %v788_v45, 2  ;;  %v125_v12 = vsub.f32 %v5276_v58, %v5499_v2 }
 0x169   :  { %4453 = vcosq.f32 %v783_v18  ;;  %v864_v47 = vsub.s32 0, %v862_v4  ;;  %v884_v2 = vsub.s32 4, %v5504_v49 }
 0x16a   :  { %4455 = vsinq.f32 %v783_v18  ;;  %v919_v29 = vsel %vm162_vm4, %v912_v7, 0.0  ;;  %vm890_vm4 = vweird.f32 %v5328_v6 }
 0x16b   :  { %v5521_v13 = vmul.f32 %v4452_v9, %v919_v29  ;;  %v3714_v55 = vmin.u32 %v864_v47, %v862_v4  ;;  %4457 = vpow2.f32 %v154_v38  ;;  %v885_v9 = vsel %vm800_vm12, %v884_v2, %v5504_v49 }
 0x16c   :  { %v887_v62 = vsel %vm799_vm13, 0, %v885_v9 }
 0x16d   :  { %4004 = vmatmul.mubr.msk.f32.gmra.mxu0 %vm1003_vm0, %v5521_v13  ;;  %v866_v25 = vclz %v3714_v55  ;;  %v891_v47 = vand.u32 3, %v887_v62 }
 0x16e   :  { %4006 = vmatprep.mubr.msk.f32.mxu0 %vm4582_vm1, %v4581_v8 }
 0x16f   :  { %v3715_v44 = vadd.s32 4294967294, %v866_v25  ;;  %vm896_vm14 = vcmp.eq.s32.totalorder %v891_v47, 2  ;;  %vm893_vm15 = vcmp.eq.s32.totalorder %v891_v47, 0  ;;  %vm892_vm3 = vcmp.lt.s32.totalorder %v891_v47, 2 }
 0x171   :  { %vm3716_vm6 = vcmp.lt.s32.totalorder %v3715_v44, 0 }
 0x172   :  { %v869_v21 = vsel %vm3716_vm6, 0, %v3715_v44  ;;  %vm164_vm6 = vcmp.lt.f32.partialorder %v5276_v58, 5.0 }
 0x173   :  { %v870_v10 = vsub.s32 32, %v869_v21  ;;  %v874_v24 = vsub.s32 4294967266, %v869_v21  ;;  %v871_v11 = vshll.u32 %v862_v4, %v869_v21  ;;  %v132_v4 = vmul.f32 %v125_v12, %v125_v12 }
 0x175   :  { %v872_v23 = vshrl.u32 %v854_v43, %v870_v10  ;;  %v875_v16 = vadd.s32 127, %v874_v24  ;;  %v143_v50 = vmul.f32 %v4940_v27, %v132_v4 }
 0x176   :  { %v4454_v39 = vpop.eup %4453 }
 0x177   :  { %v4456_v41 = vpop.eup %4455  ;;  %v794_v32 = vxor.u32 2147483648, %v4454_v39  ;;  %v873_v22 = vor.u32 %v872_v23, %v871_v11  ;;  %v876_v46 = vshll.u32 %v875_v16, 23  ;;  %v156_v29 = vmul.f32 1.442695, %v143_v50 }
 0x178   :  { %v791_v37 = vxor.u32 2147483648, %v4456_v41  ;;  %v4458_v60 = vpop.eup %4457 }
 0x179   :  { %v795_v35 = vsel %vm793_vm7, %v794_v32, %v4456_v41  ;;  %v877_v34 = vor.u32 4788187, %v876_v46  ;;  %v880_v15 = vcvt.s32.f32 %v873_v22 }
 0x17a   :  { %v792_v63 = vsel %vm790_vm8, %v4454_v39, %v791_v37  ;;  %vm1436_vm8 = vcmask 457728  }
 0x17b   :  { %v796_v53 = vsel %vm789_vm9, %v792_v63, %v795_v35  ;;  %v878_v40 = vand.u32 2147483647, %v877_v34 }
 0x17c   :  { %v797_v3 = vsel %vm787_vm10, nan, %v796_v53 }
 0x17d   :  { %v906_v52 = vadd.f32 1.0, %v797_v3  ;;  %v881_v48 = vmul.f32 %v880_v15, %v878_v40 }
 0x17f   :  { %v913_v1 = vmul.f32 0.5, %v906_v52  ;;  %v882_v18 = vxor.u32 2147483648, %v881_v48 }
 0x181   :  { %v920_v28 = vsel %vm163_vm11, %v913_v1, 0.0  ;;  %v883_v17 = vsel %vm800_vm12, %v882_v18, %v881_v48 }
 0x182   :  { %v5539_v7 = vmul.f32 %v4458_v60, %v920_v28  ;;  %v886_v5 = vsel %vm799_vm13, %v5328_v6, %v883_v17 }
 0x183   :  { %4459 = vcosq.f32 %v886_v5 }
 0x184   :  { %4007 = vmatmul.mubr.msk.f32.gmra.mxu0 %vm1003_vm0, %v5539_v7  ;;  %4461 = vsinq.f32 %v886_v5 }
 0x185   :  { %4009 = vmatprep.mubr.msk.f32.mxu0 %vm4582_vm1, %v4581_v8  ;;  %4463 = vpow2.f32 %v156_v29 }
 0x190   :  { %v4460_v0 = vpop.eup %4459 }
 0x191   :  { %v4462_v55 = vpop.eup %4461  ;;  %v897_v36 = vxor.u32 2147483648, %v4460_v0 }
 0x192   :  { %v894_v25 = vxor.u32 2147483648, %v4462_v55  ;;  %v4464_v49 = vpop.eup %4463 }
 0x193   :  { %v898_v38 = vsel %vm896_vm14, %v897_v36, %v4462_v55  ;;  %v1523_v36 = vld [vmem:[%s6146_s5 + $0x60] sm:$0xff] }
 0x194   :  { %v895_v14 = vsel %vm893_vm15, %v4460_v0, %v894_v25  ;;  %v3717_v0 = vld [vmem:[%s6142_s1] ss:$0 sm:$0xff]  ;;  %v1522_v25 = vld [vmem:[%s6146_s5 + $0x58] sm:$0xff] }
 0x195   :  { %v899_v44 = vsel %vm892_vm3, %v895_v14, %v898_v38  ;;  %vm936_vm7 = vcmp.eq.s32.totalorder %v4840_v31, %v3717_v0  ;;  %v1524_v31 = vld [vmem:[%s6146_s5 + $0x68] sm:$0xff]  ;;  %v1521_v38 = vld [vmem:[%s6146_s5 + $0x50] sm:$0xff]  ;;  %v3734_v14 = vld [vmem:[%s6147_s6] ss:$0 sm:$0xff] }
 0x196   :  { %v900_v45 = vsel %vm890_vm4, nan, %v899_v44  ;;  %v5570_v55 = vsel %vm936_vm7, 1.0, %v4581_v8  ;;  %v1205_v44 = vadd.f32 %v3734_v14, %v5005_v56  ;;  %v1709_v0 = vld [vmem:[%s6146_s5 + $0x88] sm:$0xff] }
 0x197   :  { %v907_v27 = vadd.f32 1.0, %v900_v45  ;;  %4097 = vmatpush3.msra.mxu1 %v1709_v0 }
 0x198   :  { %v1209_v45 = vand.u32 2147483647, %v1205_v44  ;;  %4098 = vmatprep.subr.mxu1 %v4581_v8 }
 0x199   :  { %v914_v21 = vmul.f32 0.5, %v907_v27 }
 0x19a   :  { %v1210_v27 = vsub.f32 0.0, %v1209_v45 }
 0x19b   :  { %v921_v43 = vsel %vm164_vm6, %v914_v21, 0.0 }
 0x19c   :  { %v5554_v10 = vmul.f32 %v4464_v49, %v921_v43  ;;  %v1211_v21 = vmul.f32 1.442695, %v1210_v27 }
 0x19e   :  { %4010 = vmatmul.mubr.msk.f32.gmra.mxu0 %vm1003_vm0, %v5554_v10  ;;  %4465 = vpow2.f32 %v1211_v21 }
 0x19f   :  { %4071 = vmatprep.mubr.msk.f32.mxu0 %vm4582_vm1, %v4581_v8 }
 0x1ab   :  { %v4466_v49 = vpop.eup %4465 }
 0x1ac   :  { %v1213_v43 = vadd.f32 1.0, %v4466_v49 }
 0x1ae   :  { %4467 = vlog2.f32 %v1213_v43 }
 0x1c1   :  { %v1091_v24 = vpop.f32.mrf.mxu0 }
 0x1c3   :  { %v3993_v39 = vpop.f32.mrf.mxu0 }
 0x1d0   :  { %v1096_v41 = vpop.f32.mrf.mxu0 }
 0x1d2   :  { %v3996_v6 = vpop.f32.mrf.mxu0 }
 0x1e3   :  { %v1101_v32 = vpop.f32.mrf.mxu0 }
 0x1e5   :  { %v3999_v11 = vpop.f32.mrf.mxu0 }
 0x1ff   :  { %v1395_v23 = vpop.f32.mrf.mxu1 }
 0x200   :  { %v1429_v16 = vmul.f32 %v1395_v23, %v1091_v24  ;;  %v4468_v24 = vpop.eup %4467 }
 0x201   :  { %v4038_v37 = vpop.f32.mrf.mxu1  ;;  %v1215_v39 = vmul.f32 0.6931472, %v4468_v24 }
 0x203   :  { %v1400_v58 = vpop.f32.mrf.mxu1 }
 0x204   :  { %v1430_v35 = vmul.f32 %v1400_v58, %v1096_v41  ;;  %v1208_v41 = vmax.f32 %v1205_v44, 0.0 }
 0x205   :  { %v4041_v22 = vpop.f32.mrf.mxu1 }
 0x206   :  { %v1216_v6 = vadd.f32 %v1215_v39, %v1208_v41 }
 0x207   :  { %v1405_v46 = vpop.f32.mrf.mxu1 }
 0x208   :  { %v1431_v63 = vmul.f32 %v1405_v46, %v1101_v32  ;;  %v3736_v32 = vadd.f32 -0.6931472, %v1216_v6 }
 0x209   :  { %v4044_v53 = vpop.f32.mrf.mxu1 }
 0x20b   :  { %v1410_v34 = vpop.f32.mrf.mxu1 }
 0x20d   :  { %v4047_v3 = vpop.f32.mrf.mxu1 }
 0x20f   :  { %v1106_v52 = vpop.f32.mrf.mxu0  ;;  %v1415_v15 = vpop.f32.mrf.mxu1 }
 0x210   :  { %v1432_v40 = vmul.f32 %v1410_v34, %v1106_v52  ;;  %v1616_v52 = vld [vmem:[%s6146_s5 + $0xa8] sm:$0xff] }
 0x211   :  { %v4002_v1 = vpop.f32.mrf.mxu0  ;;  %v4050_v48 = vpop.f32.mrf.mxu1 }
 0x212   :  { %v1613_v1 = vld [vmem:[%s6146_s5 + $0x90] sm:$0xff]  ;;  %v3749_v48 = vld [vmem:[%s6147_s6 + $0x2] ss:$0 sm:$0xff] }
 0x213   :  { %v1420_v12 = vpop.f32.mrf.mxu1 }
 0x215   :  { %v4053_v60 = vpop.f32.mrf.mxu1 }
 0x217   :  { %v1425_v28 = vpop.f32.mrf.mxu1 }
 0x219   :  { %v4056_v18 = vpop.f32.mrf.mxu1 }
 0x22d   :  { %v1111_v17 = vpop.f32.mrf.mxu0 }
 0x22e   :  { %v1433_v47 = vmul.f32 %v1415_v15, %v1111_v17  ;;  %v1614_v15 = vld [vmem:[%s6146_s5 + $0x98] sm:$0xff] }
 0x22f   :  { %v4005_v4 = vpop.f32.mrf.mxu0 }
 0x244   :  { %v1116_v5 = vpop.f32.mrf.mxu0 }
 0x245   :  { %v1434_v62 = vmul.f32 %v1420_v12, %v1116_v5 }
 0x246   :  { %v4008_v2 = vpop.f32.mrf.mxu0 }
 0x25e   :  { %v1121_v50 = vpop.f32.mrf.mxu0 }
 0x25f   :  { %v1435_v9 = vmul.f32 %v1425_v28, %v1121_v50 }
 0x260   :  { %v4011_v29 = vpop.f32.mrf.mxu0 }
 0x261   :  { %4058 = vmatpush3.msra.mxu0 %v1435_v9 }
 0x262   :  { %4059 = vmatprep.subr.mxu0 %v4581_v8 }
 0x263   :  { %4060 = vmatpush3.msra.mxu0 %v1434_v62 }
 0x264   :  { %4061 = vmatprep.subr.mxu0 %v4581_v8 }
 0x265   :  { %4062 = vmatpush3.msra.mxu0 %v1433_v47 }
 0x266   :  { %4063 = vmatprep.subr.mxu0 %v4581_v8 }
 0x267   :  { %4064 = vmatpush3.msra.mxu0 %v1432_v40  ;;  %v1615_v40 = vld [vmem:[%s6146_s5 + $0xa0] sm:$0xff] }
 0x268   :  { %4065 = vmatprep.subr.mxu0 %v4581_v8 }
 0x269   :  { %4066 = vmatpush3.msra.mxu0 %v1431_v63 }
 0x26a   :  { %4067 = vmatprep.subr.mxu0 %v4581_v8 }
 0x26b   :  { %4068 = vmatpush3.msra.mxu0 %v1430_v35 }
 0x26c   :  { %4069 = vmatprep.subr.mxu0 %v4581_v8 }
 0x26d   :  { %4070 = vmatpush3.msra.mxu0 %v1429_v16 }
 0x26e   :  { %4072 = vmatmul.mubr.msk.f32.vlgmr.msra.gmra.mxu0 %vm1436_vm8, %v5570_v55  ;;  %4074 = vmatprep.subr.mxu0 %v4581_v8 }
 0x26f   :  { %4082 = vmatprep.mubr.msk.f32.mxu0 %vm4582_vm1, %v4581_v8  ;;  %4075 = vmatpush3.msra.mxu0 %v1524_v31  ;;  %v1708_v31 = vld [vmem:[%s6146_s5 + $0x80] sm:$0xff] }
 0x270   :  { %4076 = vmatprep.subr.mxu0 %v4581_v8  ;;  %4099 = vmatpush3.msra.mxu1 %v1708_v31 }
 0x271   :  { %4077 = vmatpush3.msra.mxu0 %v1523_v36  ;;  %v1707_v36 = vld [vmem:[%s6146_s5 + $0x78] sm:$0xff]  ;;  %4100 = vmatprep.subr.mxu1 %v4581_v8 }
 0x272   :  { %4078 = vmatprep.subr.mxu0 %v4581_v8  ;;  %4101 = vmatpush3.msra.mxu1 %v1707_v36 }
 0x273   :  { %4079 = vmatpush3.msra.mxu0 %v1522_v25  ;;  %v1706_v25 = vld [vmem:[%s6146_s5 + $0x70] sm:$0xff]  ;;  %4102 = vmatprep.subr.mxu1 %v4581_v8 }
 0x274   :  { %4080 = vmatprep.subr.mxu0 %v4581_v8  ;;  %4103 = vmatpush3.msra.mxu1 %v1706_v25 }
 0x275   :  { %4081 = vmatpush3.msra.mxu0 %v1521_v38  ;;  %4118 = vmatprep.subr.mxu1 %v4581_v8  ;;  %v3752_v38 = vld [vmem:[%s6147_s6 + $0x4] ss:$0 sm:$0xff] }
 0x276   :  { %4085 = vmatprep.subr.mxu0 %v4581_v8 }
 0x32e   :  { %v1506_v11 = vpop.f32.mrf.mxu0 }
 0x32f   :  { %v1510_v23 = vadd.f32 %v3736_v32, %v1506_v11 }
 0x330   :  { %v4073_v16 = vpop.f32.mrf.mxu0 }
 0x331   :  { %v1512_v37 = vand.u32 2147483647, %v1510_v23  ;;  %v1511_v63 = vmax.f32 %v1510_v23, 0.0 }
 0x333   :  { %v1513_v58 = vsub.f32 0.0, %v1512_v37  ;;  %v1800_v37 = vld [vmem:[%s6146_s5 + $0xc0] sm:$0xff] }
 0x335   :  { %v1514_v35 = vmul.f32 1.442695, %v1513_v58  ;;  %v1799_v58 = vld [vmem:[%s6146_s5 + $0xb8] sm:$0xff] }
 0x337   :  { %4469 = vpow2.f32 %v1514_v35  ;;  %v1798_v35 = vld [vmem:[%s6146_s5 + $0xb0] sm:$0xff] }
 0x344   :  { %v4470_v56 = vpop.eup %4469 }
 0x345   :  { %v1516_v22 = vadd.f32 1.0, %v4470_v56  ;;  %v3755_v56 = vld [vmem:[%s6147_s6 + $0x3] ss:$0 sm:$0xff] }
 0x347   :  { %4471 = vlog2.f32 %v1516_v22 }
 0x354   :  { %v4472_v46 = vpop.eup %4471 }
 0x355   :  { %v1518_v53 = vmul.f32 0.6931472, %v4472_v46 }
 0x357   :  { %v1519_v34 = vadd.f32 %v1518_v53, %v1511_v63 }
 0x359   :  { %v3748_v3 = vadd.f32 -0.6931472, %v1519_v34 }
 0x35b   :  { %4083 = vmatmul.mubr.msk.f32.vlgmr.msra.gmra.mxu0 %vm1134_vm2, %v3748_v3 }
 0x35c   :  { %4093 = vmatprep.mubr.msk.f32.mxu0 %vm4582_vm1, %v4581_v8  ;;  %4086 = vmatpush3.msra.mxu0 %v1616_v52 }
 0x35d   :  { %4087 = vmatprep.subr.mxu0 %v4581_v8 }
 0x35e   :  { %4088 = vmatpush3.msra.mxu0 %v1615_v40 }
 0x35f   :  { %4089 = vmatprep.subr.mxu0 %v4581_v8 }
 0x360   :  { %4090 = vmatpush3.msra.mxu0 %v1614_v15 }
 0x361   :  { %4091 = vmatprep.subr.mxu0 %v4581_v8 }
 0x362   :  { %4092 = vmatpush3.msra.mxu0 %v1613_v1 }
 0x363   :  { %4107 = vmatprep.subr.mxu0 %v4581_v8 }
 0x41b   :  { %v1599_v12 = vpop.f32.mrf.mxu0 }
 0x41c   :  { %v1600_v60 = vadd.f32 %v3749_v48, %v1599_v12 }
 0x41d   :  { %v4084_v28 = vpop.f32.mrf.mxu0 }
 0x41e   :  { %v1604_v18 = vand.u32 2147483647, %v1600_v60  ;;  %v1603_v9 = vmax.f32 %v1600_v60, 0.0  ;;  %v1900_v28 = vld [vmem:[%s6146_s5 + $0xe8] sm:$0xff] }
 0x420   :  { %v1605_v17 = vsub.f32 0.0, %v1604_v18  ;;  %v1899_v18 = vld [vmem:[%s6146_s5 + $0xe0] sm:$0xff] }
 0x422   :  { %v1606_v4 = vmul.f32 1.442695, %v1605_v17  ;;  %v1898_v17 = vld [vmem:[%s6146_s5 + $0xd8] sm:$0xff] }
 0x424   :  { %4473 = vpow2.f32 %v1606_v4  ;;  %v1897_v4 = vld [vmem:[%s6146_s5 + $0xd0] sm:$0xff] }
 0x431   :  { %v4474_v5 = vpop.eup %4473 }
 0x432   :  { %v1608_v2 = vadd.f32 1.0, %v4474_v5  ;;  %v3758_v5 = vld [vmem:[%s6147_s6 + $0x5] ss:$0 sm:$0xff] }
 0x434   :  { %4475 = vlog2.f32 %v1608_v2 }
 0x441   :  { %v4476_v50 = vpop.eup %4475 }
 0x442   :  { %v1610_v29 = vmul.f32 0.6931472, %v4476_v50 }
 0x444   :  { %v1611_v62 = vadd.f32 %v1610_v29, %v1603_v9 }
 0x446   :  { %v3751_v47 = vadd.f32 -0.6931472, %v1611_v62 }
 0x448   :  { %4094 = vmatmul.mubr.msk.f32.vlgmr.msra.gmra.mxu0 %vm1134_vm2, %v3751_v47 }
 0x449   :  { %4115 = vmatprep.mubr.msk.f32.mxu0 %vm4582_vm1, %v4581_v8 }
 0x508   :  { %v1691_v14 = vpop.f32.mrf.mxu0 }
 0x509   :  { %v1692_v44 = vadd.f32 %v3752_v38, %v1691_v14 }
 0x50a   :  { %v4095_v45 = vpop.f32.mrf.mxu0 }
 0x50b   :  { %v1695_v27 = vadd.f32 %v1692_v44, %v1510_v23  ;;  %v1801_v23 = vld [vmem:[%s6146_s5 + $0xc8] sm:$0xff] }
 0x50c   :  { %4108 = vmatpush3.msra.mxu0 %v1801_v23 }
 0x50d   :  { %v1697_v21 = vand.u32 2147483647, %v1695_v27  ;;  %v1696_v6 = vmax.f32 %v1695_v27, 0.0  ;;  %4109 = vmatprep.subr.mxu0 %v4581_v8 }
 0x50e   :  { %4110 = vmatpush3.msra.mxu0 %v1800_v37 }
 0x50f   :  { %v1698_v49 = vsub.f32 0.0, %v1697_v21  ;;  %4111 = vmatprep.subr.mxu0 %v4581_v8  ;;  %v1993_v21 = vld [vmem:[%s6146_s5 + $0x100] sm:$0xff] }
 0x510   :  { %4112 = vmatpush3.msra.mxu0 %v1799_v58 }
 0x511   :  { %v1699_v43 = vmul.f32 1.442695, %v1698_v49  ;;  %4113 = vmatprep.subr.mxu0 %v4581_v8  ;;  %v1992_v49 = vld [vmem:[%s6146_s5 + $0xf8] sm:$0xff] }
 0x512   :  { %4114 = vmatpush3.msra.mxu0 %v1798_v35 }
 0x513   :  { %4477 = vpow2.f32 %v1699_v43  ;;  %4129 = vmatprep.subr.mxu0 %v4581_v8  ;;  %v1991_v43 = vld [vmem:[%s6146_s5 + $0xf0] sm:$0xff] }
 0x520   :  { %v4478_v24 = vpop.eup %4477 }
 0x521   :  { %v1701_v39 = vadd.f32 1.0, %v4478_v24  ;;  %v3761_v24 = vld [vmem:[%s6147_s6 + $0x7] ss:$0 sm:$0xff] }
 0x523   :  { %4479 = vlog2.f32 %v1701_v39  ;;  %v4558_v39 = vld [vmem:[%s6145_s4] sm:$0xff] }
 0x530   :  { %v4480_v41 = vpop.eup %4479 }
 0x531   :  { %v1703_v32 = vmul.f32 0.6931472, %v4480_v41  ;;  %v1896_v41 = vmul.f32 %v4558_v39, %v3761_v24 }
 0x533   :  { %v1704_v11 = vadd.f32 %v1703_v32, %v1696_v6  ;;  %v3763_v32 = vld [vmem:[%s6147_s6 + $0x6] ss:$0 sm:$0xff] }
 0x535   :  { %v3754_v16 = vadd.f32 -0.6931472, %v1704_v11 }
 0x537   :  { %4105 = vmatmul.mubr.msk.f32.vlgmr.msra.gmra.mxu1 %vm1134_vm2, %v3754_v16 }
 0x538   :  { %4126 = vmatprep.mubr.msk.f32.mxu1 %vm4582_vm1, %v4581_v8  ;;  %4119 = vmatpush3.msra.mxu1 %v1900_v28 }
 0x539   :  { %4120 = vmatprep.subr.mxu1 %v4581_v8 }
 0x53a   :  { %4121 = vmatpush3.msra.mxu1 %v1899_v18 }
 0x53b   :  { %4122 = vmatprep.subr.mxu1 %v4581_v8 }
 0x53c   :  { %4123 = vmatpush3.msra.mxu1 %v1898_v17 }
 0x53d   :  { %4124 = vmatprep.subr.mxu1 %v4581_v8 }
 0x53e   :  { %4125 = vmatpush3.msra.mxu1 %v1897_v4 }
 0x53f   :  { %4140 = vmatprep.subr.mxu1 %v4581_v8 }
 0x5f7   :  { %v1784_v22 = vpop.f32.mrf.mxu1 }
 0x5f8   :  { %v1785_v46 = vadd.f32 %v3755_v56, %v1784_v22 }
 0x5f9   :  { %v4106_v63 = vpop.f32.mrf.mxu1 }
 0x5fa   :  { %v1789_v53 = vand.u32 2147483647, %v1785_v46  ;;  %v1788_v1 = vmax.f32 %v1785_v46, 0.0 }
 0x5fc   :  { %v1790_v34 = vsub.f32 0.0, %v1789_v53 }
 0x5fe   :  { %v1791_v3 = vmul.f32 1.442695, %v1790_v34 }
 0x600   :  { %4481 = vpow2.f32 %v1791_v3 }
 0x60d   :  { %v4482_v52 = vpop.eup %4481 }
 0x60e   :  { %v1793_v40 = vadd.f32 1.0, %v4482_v52  ;;  %v2086_v52 = vld [vmem:[%s6146_s5 + $0x128] sm:$0xff] }
 0x610   :  { %4483 = vlog2.f32 %v1793_v40  ;;  %v2085_v40 = vld [vmem:[%s6146_s5 + $0x120] sm:$0xff] }
 0x61d   :  { %v4484_v15 = vpop.eup %4483 }
 0x61e   :  { %v1795_v48 = vmul.f32 0.6931472, %v4484_v15  ;;  %v2084_v15 = vld [vmem:[%s6146_s5 + $0x118] sm:$0xff] }
 0x620   :  { %v1796_v12 = vadd.f32 %v1795_v48, %v1788_v1  ;;  %v2083_v1 = vld [vmem:[%s6146_s5 + $0x110] sm:$0xff]  ;;  %v3765_v48 = vld [vmem:[%s6147_s6 + $0x8] ss:$0 sm:$0xff] }
 0x622   :  { %v3757_v60 = vadd.f32 -0.6931472, %v1796_v12 }
 0x624   :  { %4116 = vmatmul.mubr.msk.f32.vlgmr.msra.gmra.mxu0 %vm1134_vm2, %v3757_v60 }
 0x625   :  { %4137 = vmatprep.mubr.msk.f32.mxu0 %vm4582_vm1, %v4581_v8 }
 0x6e4   :  { %v1876_v2 = vpop.f32.mrf.mxu0 }
 0x6e5   :  { %v1877_v50 = vadd.f32 %v3758_v5, %v1876_v2 }
 0x6e6   :  { %v4117_v9 = vpop.f32.mrf.mxu0 }
 0x6e7   :  { %v1880_v29 = vadd.f32 %v1877_v50, %v1695_v27  ;;  %v1994_v27 = vld [vmem:[%s6146_s5 + $0x108] sm:$0xff] }
 0x6e8   :  { %4130 = vmatpush3.msra.mxu0 %v1994_v27 }
 0x6e9   :  { %v1882_v62 = vand.u32 2147483647, %v1880_v29  ;;  %v1881_v38 = vmax.f32 %v1880_v29, 0.0  ;;  %4131 = vmatprep.subr.mxu0 %v4581_v8 }
 0x6ea   :  { %4132 = vmatpush3.msra.mxu0 %v1993_v21 }
 0x6eb   :  { %v1883_v47 = vsub.f32 0.0, %v1882_v62  ;;  %4133 = vmatprep.subr.mxu0 %v4581_v8 }
 0x6ec   :  { %4134 = vmatpush3.msra.mxu0 %v1992_v49 }
 0x6ed   :  { %v1884_v0 = vmul.f32 1.442695, %v1883_v47  ;;  %4135 = vmatprep.subr.mxu0 %v4581_v8 }
 0x6ee   :  { %4136 = vmatpush3.msra.mxu0 %v1991_v43 }
 0x6ef   :  { %4485 = vpow2.f32 %v1884_v0  ;;  %4151 = vmatprep.subr.mxu0 %v4581_v8  ;;  %v2179_v0 = vld [vmem:[%s6146_s5 + $0x148] sm:$0xff] }
 0x6fc   :  { %v4486_v31 = vpop.eup %4485 }
 0x6fd   :  { %v1886_v36 = vadd.f32 1.0, %v4486_v31  ;;  %v2178_v31 = vld [vmem:[%s6146_s5 + $0x140] sm:$0xff] }
 0x6ff   :  { %4487 = vlog2.f32 %v1886_v36  ;;  %v2177_v36 = vld [vmem:[%s6146_s5 + $0x138] sm:$0xff] }
 0x70c   :  { %v4488_v25 = vpop.eup %4487 }
 0x70d   :  { %v1888_v14 = vmul.f32 0.6931472, %v4488_v25  ;;  %v2176_v25 = vld [vmem:[%s6146_s5 + $0x130] sm:$0xff] }
 0x70f   :  { %v1889_v44 = vadd.f32 %v1888_v14, %v1881_v38  ;;  %v3768_v38 = vld [vmem:[%s6147_s6 + $0x9] ss:$0 sm:$0xff] }
 0x711   :  { %v3760_v45 = vadd.f32 -0.6931472, %v1889_v44 }
 0x713   :  { %4127 = vmatmul.mubr.msk.f32.vlgmr.msra.gmra.mxu1 %vm1134_vm2, %v3760_v45 }
 0x714   :  { %4148 = vmatprep.mubr.msk.f32.mxu1 %vm4582_vm1, %v4581_v8  ;;  %4141 = vmatpush3.msra.mxu1 %v2086_v52 }
 0x715   :  { %4142 = vmatprep.subr.mxu1 %v4581_v8 }
 0x716   :  { %4143 = vmatpush3.msra.mxu1 %v2085_v40 }
 0x717   :  { %4144 = vmatprep.subr.mxu1 %v4581_v8 }
 0x718   :  { %4145 = vmatpush3.msra.mxu1 %v2084_v15 }
 0x719   :  { %4146 = vmatprep.subr.mxu1 %v4581_v8 }
 0x71a   :  { %4147 = vmatpush3.msra.mxu1 %v2083_v1 }
 0x71b   :  { %4162 = vmatprep.subr.mxu1 %v4581_v8 }
 0x7d3   :  { %v1970_v6 = vpop.f32.mrf.mxu1 }
 0x7d4   :  { %v1974_v11 = vadd.f32 %v1970_v6, %v1896_v41 }
 0x7d5   :  { %v4128_v16 = vpop.f32.mrf.mxu1 }
 0x7d6   :  { %v1980_v23 = vadd.f32 %v3763_v32, %v1974_v11 }
 0x7d8   :  { %v1982_v37 = vand.u32 2147483647, %v1980_v23  ;;  %v1981_v63 = vmax.f32 %v1980_v23, 0.0 }
 0x7da   :  { %v1983_v58 = vsub.f32 0.0, %v1982_v37  ;;  %v2362_v37 = vld [vmem:[%s6146_s5 + $0x170] sm:$0xff] }
 0x7dc   :  { %v1984_v35 = vmul.f32 1.442695, %v1983_v58 }
 0x7de   :  { %4489 = vpow2.f32 %v1984_v35 }
 0x7eb   :  { %v4490_v56 = vpop.eup %4489 }
 0x7ec   :  { %v1986_v22 = vadd.f32 1.0, %v4490_v56 }
 0x7ee   :  { %4491 = vlog2.f32 %v1986_v22 }
 0x7fb   :  { %v4492_v46 = vpop.eup %4491 }
 0x7fc   :  { %v1988_v53 = vmul.f32 0.6931472, %v4492_v46 }
 0x7fe   :  { %v1989_v34 = vadd.f32 %v1988_v53, %v1981_v63 }
 0x800   :  { %v3764_v3 = vadd.f32 -0.6931472, %v1989_v34 }
 0x802   :  { %4138 = vmatmul.mubr.msk.f32.vlgmr.msra.gmra.mxu0 %vm1134_vm2, %v3764_v3 }
 0x803   :  { %4159 = vmatprep.mubr.msk.f32.mxu0 %vm4582_vm1, %v4581_v8  ;;  %4152 = vmatpush3.msra.mxu0 %v2179_v0  ;;  %v2465_v0 = vld [vmem:[%s6146_s5 + $0x188] sm:$0xff] }
 0x804   :  { %4153 = vmatprep.subr.mxu0 %v4581_v8 }
 0x805   :  { %4154 = vmatpush3.msra.mxu0 %v2178_v31  ;;  %v2464_v31 = vld [vmem:[%s6146_s5 + $0x180] sm:$0xff] }
 0x806   :  { %4155 = vmatprep.subr.mxu0 %v4581_v8 }
 0x807   :  { %4156 = vmatpush3.msra.mxu0 %v2177_v36  ;;  %v2556_v36 = vld [vmem:[%s6146_s5 + $0x1b8] sm:$0xff] }
 0x808   :  { %4157 = vmatprep.subr.mxu0 %v4581_v8 }
 0x809   :  { %4158 = vmatpush3.msra.mxu0 %v2176_v25  ;;  %v2555_v25 = vld [vmem:[%s6146_s5 + $0x1b0] sm:$0xff] }
 0x80a   :  { %4173 = vmatprep.subr.mxu0 %v4581_v8 }
 0x8c2   :  { %v2069_v12 = vpop.f32.mrf.mxu0 }
 0x8c3   :  { %v2070_v60 = vadd.f32 %v3765_v48, %v2069_v12 }
 0x8c4   :  { %v4139_v28 = vpop.f32.mrf.mxu0 }
 0x8c5   :  { %v2074_v18 = vand.u32 2147483647, %v2070_v60  ;;  %v2073_v9 = vmax.f32 %v2070_v60, 0.0 }
 0x8c7   :  { %v2075_v17 = vsub.f32 0.0, %v2074_v18 }
 0x8c9   :  { %v2076_v4 = vmul.f32 1.442695, %v2075_v17 }
 0x8cb   :  { %4493 = vpow2.f32 %v2076_v4 }
 0x8d8   :  { %v4494_v5 = vpop.eup %4493 }
 0x8d9   :  { %v2078_v2 = vadd.f32 1.0, %v4494_v5 }
 0x8db   :  { %4495 = vlog2.f32 %v2078_v2 }
 0x8e8   :  { %v4496_v50 = vpop.eup %4495 }
 0x8e9   :  { %v2080_v29 = vmul.f32 0.6931472, %v4496_v50 }
 0x8eb   :  { %v2081_v62 = vadd.f32 %v2080_v29, %v2073_v9 }
 0x8ed   :  { %v3767_v47 = vadd.f32 -0.6931472, %v2081_v62  ;;  %v2467_v62 = vld [vmem:[%s6146_s5 + $0x198] sm:$0xff] }
 0x8ef   :  { %4149 = vmatmul.mubr.msk.f32.vlgmr.msra.gmra.mxu1 %vm1134_vm2, %v3767_v47  ;;  %v2466_v47 = vld [vmem:[%s6146_s5 + $0x190] sm:$0xff] }
 0x8f0   :  { %4170 = vmatprep.mubr.msk.f32.mxu1 %vm4582_vm1, %v4581_v8 }
 0x9af   :  { %v2161_v14 = vpop.f32.mrf.mxu1 }
 0x9b0   :  { %v2162_v44 = vadd.f32 %v3768_v38, %v2161_v14  ;;  %v2554_v38 = vld [vmem:[%s6146_s5 + $0x1a8] sm:$0xff]  ;;  %v2553_v14 = vld [vmem:[%s6146_s5 + $0x1a0] sm:$0xff] }
 0x9b1   :  { %v4150_v45 = vpop.f32.mrf.mxu1 }
 0x9b2   :  { %v5758_v27 = vadd.f32 %v2162_v44, %v1980_v23  ;;  %v2363_v23 = vld [vmem:[%s6146_s5 + $0x178] sm:$0xff]  ;;  %v3774_v44 = vld [vmem:[%s6147_s6 + $0xb] ss:$0 sm:$0xff] }
 0x9b4   :  { %v2167_v21 = vand.u32 2147483647, %v5758_v27  ;;  %v2166_v6 = vmax.f32 %v5758_v27, 0.0 }
 0x9b6   :  { %v2168_v49 = vsub.f32 0.0, %v2167_v21 }
 0x9b8   :  { %v2169_v43 = vmul.f32 1.442695, %v2168_v49 }
 0x9ba   :  { %4497 = vpow2.f32 %v2169_v43 }
 0x9c7   :  { %v4498_v24 = vpop.eup %4497 }
 0x9c8   :  { %v2171_v39 = vadd.f32 1.0, %v4498_v24 }
 0x9ca   :  { %4499 = vlog2.f32 %v2171_v39 }
 0x9d7   :  { %v4500_v41 = vpop.eup %4499 }
 0x9d8   :  { %v2173_v32 = vmul.f32 0.6931472, %v4500_v41 }
 0x9da   :  { %v2174_v11 = vadd.f32 %v2173_v32, %v2166_v6 }
 0x9dc   :  { %v5762_v16 = vadd.f32 -0.6931472, %v2174_v11  ;;  %v3787_v11 = vld [vmem:[%s6147_s6 + $0x11] ss:$0 sm:$0xff] }
 0x9de   :  { %4160 = vmatmul.mubr.msk.f32.vlgmr.msra.gmra.mxu0 %vm1134_vm2, %v5762_v16 }
 0x9df   :  { %4174 = vmatpush3.msra.mxu0 %v2363_v23  ;;  %4177 = vmatprep.mubr.msk.f32.mxu0 %vm4582_vm1, %v4581_v8 }
 0x9e0   :  { %4175 = vmatprep.subr.mxu0 %v4581_v8 }
 0x9e1   :  { %4176 = vmatpush3.msra.mxu0 %v2362_v37 }
 0x9e2   :  { %4178 = vmatmul.mubr.msk.f32.vlgmr.msra.gmra.mxu0 %vm1003_vm0, %v5084_v20  ;;  %4243 = vmatprep.subr.mxu0 %v4581_v8  ;;  %v2271_v20 = vld [vmem:[%s6146_s5 + $0x168] sm:$0xff] }
 0x9e3   :  { %4180 = vmatprep.mubr.msk.f32.mxu0 %vm4582_vm1, %v4581_v8  ;;  %4163 = vmatpush3.msra.mxu1 %v2271_v20 }
 0x9e4   :  { %4164 = vmatprep.subr.mxu1 %v4581_v8 }
 0x9e6   :  { %4181 = vmatmul.mubr.msk.f32.gmra.mxu0 %vm1003_vm0, %v5162_v19  ;;  %v2270_v19 = vld [vmem:[%s6146_s5 + $0x160] sm:$0xff] }
 0x9e7   :  { %4183 = vmatprep.mubr.msk.f32.mxu0 %vm4582_vm1, %v4581_v8  ;;  %4165 = vmatpush3.msra.mxu1 %v2270_v19 }
 0x9e8   :  { %4166 = vmatprep.subr.mxu1 %v4581_v8 }
 0x9ea   :  { %4184 = vmatmul.mubr.msk.f32.gmra.mxu0 %vm1003_vm0, %v5232_v42  ;;  %v2269_v42 = vld [vmem:[%s6146_s5 + $0x158] sm:$0xff] }
 0x9eb   :  { %4186 = vmatprep.mubr.msk.f32.mxu0 %vm4582_vm1, %v4581_v8  ;;  %4167 = vmatpush3.msra.mxu1 %v2269_v42 }
 0x9ec   :  { %4168 = vmatprep.subr.mxu1 %v4581_v8 }
 0x9ee   :  { %4187 = vmatmul.mubr.msk.f32.gmra.mxu0 %vm1003_vm0, %v5433_v33  ;;  %v2268_v33 = vld [vmem:[%s6146_s5 + $0x150] sm:$0xff] }
 0x9ef   :  { %4189 = vmatprep.mubr.msk.f32.mxu0 %vm4582_vm1, %v4581_v8  ;;  %4169 = vmatpush3.msra.mxu1 %v2268_v33 }
 0x9f0   :  { %4198 = vmatprep.subr.mxu1 %v4581_v8 }
 0x9f2   :  { %4190 = vmatmul.mubr.msk.f32.gmra.mxu0 %vm1003_vm0, %v5521_v13  ;;  %v3771_v13 = vld [vmem:[%s6147_s6 + $0xa] ss:$0 sm:$0xff] }
 0x9f3   :  { %4192 = vmatprep.mubr.msk.f32.mxu0 %vm4582_vm1, %v4581_v8 }
 0x9f6   :  { %4193 = vmatmul.mubr.msk.f32.gmra.mxu0 %vm1003_vm0, %v5539_v7 }
 0x9f7   :  { %4195 = vmatprep.mubr.msk.f32.mxu0 %vm4582_vm1, %v4581_v8 }
 0x9fa   :  { %4196 = vmatmul.mubr.msk.f32.gmra.mxu0 %vm1003_vm0, %v5554_v10 }
 0x9fb   :  { %4257 = vmatprep.mubr.msk.f32.mxu0 %vm4582_vm1, %v4581_v8 }
 0xa9e   :  { %v2254_v7 = vpop.f32.mrf.mxu0 }
 0xa9f   :  { %v2255_v10 = vadd.f32 %v3771_v13, %v2254_v7 }
 0xaa0   :  { %v4161_v58 = vpop.f32.mrf.mxu0 }
 0xaa1   :  { %v2259_v35 = vand.u32 2147483647, %v2255_v10  ;;  %v2258_v2 = vmax.f32 %v2255_v10, 0.0 }
 0xaa2   :  { %v5823_v56 = vpop.f32.mrf.mxu0 }
 0xaa3   :  { %v2260_v22 = vsub.f32 0.0, %v2259_v35 }
 0xaa4   :  { %v4179_v46 = vpop.f32.mrf.mxu0 }
 0xaa5   :  { %v2261_v63 = vmul.f32 1.442695, %v2260_v22 }
 0xaa6   :  { %v5825_v53 = vpop.f32.mrf.mxu0 }
 0xaa7   :  { %4501 = vpow2.f32 %v2261_v63 }
 0xaa8   :  { %v4182_v34 = vpop.f32.mrf.mxu0 }
 0xaaa   :  { %v5827_v3 = vpop.f32.mrf.mxu0 }
 0xaac   :  { %v4185_v52 = vpop.f32.mrf.mxu0 }
 0xaae   :  { %v5829_v40 = vpop.f32.mrf.mxu0 }
 0xab0   :  { %v4188_v15 = vpop.f32.mrf.mxu0 }
 0xab2   :  { %v5831_v1 = vpop.f32.mrf.mxu0 }
 0xab4   :  { %v4502_v48 = vpop.eup %4501  ;;  %v4191_v12 = vpop.f32.mrf.mxu0 }
 0xab5   :  { %v2263_v60 = vadd.f32 1.0, %v4502_v48 }
 0xab6   :  { %v5833_v28 = vpop.f32.mrf.mxu0 }
 0xab7   :  { %4503 = vlog2.f32 %v2263_v60 }
 0xab8   :  { %v4194_v18 = vpop.f32.mrf.mxu0 }
 0xaba   :  { %v5835_v17 = vpop.f32.mrf.mxu0 }
 0xabc   :  { %v4197_v4 = vpop.f32.mrf.mxu0 }
 0xac4   :  { %v4504_v5 = vpop.eup %4503 }
 0xac5   :  { %v2265_v50 = vmul.f32 0.6931472, %v4504_v5 }
 0xac7   :  { %v2266_v9 = vadd.f32 %v2265_v50, %v2258_v2 }
 0xac9   :  { %v3773_v29 = vadd.f32 -0.6931472, %v2266_v9 }
 0xacb   :  { %4171 = vmatmul.mubr.msk.f32.vlgmr.msra.gmra.mxu1 %vm1134_vm2, %v3773_v29 }
 0xacc   :  { %4199 = vmatpush3.msra.mxu1 %v2467_v62  ;;  %4206 = vmatprep.mubr.msk.f32.mxu1 %vm4582_vm1, %v4581_v8 }
 0xacd   :  { %4200 = vmatprep.subr.mxu1 %v4581_v8 }
 0xace   :  { %4201 = vmatpush3.msra.mxu1 %v2466_v47 }
 0xacf   :  { %4202 = vmatprep.subr.mxu1 %v4581_v8 }
 0xad0   :  { %4203 = vmatpush3.msra.mxu1 %v2465_v0 }
 0xad1   :  { %4204 = vmatprep.subr.mxu1 %v4581_v8 }
 0xad2   :  { %4205 = vmatpush3.msra.mxu1 %v2464_v31 }
 0xad3   :  { %4207 = vmatmul.mubr.msk.f32.vlgmr.msra.gmra.mxu1 %vm1134_vm2, %v5762_v16  ;;  %4209 = vmatprep.subr.mxu1 %v4581_v8 }
 0xad4   :  { %4210 = vmatpush3.msra.mxu1 %v2556_v36  ;;  %4217 = vmatprep.mubr.msk.f32.mxu1 %vm4582_vm1, %v4581_v8 }
 0xad5   :  { %4211 = vmatprep.subr.mxu1 %v4581_v8 }
 0xad6   :  { %4212 = vmatpush3.msra.mxu1 %v2555_v25 }
 0xad7   :  { %4213 = vmatprep.subr.mxu1 %v4581_v8 }
 0xad8   :  { %4214 = vmatpush3.msra.mxu1 %v2554_v38 }
 0xad9   :  { %4215 = vmatprep.subr.mxu1 %v4581_v8 }
 0xada   :  { %4216 = vmatpush3.msra.mxu1 %v2553_v14 }
 0xadb   :  { %4218 = vmatmul.mubr.msk.f32.vlgmr.msra.gmra.mxu1 %vm1134_vm2, %v5762_v16  ;;  %4220 = vmatprep.subr.mxu1 %v4581_v8 }
 0xadc   :  { %4222 = vmatprep.mubr.msk.f32.mxu1 %vm4582_vm1, %v4581_v8 }
 0xb8b   :  { %v2346_v45 = vpop.f32.mrf.mxu1 }
 0xb8c   :  { %v2347_v21 = vadd.f32 %v3774_v44, %v2346_v45 }
 0xb8d   :  { %v4172_v49 = vpop.f32.mrf.mxu1 }
 0xb8e   :  { %v2350_v43 = vadd.f32 %v2347_v21, %v5758_v27 }
 0xb90   :  { %v2352_v24 = vand.u32 2147483647, %v2350_v43  ;;  %v2351_v35 = vmax.f32 %v2350_v43, 0.0 }
 0xb92   :  { %v2353_v39 = vsub.f32 0.0, %v2352_v24 }
 0xb93   :  { %v5884_v41 = vpop.f32.mrf.mxu1 }
 0xb94   :  { %v2354_v6 = vmul.f32 1.442695, %v2353_v39 }
 0xb95   :  { %v4208_v32 = vpop.f32.mrf.mxu1 }
 0xb96   :  { %4505 = vpow2.f32 %v2354_v6 }
 0xb9b   :  { %v2628_v16 = vpop.f32.mrf.mxu1 }
 0xb9c   :  { %v2629_v23 = vadd.f32 %v3787_v11, %v2628_v16 }
 0xb9d   :  { %v4219_v37 = vpop.f32.mrf.mxu1 }
 0xb9e   :  { %v2633_v20 = vand.u32 2147483647, %v2629_v23  ;;  %v2632_v52 = vmax.f32 %v2629_v23, 0.0 }
 0xba0   :  { %v2634_v19 = vsub.f32 0.0, %v2633_v20 }
 0xba2   :  { %v2635_v42 = vmul.f32 1.442695, %v2634_v19 }
 0xba3   :  { %v4506_v33 = vpop.eup %4505 }
 0xba4   :  { %v2356_v13 = vadd.f32 1.0, %v4506_v33  ;;  %4507 = vpow2.f32 %v2635_v42 }
 0xba6   :  { %4509 = vlog2.f32 %v2356_v13 }
 0xbb1   :  { %v4508_v7 = vpop.eup %4507 }
 0xbb2   :  { %v2637_v10 = vadd.f32 1.0, %v4508_v7  ;;  %v2925_v7 = vld [vmem:[%s6146_s5 + $0x218] sm:$0xff] }
 0xbb3   :  { %v4510_v58 = vpop.eup %4509 }
 0xbb4   :  { %v2358_v22 = vmul.f32 0.6931472, %v4510_v58  ;;  %4511 = vlog2.f32 %v2637_v10  ;;  %v2924_v10 = vld [vmem:[%s6146_s5 + $0x210] sm:$0xff]  ;;  %v2923_v58 = vld [vmem:[%s6146_s5 + $0x208] sm:$0xff] }
 0xbb6   :  { %v2359_v46 = vadd.f32 %v2358_v22, %v2351_v35  ;;  %v2922_v35 = vld [vmem:[%s6146_s5 + $0x200] sm:$0xff]  ;;  %v3799_v22 = vld [vmem:[%s6147_s6 + $0x12] ss:$0 sm:$0xff] }
 0xbb8   :  { %v3776_v63 = vadd.f32 -0.6931472, %v2359_v46 }
 0xbba   :  { %2361 = vst.msk [vmem:[#allocation2] sm:$0xff] %vm1134_vm2, %v3776_v63 }
 0xbc1   :  { %v4512_v34 = vpop.eup %4511 }
 0xbc2   :  { %v2639_v15 = vmul.f32 0.6931472, %v4512_v34 }
 0xbc4   :  { %v2640_v48 = vadd.f32 %v2639_v15, %v2632_v52 }
 0xbc6   :  { %v3789_v12 = vadd.f32 -0.6931472, %v2640_v48 }
 0xbc8   :  { %4221 = vmatpush3.msra.mxu1 %v3789_v12 }
 0xbc9   :  { %4223 = vmatmul.mubr.msk.f32.vlgmr.msra.gmra.mxu1 %vm1307_vm5, %v5184_v51  ;;  %4282 = vmatprep.subr.mxu1 %v4581_v8 }
 0xbca   :  { %4225 = vmatprep.mubr.msk.f32.mxu1 %vm4582_vm1, %v4581_v8 }
 0xbcd   :  { %4226 = vmatmul.mubr.msk.f32.gmra.mxu1 %vm1307_vm5, %v5367_v54 }
 0xbce   :  { %4228 = vmatprep.mubr.msk.f32.mxu1 %vm4582_vm1, %v4581_v8 }
 0xbd1   :  { %4229 = vmatmul.mubr.msk.f32.gmra.mxu1 %vm1307_vm5, %v5264_v61 }
 0xbd2   :  { %4231 = vmatprep.mubr.msk.f32.mxu1 %vm4582_vm1, %v4581_v8 }
 0xbd5   :  { %4232 = vmatmul.mubr.msk.f32.gmra.mxu1 %vm1307_vm5, %v5338_v30 }
 0xbd6   :  { %4234 = vmatprep.mubr.msk.f32.mxu1 %vm4582_vm1, %v4581_v8 }
 0xbd9   :  { %4235 = vmatmul.mubr.msk.f32.gmra.mxu1 %vm1307_vm5, %v5411_v57 }
 0xbda   :  { %4237 = vmatprep.mubr.msk.f32.mxu1 %vm4582_vm1, %v4581_v8 }
 0xbdd   :  { %4238 = vmatmul.mubr.msk.f32.gmra.mxu1 %vm1307_vm5, %v5416_v26 }
 0xbde   :  { %4240 = vmatprep.mubr.msk.f32.mxu1 %vm4582_vm1, %v4581_v8 }
 0xbe1   :  { %4241 = vmatmul.mubr.msk.f32.gmra.mxu1 %vm1307_vm5, %v5441_v59 }
 0xbe2   :  { %4290 = vmatprep.mubr.msk.f32.mxu1 %vm4582_vm1, %v4581_v8 }
 0xc89   :  { %v2708_v51 = vpop.f32.mrf.mxu1 }
 0xc8b   :  { %v4224_v61 = vpop.f32.mrf.mxu1 }
 0xc8d   :  { %v2713_v30 = vpop.f32.mrf.mxu1 }
 0xc8f   :  { %v4227_v54 = vpop.f32.mrf.mxu1 }
 0xc91   :  { %v2718_v57 = vpop.f32.mrf.mxu1 }
 0xc92   :  { %v2744_v31 = vmul.f32 %v2718_v57, %v5827_v3  ;;  %v2830_v3 = vld [vmem:[%s6146_s5 + $0x1c0] sm:$0xff] }
 0xc93   :  { %v4230_v60 = vpop.f32.mrf.mxu1 }
 0xc95   :  { %v2723_v18 = vpop.f32.mrf.mxu1 }
 0xc96   :  { %v2745_v0 = vmul.f32 %v2723_v18, %v5829_v40  ;;  %v3784_v40 = vld [vmem:[%s6147_s6 + $0x10] ss:$0 sm:$0xff]  ;;  %v3018_v18 = vld [vmem:[%s6146_s5 + $0x1f8] sm:$0xff] }
 0xc97   :  { %v4233_v4 = vpop.f32.mrf.mxu1  ;;  %4283 = vmatpush3.msra.mxu1 %v3018_v18 }
 0xc98   :  { %v3017_v4 = vld [vmem:[%s6146_s5 + $0x1f0] sm:$0xff]  ;;  %4284 = vmatprep.subr.mxu1 %v4581_v8 }
 0xc99   :  { %v2728_v5 = vpop.f32.mrf.mxu1  ;;  %4285 = vmatpush3.msra.mxu1 %v3017_v4  ;;  %v3813_v4 = vld [vmem:[%s6147_s6 + $0x16] ss:$0 sm:$0xff] }
 0xc9a   :  { %v2746_v47 = vmul.f32 %v2728_v5, %v5831_v1  ;;  %v2742_v1 = vmul.f32 %v2708_v51, %v5823_v56  ;;  %v2832_v56 = vld [vmem:[%s6146_s5 + $0x1d0] sm:$0xff]  ;;  %v3016_v5 = vld [vmem:[%s6146_s5 + $0x1e8] sm:$0xff]  ;;  %4286 = vmatprep.subr.mxu1 %v4581_v8 }
 0xc9b   :  { %v4236_v2 = vpop.f32.mrf.mxu1  ;;  %4287 = vmatpush3.msra.mxu1 %v3016_v5 }
 0xc9c   :  { %v3015_v2 = vld [vmem:[%s6146_s5 + $0x1e0] sm:$0xff]  ;;  %4288 = vmatprep.subr.mxu1 %v4581_v8 }
 0xc9d   :  { %v2733_v26 = vpop.f32.mrf.mxu1  ;;  %4289 = vmatpush3.msra.mxu1 %v3015_v2 }
 0xc9e   :  { %v2747_v59 = vmul.f32 %v2733_v26, %v5833_v28  ;;  %v2743_v28 = vmul.f32 %v2713_v30, %v5825_v53  ;;  %v2833_v53 = vld [vmem:[%s6146_s5 + $0x1d8] sm:$0xff]  ;;  %4304 = vmatprep.subr.mxu1 %v4581_v8  ;;  %v3802_v26 = vld [vmem:[%s6147_s6 + $0x14] ss:$0 sm:$0xff] }
 0xc9f   :  { %v4239_v50 = vpop.f32.mrf.mxu1 }
 0xca1   :  { %v2738_v9 = vpop.f32.mrf.mxu1 }
 0xca2   :  { %v2748_v29 = vmul.f32 %v2738_v9, %v5835_v17  ;;  %v2540_v17 = vadd.f32 %v3784_v40, %v5884_v41  ;;  %v3110_v40 = vld [vmem:[%s6146_s5 + $0x238] sm:$0xff] }
 0xca3   :  { %v4242_v62 = vpop.f32.mrf.mxu1 }
 0xca4   :  { %4244 = vmatpush3.msra.mxu0 %v2748_v29  ;;  %v2544_v36 = vand.u32 2147483647, %v2540_v17  ;;  %v2543_v49 = vmax.f32 %v2540_v17, 0.0  ;;  %v3109_v17 = vld [vmem:[%s6146_s5 + $0x230] sm:$0xff] }
 0xca5   :  { %4245 = vmatprep.subr.mxu0 %v4581_v8 }
 0xca6   :  { %4246 = vmatpush3.msra.mxu0 %v2747_v59  ;;  %v2545_v25 = vsub.f32 0.0, %v2544_v36  ;;  %v3108_v36 = vld [vmem:[%s6146_s5 + $0x228] sm:$0xff] }
 0xca7   :  { %4247 = vmatprep.subr.mxu0 %v4581_v8 }
 0xca8   :  { %4248 = vmatpush3.msra.mxu0 %v2746_v47  ;;  %v2546_v38 = vmul.f32 1.442695, %v2545_v25  ;;  %v3107_v25 = vld [vmem:[%s6146_s5 + $0x220] sm:$0xff] }
 0xca9   :  { %4249 = vmatprep.subr.mxu0 %v4581_v8 }
 0xcaa   :  { %4250 = vmatpush3.msra.mxu0 %v2745_v0  ;;  %4513 = vpow2.f32 %v2546_v38  ;;  %v3805_v38 = vld [vmem:[%s6147_s6 + $0x13] ss:$0 sm:$0xff] }
 0xcab   :  { %4251 = vmatprep.subr.mxu0 %v4581_v8 }
 0xcac   :  { %4252 = vmatpush3.msra.mxu0 %v2744_v31 }
 0xcad   :  { %4253 = vmatprep.subr.mxu0 %v4581_v8 }
 0xcae   :  { %4254 = vmatpush3.msra.mxu0 %v2743_v28 }
 0xcaf   :  { %4255 = vmatprep.subr.mxu0 %v4581_v8 }
 0xcb0   :  { %4256 = vmatpush3.msra.mxu0 %v2742_v1 }
 0xcb1   :  { %4258 = vmatmul.mubr.msk.f32.vlgmr.msra.gmra.mxu0 %vm1436_vm8, %v5570_v55  ;;  %4260 = vmatprep.subr.mxu0 %v4581_v8  ;;  %v2831_v55 = vld [vmem:[%s6146_s5 + $0x1c8] sm:$0xff] }
 0xcb2   :  { %4268 = vmatprep.mubr.msk.f32.mxu0 %vm4582_vm1, %v4581_v8  ;;  %4261 = vmatpush3.msra.mxu0 %v2833_v53 }
 0xcb3   :  { %4262 = vmatprep.subr.mxu0 %v4581_v8 }
 0xcb4   :  { %4263 = vmatpush3.msra.mxu0 %v2832_v56 }
 0xcb5   :  { %4264 = vmatprep.subr.mxu0 %v4581_v8 }
 0xcb6   :  { %4265 = vmatpush3.msra.mxu0 %v2831_v55 }
 0xcb7   :  { %4266 = vmatprep.subr.mxu0 %v4581_v8  ;;  %v4514_v14 = vpop.eup %4513 }
 0xcb8   :  { %4267 = vmatpush3.msra.mxu0 %v2830_v3  ;;  %v2548_v44 = vadd.f32 1.0, %v4514_v14 }
 0xcb9   :  { %4271 = vmatprep.subr.mxu0 %v4581_v8 }
 0xcba   :  { %4515 = vlog2.f32 %v2548_v44 }
 0xcc7   :  { %v4516_v45 = vpop.eup %4515 }
 0xcc8   :  { %v2550_v21 = vmul.f32 0.6931472, %v4516_v45 }
 0xcca   :  { %v2551_v43 = vadd.f32 %v2550_v21, %v2543_v49 }
 0xccc   :  { %v3786_v24 = vadd.f32 -0.6931472, %v2551_v43 }
 0xd71   :  { %v2815_v39 = vpop.f32.mrf.mxu0 }
 0xd72   :  { %v2819_v6 = vadd.f32 %v3786_v24, %v2815_v39 }
 0xd73   :  { %v4259_v32 = vpop.f32.mrf.mxu0 }
 0xd74   :  { %v2821_v11 = vand.u32 2147483647, %v2819_v6  ;;  %v2820_v19 = vmax.f32 %v2819_v6, 0.0 }
 0xd76   :  { %v2822_v16 = vsub.f32 0.0, %v2821_v11 }
 0xd78   :  { %v2823_v23 = vmul.f32 1.442695, %v2822_v16 }
 0xd7a   :  { %4517 = vpow2.f32 %v2823_v23 }
 0xd87   :  { %v4518_v41 = vpop.eup %4517 }
 0xd88   :  { %v2825_v37 = vadd.f32 1.0, %v4518_v41  ;;  %v3209_v41 = vld [vmem:[%s6146_s5 + $0x258] sm:$0xff] }
 0xd8a   :  { %4519 = vlog2.f32 %v2825_v37  ;;  %v3208_v37 = vld [vmem:[%s6146_s5 + $0x250] sm:$0xff] }
 0xd97   :  { %v4520_v20 = vpop.eup %4519 }
 0xd98   :  { %v2827_v42 = vmul.f32 0.6931472, %v4520_v20  ;;  %v3207_v20 = vld [vmem:[%s6146_s5 + $0x248] sm:$0xff] }
 0xd9a   :  { %v2828_v33 = vadd.f32 %v2827_v42, %v2820_v19  ;;  %v3206_v19 = vld [vmem:[%s6146_s5 + $0x240] sm:$0xff]  ;;  %v3808_v42 = vld [vmem:[%s6147_s6 + $0x15] ss:$0 sm:$0xff] }
 0xd9c   :  { %v3798_v13 = vadd.f32 -0.6931472, %v2828_v33 }
 0xd9e   :  { %4269 = vmatmul.mubr.msk.f32.vlgmr.msra.gmra.mxu0 %vm1134_vm2, %v3798_v13 }
 0xd9f   :  { %4279 = vmatprep.mubr.msk.f32.mxu0 %vm4582_vm1, %v4581_v8  ;;  %4272 = vmatpush3.msra.mxu0 %v2925_v7 }
 0xda0   :  { %4273 = vmatprep.subr.mxu0 %v4581_v8 }
 0xda1   :  { %4274 = vmatpush3.msra.mxu0 %v2924_v10 }
 0xda2   :  { %4275 = vmatprep.subr.mxu0 %v4581_v8 }
 0xda3   :  { %4276 = vmatpush3.msra.mxu0 %v2923_v58 }
 0xda4   :  { %4277 = vmatprep.subr.mxu0 %v4581_v8 }
 0xda5   :  { %4278 = vmatpush3.msra.mxu0 %v2922_v35 }
 0xda6   :  { %4293 = vmatprep.subr.mxu0 %v4581_v8 }
 0xe5e   :  { %v2908_v46 = vpop.f32.mrf.mxu0 }
 0xe5f   :  { %v2909_v63 = vadd.f32 %v3799_v22, %v2908_v46 }
 0xe60   :  { %v4270_v34 = vpop.f32.mrf.mxu0 }
 0xe61   :  { %v2913_v52 = vand.u32 2147483647, %v2909_v63  ;;  %v2912_v30 = vmax.f32 %v2909_v63, 0.0 }
 0xe63   :  { %v2914_v15 = vsub.f32 0.0, %v2913_v52 }
 0xe65   :  { %v2915_v48 = vmul.f32 1.442695, %v2914_v15 }
 0xe67   :  { %4521 = vpow2.f32 %v2915_v48 }
 0xe74   :  { %v4522_v12 = vpop.eup %4521 }
 0xe75   :  { %v2917_v51 = vadd.f32 1.0, %v4522_v12 }
 0xe77   :  { %4523 = vlog2.f32 %v2917_v51  ;;  %v3303_v51 = vld [vmem:[%s6146_s5 + $0x278] sm:$0xff] }
 0xe84   :  { %v4524_v61 = vpop.eup %4523 }
 0xe85   :  { %v2919_v54 = vmul.f32 0.6931472, %v4524_v61  ;;  %v3302_v61 = vld [vmem:[%s6146_s5 + $0x270] sm:$0xff] }
 0xe87   :  { %v2920_v57 = vadd.f32 %v2919_v54, %v2912_v30  ;;  %v3301_v30 = vld [vmem:[%s6146_s5 + $0x268] sm:$0xff]  ;;  %v3300_v54 = vld [vmem:[%s6146_s5 + $0x260] sm:$0xff] }
 0xe89   :  { %v3801_v60 = vadd.f32 -0.6931472, %v2920_v57  ;;  %v3811_v57 = vld [vmem:[%s6147_s6 + $0x17] ss:$0 sm:$0xff] }
 0xe8b   :  { %4280 = vmatmul.mubr.msk.f32.vlgmr.msra.gmra.mxu0 %vm1134_vm2, %v3801_v60  ;;  %v3205_v60 = vmul.f32 %v3811_v57, %v5758_v27 }
 0xe8c   :  { %4301 = vmatprep.mubr.msk.f32.mxu0 %vm4582_vm1, %v4581_v8  ;;  %4294 = vmatpush3.msra.mxu0 %v3110_v40 }
 0xe8d   :  { %4295 = vmatprep.subr.mxu0 %v4581_v8 }
 0xe8e   :  { %4296 = vmatpush3.msra.mxu0 %v3109_v17 }
 0xe8f   :  { %4297 = vmatprep.subr.mxu0 %v4581_v8 }
 0xe90   :  { %4298 = vmatpush3.msra.mxu0 %v3108_v36 }
 0xe91   :  { %4299 = vmatprep.subr.mxu0 %v4581_v8 }
 0xe92   :  { %4300 = vmatpush3.msra.mxu0 %v3107_v25 }
 0xe93   :  { %4315 = vmatprep.subr.mxu0 %v4581_v8 }
 0xf4b   :  { %v3000_v50 = vpop.f32.mrf.mxu0 }
 0xf4c   :  { %v3001_v9 = vadd.f32 %v3802_v26, %v3000_v50 }
 0xf4d   :  { %v4281_v29 = vpop.f32.mrf.mxu0 }
 0xf4e   :  { %v3004_v62 = vadd.f32 %v3001_v9, %v2819_v6 }
 0xf50   :  { %v3006_v59 = vand.u32 2147483647, %v3004_v62  ;;  %v3005_v53 = vmax.f32 %v3004_v62, 0.0 }
 0xf52   :  { %v3007_v47 = vsub.f32 0.0, %v3006_v59 }
 0xf54   :  { %v3008_v0 = vmul.f32 1.442695, %v3007_v47 }
 0xf56   :  { %4525 = vpow2.f32 %v3008_v0 }
 0xf63   :  { %v4526_v31 = vpop.eup %4525 }
 0xf64   :  { %v3010_v28 = vadd.f32 1.0, %v4526_v31 }
 0xf66   :  { %4527 = vlog2.f32 %v3010_v28 }
 0xf73   :  { %v4528_v1 = vpop.eup %4527 }
 0xf74   :  { %v3012_v56 = vmul.f32 0.6931472, %v4528_v1  ;;  %v3395_v1 = vld [vmem:[%s6146_s5 + $0x298] sm:$0xff] }
 0xf76   :  { %v3013_v55 = vadd.f32 %v3012_v56, %v3005_v53  ;;  %v3394_v53 = vld [vmem:[%s6146_s5 + $0x290] sm:$0xff]  ;;  %v3393_v56 = vld [vmem:[%s6146_s5 + $0x288] sm:$0xff] }
 0xf78   :  { %v3804_v3 = vadd.f32 -0.6931472, %v3013_v55  ;;  %v3392_v55 = vld [vmem:[%s6146_s5 + $0x280] sm:$0xff] }
 0xf7a   :  { %4291 = vmatmul.mubr.msk.f32.vlgmr.msra.gmra.mxu1 %vm1134_vm2, %v3804_v3  ;;  %v3815_v3 = vld [vmem:[%s6147_s6 + $0x18] ss:$0 sm:$0xff] }
 0xf7b   :  { %4312 = vmatprep.mubr.msk.f32.mxu1 %vm4582_vm1, %v4581_v8  ;;  %4305 = vmatpush3.msra.mxu1 %v3209_v41 }
 0xf7c   :  { %4306 = vmatprep.subr.mxu1 %v4581_v8 }
 0xf7d   :  { %4307 = vmatpush3.msra.mxu1 %v3208_v37 }
 0xf7e   :  { %4308 = vmatprep.subr.mxu1 %v4581_v8 }
 0xf7f   :  { %4309 = vmatpush3.msra.mxu1 %v3207_v20 }
 0xf80   :  { %4310 = vmatprep.subr.mxu1 %v4581_v8 }
 0xf81   :  { %4311 = vmatpush3.msra.mxu1 %v3206_v19 }
 0xf82   :  { %4326 = vmatprep.subr.mxu1 %v4581_v8 }
0x103a   :  { %v3093_v14 = vpop.f32.mrf.mxu1 }
0x103b   :  { %v3094_v44 = vadd.f32 %v3805_v38, %v3093_v14 }
0x103c   :  { %v4292_v45 = vpop.f32.mrf.mxu1 }
0x103d   :  { %v3098_v21 = vand.u32 2147483647, %v3094_v44  ;;  %v3097_v32 = vmax.f32 %v3094_v44, 0.0 }
0x103f   :  { %v3099_v49 = vsub.f32 0.0, %v3098_v21 }
0x1041   :  { %v3100_v43 = vmul.f32 1.442695, %v3099_v49 }
0x1043   :  { %4529 = vpow2.f32 %v3100_v43 }
0x1050   :  { %v4530_v24 = vpop.eup %4529 }
0x1051   :  { %v3102_v39 = vadd.f32 1.0, %v4530_v24 }
0x1053   :  { %4531 = vlog2.f32 %v3102_v39 }
0x1060   :  { %v4532_v6 = vpop.eup %4531 }
0x1061   :  { %v3104_v11 = vmul.f32 0.6931472, %v4532_v6  ;;  %v3488_v6 = vld [vmem:[%s6146_s5 + $0x2b8] sm:$0xff] }
0x1063   :  { %v3105_v16 = vadd.f32 %v3104_v11, %v3097_v32  ;;  %v3487_v32 = vld [vmem:[%s6146_s5 + $0x2b0] sm:$0xff]  ;;  %v3486_v11 = vld [vmem:[%s6146_s5 + $0x2a8] sm:$0xff] }
0x1065   :  { %v3807_v23 = vadd.f32 -0.6931472, %v3105_v16  ;;  %v3485_v16 = vld [vmem:[%s6146_s5 + $0x2a0] sm:$0xff] }
0x1067   :  { %4302 = vmatmul.mubr.msk.f32.vlgmr.msra.gmra.mxu0 %vm1134_vm2, %v3807_v23  ;;  %v3818_v23 = vld [vmem:[%s6147_s6 + $0x19] ss:$0 sm:$0xff] }
0x1068   :  { %4323 = vmatprep.mubr.msk.f32.mxu0 %vm4582_vm1, %v4581_v8  ;;  %4316 = vmatpush3.msra.mxu0 %v3303_v51 }
0x1069   :  { %4317 = vmatprep.subr.mxu0 %v4581_v8 }
0x106a   :  { %4318 = vmatpush3.msra.mxu0 %v3302_v61 }
0x106b   :  { %4319 = vmatprep.subr.mxu0 %v4581_v8 }
0x106c   :  { %4320 = vmatpush3.msra.mxu0 %v3301_v30 }
0x106d   :  { %4321 = vmatprep.subr.mxu0 %v4581_v8 }
0x106e   :  { %4322 = vmatpush3.msra.mxu0 %v3300_v54 }
0x106f   :  { %4337 = vmatprep.subr.mxu0 %v4581_v8 }
0x1127   :  { %v3185_v33 = vpop.f32.mrf.mxu0 }
0x1128   :  { %v3186_v13 = vadd.f32 %v3808_v42, %v3185_v33 }
0x1129   :  { %v4303_v7 = vpop.f32.mrf.mxu0 }
0x112a   :  { %v3189_v10 = vadd.f32 %v3186_v13, %v3004_v62 }
0x112c   :  { %v3191_v58 = vand.u32 2147483647, %v3189_v10  ;;  %v3190_v52 = vmax.f32 %v3189_v10, 0.0 }
0x112e   :  { %v3192_v35 = vsub.f32 0.0, %v3191_v58 }
0x1130   :  { %v3193_v22 = vmul.f32 1.442695, %v3192_v35 }
0x1132   :  { %4533 = vpow2.f32 %v3193_v22 }
0x113f   :  { %v4534_v46 = vpop.eup %4533 }
0x1140   :  { %v3195_v63 = vadd.f32 1.0, %v4534_v46 }
0x1142   :  { %4535 = vlog2.f32 %v3195_v63 }
0x114f   :  { %v4536_v34 = vpop.eup %4535 }
0x1150   :  { %v3197_v15 = vmul.f32 0.6931472, %v4536_v34  ;;  %v3580_v34 = vld [vmem:[%s6146_s5 + $0x2d8] sm:$0xff] }
0x1152   :  { %v3198_v48 = vadd.f32 %v3197_v15, %v3190_v52  ;;  %v3579_v52 = vld [vmem:[%s6146_s5 + $0x2d0] sm:$0xff]  ;;  %v3578_v15 = vld [vmem:[%s6146_s5 + $0x2c8] sm:$0xff] }
0x1154   :  { %v3810_v12 = vadd.f32 -0.6931472, %v3198_v48  ;;  %v3577_v48 = vld [vmem:[%s6146_s5 + $0x2c0] sm:$0xff] }
0x1156   :  { %4313 = vmatmul.mubr.msk.f32.vlgmr.msra.gmra.mxu1 %vm1134_vm2, %v3810_v12  ;;  %v3821_v12 = vld [vmem:[%s6147_s6 + $0x1a] ss:$0 sm:$0xff] }
0x1157   :  { %4334 = vmatprep.mubr.msk.f32.mxu1 %vm4582_vm1, %v4581_v8  ;;  %4327 = vmatpush3.msra.mxu1 %v3395_v1 }
0x1158   :  { %4328 = vmatprep.subr.mxu1 %v4581_v8 }
0x1159   :  { %4329 = vmatpush3.msra.mxu1 %v3394_v53 }
0x115a   :  { %4330 = vmatprep.subr.mxu1 %v4581_v8 }
0x115b   :  { %4331 = vmatpush3.msra.mxu1 %v3393_v56 }
0x115c   :  { %4332 = vmatprep.subr.mxu1 %v4581_v8 }
0x115d   :  { %4333 = vmatpush3.msra.mxu1 %v3392_v55 }
0x115e   :  { %4348 = vmatprep.subr.mxu1 %v4581_v8 }
0x1216   :  { %v3279_v18 = vpop.f32.mrf.mxu1 }
0x1217   :  { %v3283_v5 = vadd.f32 %v3279_v18, %v3205_v60 }
0x1218   :  { %v4314_v2 = vpop.f32.mrf.mxu1 }
0x1219   :  { %v3289_v26 = vadd.f32 %v3813_v4, %v3283_v5 }
0x121b   :  { %v3291_v50 = vand.u32 2147483647, %v3289_v26  ;;  %v3290_v0 = vmax.f32 %v3289_v26, 0.0 }
0x121d   :  { %v3292_v9 = vsub.f32 0.0, %v3291_v50 }
0x121f   :  { %v3293_v29 = vmul.f32 1.442695, %v3292_v9  ;;  %v3824_v9 = vld [vmem:[%s6147_s6 + $0x1b] ss:$0 sm:$0xff]  ;;  %s4559_s6 = scalar_lea.vmem %s3678_s25, 256 }
0x1220   :  { %p4560_p0 = scmp.ne.s32.totalorder %s3678_s25, %s4559_s6  ;;  %p4565_p2 = scmp.lt.s32.totalorder %s4559_s6, %s4559_s6 }
0x1221   :  { %4537 = vpow2.f32 %v3293_v29 }
0x1222   :  { %p4566_p3 = por %p4565_p2, %p4564_p1 }
0x1224   :  { %p4567_p4 = pnand %p4566_p3, %p4560_p0 }
0x122e   :  { %v4538_v62 = vpop.eup %4537 }
0x122f   :  { %v3295_v59 = vadd.f32 1.0, %v4538_v62 }
0x1231   :  { %4539 = vlog2.f32 %v3295_v59 }
0x123e   :  { %v4540_v47 = vpop.eup %4539 }
0x123f   :  { %v3297_v31 = vmul.f32 0.6931472, %v4540_v47 }
0x1241   :  { %v3298_v28 = vadd.f32 %v3297_v31, %v3290_v0 }
0x1243   :  { %v3814_v27 = vadd.f32 -0.6931472, %v3298_v28 }
0x1245   :  { %4324 = vmatmul.mubr.msk.f32.vlgmr.msra.gmra.mxu0 %vm1134_vm2, %v3814_v27 }
0x1246   :  { %4345 = vmatprep.mubr.msk.f32.mxu0 %vm4582_vm1, %v4581_v8  ;;  %4338 = vmatpush3.msra.mxu0 %v3488_v6 }
0x1247   :  { %4339 = vmatprep.subr.mxu0 %v4581_v8 }
0x1248   :  { %4340 = vmatpush3.msra.mxu0 %v3487_v32 }
0x1249   :  { %4341 = vmatprep.subr.mxu0 %v4581_v8 }
0x124a   :  { %4342 = vmatpush3.msra.mxu0 %v3486_v11 }
0x124b   :  { %4343 = vmatprep.subr.mxu0 %v4581_v8 }
0x124c   :  { %4344 = vmatpush3.msra.mxu0 %v3485_v16 }
0x1305   :  { %v3378_v40 = vpop.f32.mrf.mxu0 }
0x1306   :  { %v3379_v17 = vadd.f32 %v3815_v3, %v3378_v40 }
0x1307   :  { %v4325_v36 = vpop.f32.mrf.mxu0 }
0x1308   :  { %v3383_v25 = vand.u32 2147483647, %v3379_v17  ;;  %v3382_v49 = vmax.f32 %v3379_v17, 0.0 }
0x130a   :  { %v3384_v38 = vsub.f32 0.0, %v3383_v25 }
0x130c   :  { %v3385_v14 = vmul.f32 1.442695, %v3384_v38 }
0x130e   :  { %4541 = vpow2.f32 %v3385_v14 }
0x131b   :  { %v4542_v44 = vpop.eup %4541 }
0x131c   :  { %v3387_v45 = vadd.f32 1.0, %v4542_v44 }
0x131e   :  { %4543 = vlog2.f32 %v3387_v45 }
0x132b   :  { %v4544_v21 = vpop.eup %4543 }
0x132c   :  { %v3389_v43 = vmul.f32 0.6931472, %v4544_v21 }
0x132e   :  { %v3390_v24 = vadd.f32 %v3389_v43, %v3382_v49 }
0x1330   :  { %v3817_v39 = vadd.f32 -0.6931472, %v3390_v24 }
0x1332   :  { %4335 = vmatmul.mubr.msk.f32.vlgmr.msra.gmra.mxu1 %vm1134_vm2, %v3817_v39 }
0x1333   :  { %4356 = vmatprep.mubr.msk.f32.mxu1 %vm4582_vm1, %v4581_v8  ;;  %4349 = vmatpush3.msra.mxu1 %v3580_v34 }
0x1334   :  { %4350 = vmatprep.subr.mxu1 %v4581_v8 }
0x1335   :  { %4351 = vmatpush3.msra.mxu1 %v3579_v52 }
0x1336   :  { %4352 = vmatprep.subr.mxu1 %v4581_v8 }
0x1337   :  { %4353 = vmatpush3.msra.mxu1 %v3578_v15 }
0x1338   :  { %4354 = vmatprep.subr.mxu1 %v4581_v8 }
0x1339   :  { %4355 = vmatpush3.msra.mxu1 %v3577_v48 }
0x13f2   :  { %v3470_v41 = vpop.f32.mrf.mxu1 }
0x13f3   :  { %v3471_v37 = vadd.f32 %v3818_v23, %v3470_v41 }
0x13f4   :  { %v4336_v20 = vpop.f32.mrf.mxu1 }
0x13f5   :  { %v3474_v19 = vadd.f32 %v3471_v37, %v3289_v26 }
0x13f7   :  { %v3476_v42 = vand.u32 2147483647, %v3474_v19  ;;  %v3475_v35 = vmax.f32 %v3474_v19, 0.0 }
0x13f9   :  { %v3477_v33 = vsub.f32 0.0, %v3476_v42 }
0x13fb   :  { %v3478_v13 = vmul.f32 1.442695, %v3477_v33 }
0x13fd   :  { %4545 = vpow2.f32 %v3478_v13 }
0x140a   :  { %v4546_v7 = vpop.eup %4545 }
0x140b   :  { %v3480_v10 = vadd.f32 1.0, %v4546_v7 }
0x140d   :  { %4547 = vlog2.f32 %v3480_v10 }
0x141a   :  { %v4548_v58 = vpop.eup %4547 }
0x141b   :  { %v3482_v22 = vmul.f32 0.6931472, %v4548_v58 }
0x141d   :  { %v3483_v46 = vadd.f32 %v3482_v22, %v3475_v35 }
0x141f   :  { %v3820_v63 = vadd.f32 -0.6931472, %v3483_v46 }
0x1421   :  { %4346 = vmatmul.mubr.msk.f32.vlgmr.msra.gmra.mxu0 %vm1134_vm2, %v3820_v63 }
0x14e1   :  { %v3563_v51 = vpop.f32.mrf.mxu0 }
0x14e2   :  { %v3564_v61 = vadd.f32 %v3821_v12, %v3563_v51 }
0x14e3   :  { %v4347_v30 = vpop.f32.mrf.mxu0 }
0x14e4   :  { %v3568_v54 = vand.u32 2147483647, %v3564_v61  ;;  %v3567_v2 = vmax.f32 %v3564_v61, 0.0 }
0x14e6   :  { %v3569_v57 = vsub.f32 0.0, %v3568_v54 }
0x14e8   :  { %v3570_v60 = vmul.f32 1.442695, %v3569_v57 }
0x14ea   :  { %4549 = vpow2.f32 %v3570_v60 }
0x14f7   :  { %v4550_v18 = vpop.eup %4549 }
0x14f8   :  { %v3572_v4 = vadd.f32 1.0, %v4550_v18 }
0x14fa   :  { %4551 = vlog2.f32 %v3572_v4 }
0x1507   :  { %v4552_v5 = vpop.eup %4551 }
0x1508   :  { %v3574_v26 = vmul.f32 0.6931472, %v4552_v5 }
0x150a   :  { %v3575_v50 = vadd.f32 %v3574_v26, %v3567_v2 }
0x150c   :  { %v3823_v8 = vadd.f32 -0.6931472, %v3575_v50 }
0x150e   :  { %4357 = vmatmul.mubr.msk.f32.vlgmr.msra.gmra.mxu1 %vm1134_vm2, %v3823_v8 }
0x15ce   :  { %v3655_v29 = vpop.f32.mrf.mxu1 }
0x15cf   :  { %v3656_v62 = vadd.f32 %v3824_v9, %v3655_v29 }
0x15d0   :  { %v4358_v59 = vpop.f32.mrf.mxu1 }
0x15d1   :  { %v3659_v47 = vadd.f32 %v3656_v62, %v3474_v19 }
0x15d3   :  { %v3661_v0 = vand.u32 2147483647, %v3659_v47  ;;  %v3660_v56 = vmax.f32 %v3659_v47, 0.0 }
0x15d5   :  { %v3662_v31 = vsub.f32 0.0, %v3661_v0 }
0x15d7   :  { %v3663_v28 = vmul.f32 1.442695, %v3662_v31 }
0x15d9   :  { %4553 = vpow2.f32 %v3663_v28 }
0x15e6   :  { %v4554_v27 = vpop.eup %4553 }
0x15e7   :  { %v3665_v1 = vadd.f32 1.0, %v4554_v27 }
0x15e9   :  { %4555 = vlog2.f32 %v3665_v1 }
0x15f6   :  { %v4556_v53 = vpop.eup %4555 }
0x15f7   :  { %v3667_v55 = vmul.f32 0.6931472, %v4556_v53 }
0x15f9   :  { %v3668_v3 = vadd.f32 %v3667_v55, %v3660_v56 }
0x15fb   :  { %v3826_v40 = vadd.f32 -0.6931472, %v3668_v3 }
0x15fd   :  { %3671 = vst.msk [vmem:[#allocation2 + $0x8] sm:$0xff] %vm1134_vm2, %v3826_v40 }
0x15fe   :  { %4570 = shalt.err (!%p4567_p4)
}
0x15ff   :  { %s4591_s26 = smov 128   ;;  %s4592_s27 = smov 8  }
0x1600   :  { %3683 = dma.vmem_to_hbm [thread:$0]  %s3678_s25, 256, %s6148_s7, [#allocation3], %s4591_s26, %s4591_s26, %s4592_s27  }
0x1601   :  { %4579 = dma.done.wait [#allocation3], 256  }
0x1602   :  { %4580 = vsyncadd [#allocation3], 4294967040 }
0x1603   :  { %3687 = vsyncpa [#allocation3], 1 }

</bundles_post_ra>
